<compile_context>
chip_gen: v7x
topology: tpu7x:2x2x1
jax: 0.10.0
libtpu: 0.0.40
codegen_flags: <defaults>
</compile_context>

<pallas_src>
import jax
import jax.numpy as jnp
from jax.experimental import pallas as pl
from jax.experimental.pallas import tpu as pltpu


def _round_up(x, m):
    return ((x + m - 1) // m) * m


# ------------------------------- Pallas kernel ------------------------------ #

def mlp3_kernel(x_ref, w1_ref, b1_ref, w2_ref, b2_ref, w3_ref, b3_ref, o_ref):
    """Fused dense1+ReLU -> dense2+ReLU -> classifier.

    x_ref:  (TM, 512)    bf16 activation tile
    w*_ref: bf16 weights (resident in VMEM across the whole grid)
    b*_ref: (1, N) f32 biases (added after the f32-accumulated matmul)
    o_ref:  (TM, 128)    f32 output tile (padded classifier logits)
    """
    # dense1 + ReLU  (bf16 MXU operands, f32 accumulation)
    h1 = jnp.dot(x_ref[...], w1_ref[...], preferred_element_type=jnp.float32)
    h1 = jnp.maximum(h1 + b1_ref[...], 0.0)
    # dense2 + ReLU
    h2 = jnp.dot(h1.astype(jnp.bfloat16), w2_ref[...],
                 preferred_element_type=jnp.float32)
    h2 = jnp.maximum(h2 + b2_ref[...], 0.0)
    # classifier (no activation)
    o = jnp.dot(h2.astype(jnp.bfloat16), w3_ref[...],
                preferred_element_type=jnp.float32)
    o_ref[...] = o + b3_ref[...]


# ------------------------------- host wrapper ------------------------------- #

def vgg13_split1_forward(params, x, feature=False):
    """Matches VGG13_split1_gtsrb.forward: returns `out` (B, 43)."""
    del feature  # The PyTorch module returns `out` on both branches.
    B, F = x.shape
    w1, b1 = params["dense1"]
    w2, b2 = params["dense2"]
    w3, b3 = params["classifier"]
    H1 = w1.shape[1]
    H2 = w2.shape[1]
    n_cls = w3.shape[1]

    # Pad the classifier output dim to a lane-dense multiple of 128 so the
    # kernel's stores are unmasked; slice the logits back afterwards.
    n_pad = _round_up(n_cls, 128)
    w3p = jnp.pad(w3, ((0, 0), (0, n_pad - n_cls)))
    b3p = jnp.pad(b3, (0, n_pad - n_cls))

    # Tile the batch dimension (sublane-aligned); pad rows so every tile is full.
    tm = min(512, _round_up(B, 8))
    m_pad = _round_up(B, tm)
    xp = jnp.pad(x, ((0, m_pad - B), (0, 0))).astype(jnp.bfloat16)

    # bf16 MXU operands (halves weight HBM traffic); accumulation stays f32.
    w1b = w1.astype(jnp.bfloat16)
    w2b = w2.astype(jnp.bfloat16)
    w3b = w3p.astype(jnp.bfloat16)

    grid = (m_pad // tm,)
    out = pl.pallas_call(
        mlp3_kernel,
        out_shape=jax.ShapeDtypeStruct((m_pad, n_pad), jnp.float32),
        grid_spec=pltpu.PrefetchScalarGridSpec(
            num_scalar_prefetch=0,
            grid=grid,
            in_specs=[
                pl.BlockSpec((tm, F), lambda i: (i, 0)),      # x tile
                pl.BlockSpec((F, H1), lambda i: (0, 0)),      # w1 (resident)
                pl.BlockSpec((1, H1), lambda i: (0, 0)),      # b1
                pl.BlockSpec((H1, H2), lambda i: (0, 0)),     # w2 (resident)
                pl.BlockSpec((1, H2), lambda i: (0, 0)),      # b2
                pl.BlockSpec((H2, n_pad), lambda i: (0, 0)),  # w3 (resident)
                pl.BlockSpec((1, n_pad), lambda i: (0, 0)),   # b3
            ],
            out_specs=pl.BlockSpec((tm, n_pad), lambda i: (i, 0)),
        ),
        compiler_params=pltpu.CompilerParams(
            dimension_semantics=("parallel",),
        ),
    )(xp, w1b, b1.reshape(1, H1), w2b, b2.reshape(1, H2),
      w3b, b3p.reshape(1, n_pad))

    return out[:B, :n_cls]


# --------------------------- parameters & testing --------------------------- #

_LAYER_CFG = [("dense1", 512, 1024), ("dense2", 1024, 1024), ("classifier", 1024, 43)]


def init_params(key):
    """PyTorch nn.Linear default init: U(-1/sqrt(fan_in), 1/sqrt(fan_in))."""
    params = {}
    keys = jax.random.split(key, 2 * len(_LAYER_CFG))
    for i, (name, fin, fout) in enumerate(_LAYER_CFG):
        bound = float(fin) ** -0.5
        w = jax.random.uniform(keys[2 * i], (fin, fout), jnp.float32, -bound, bound)
        b = jax.random.uniform(keys[2 * i + 1], (fout,), jnp.float32, -bound, bound)
        params[name] = (w, b)
    return params


def _reference_forward(params, x):
    """Plain-JAX f32 reference for a loose numerical check (bf16 MXU operands)."""
    w1, b1 = params["dense1"]
    w2, b2 = params["dense2"]
    w3, b3 = params["classifier"]
    d1 = jnp.maximum(x @ w1 + b1, 0.0)
    d2 = jnp.maximum(d1 @ w2 + b2, 0.0)
    return d2 @ w3 + b3


if __name__ == "__main__":
    key = jax.random.PRNGKey(0)
    pkey, xkey = jax.random.split(key)
    params = init_params(pkey)
    # Input consistent with the module: flattened 512-dim VGG features, batch=2.
    x = jax.random.normal(xkey, (2, 512), dtype=jnp.float32)

    fwd = jax.jit(vgg13_split1_forward)
    out = fwd(params, x)
    jax.block_until_ready(out)

    assert out.shape == (2, 43), out.shape
    ref = _reference_forward(params, x)
    # Loose tolerance: matmul operands are bf16 (f32 accumulation).
    assert jnp.allclose(out, ref, rtol=1e-1, atol=1e-1), float(
        jnp.max(jnp.abs(out - ref)))
    print("KERNEL_OK")
</pallas_src>

<mosaic_0001>
module attributes {stable_mosaic.version = 11 : i64} {
  func.func @mlp3_kernel(%arg0: i32, %arg1: memref<8x512xbf16, #tpu.memory_space<vmem>>, %arg2: memref<512x1024xbf16, #tpu.memory_space<vmem>>, %arg3: memref<1x1024xf32, #tpu.memory_space<vmem>>, %arg4: memref<1024x1024xbf16, #tpu.memory_space<vmem>>, %arg5: memref<1x1024xf32, #tpu.memory_space<vmem>>, %arg6: memref<1024x128xbf16, #tpu.memory_space<vmem>>, %arg7: memref<1x128xf32, #tpu.memory_space<vmem>>, %arg8: memref<8x128xf32, #tpu.memory_space<vmem>>) attributes {dimension_semantics = [#tpu.dimension_semantics<parallel>], iteration_bounds = array<i64: 1>, scalar_prefetch = 0 : i64, scratch_operands = 0 : i64, tpu.core_type = #tpu.core_type<tc>, window_params = [{transform_indices = @transform_0, window_bounds = array<i64: 8, 512>}, {pipeline_mode = #tpu.pipeline_mode<synchronous>, transform_indices = @transform_1, window_bounds = array<i64: 512, 1024>}, {pipeline_mode = #tpu.pipeline_mode<synchronous>, transform_indices = @transform_2, window_bounds = array<i64: 1, 1024>}, {pipeline_mode = #tpu.pipeline_mode<synchronous>, transform_indices = @transform_3, window_bounds = array<i64: 1024, 1024>}, {pipeline_mode = #tpu.pipeline_mode<synchronous>, transform_indices = @transform_4, window_bounds = array<i64: 1, 1024>}, {pipeline_mode = #tpu.pipeline_mode<synchronous>, transform_indices = @transform_5, window_bounds = array<i64: 1024, 128>}, {pipeline_mode = #tpu.pipeline_mode<synchronous>, transform_indices = @transform_6, window_bounds = array<i64: 1, 128>}, {transform_indices = @transform_7, window_bounds = array<i64: 8, 128>}]} {
    %c0 = arith.constant 0 : index
    %c0_0 = arith.constant 0 : index
    %0 = vector.load %arg1[%c0, %c0_0] : memref<8x512xbf16, #tpu.memory_space<vmem>>, vector<8x512xbf16>
    %c0_1 = arith.constant 0 : index
    %c0_2 = arith.constant 0 : index
    %1 = vector.load %arg2[%c0_1, %c0_2] : memref<512x1024xbf16, #tpu.memory_space<vmem>>, vector<512x1024xbf16>
    %cst = arith.constant dense<0.000000e+00> : vector<8x1024xf32>
    %2 = tpu.matmul %0, %1, %cst {dimension_numbers = #tpu.dot_dimension_numbers<[1], [0], [0], [1], [0, 0, 1, 1], [], []>} : vector<8x512xbf16>, vector<512x1024xbf16>, vector<8x1024xf32> -> vector<8x1024xf32>
    %c0_3 = arith.constant 0 : index
    %c0_4 = arith.constant 0 : index
    %3 = vector.load %arg3[%c0_3, %c0_4] : memref<1x1024xf32, #tpu.memory_space<vmem>>, vector<1x1024xf32>
    %4 = vector.broadcast %3 : vector<1x1024xf32> to vector<8x1024xf32>
    %5 = arith.addf %2, %4 : vector<8x1024xf32>
    %cst_5 = arith.constant 0.000000e+00 : f32
    %6 = vector.broadcast %cst_5 : f32 to vector<8x1024xf32>
    %7 = arith.maximumf %5, %6 : vector<8x1024xf32>
    %8 = arith.truncf %7 : vector<8x1024xf32> to vector<8x1024xbf16>
    %c0_6 = arith.constant 0 : index
    %c0_7 = arith.constant 0 : index
    %9 = vector.load %arg4[%c0_6, %c0_7] : memref<1024x1024xbf16, #tpu.memory_space<vmem>>, vector<1024x1024xbf16>
    %cst_8 = arith.constant dense<0.000000e+00> : vector<8x1024xf32>
    %10 = tpu.matmul %8, %9, %cst_8 {dimension_numbers = #tpu.dot_dimension_numbers<[1], [0], [0], [1], [0, 0, 1, 1], [], []>} : vector<8x1024xbf16>, vector<1024x1024xbf16>, vector<8x1024xf32> -> vector<8x1024xf32>
    %c0_9 = arith.constant 0 : index
    %c0_10 = arith.constant 0 : index
    %11 = vector.load %arg5[%c0_9, %c0_10] : memref<1x1024xf32, #tpu.memory_space<vmem>>, vector<1x1024xf32>
    %12 = vector.broadcast %11 : vector<1x1024xf32> to vector<8x1024xf32>
    %13 = arith.addf %10, %12 : vector<8x1024xf32>
    %cst_11 = arith.constant 0.000000e+00 : f32
    %14 = vector.broadcast %cst_11 : f32 to vector<8x1024xf32>
    %15 = arith.maximumf %13, %14 : vector<8x1024xf32>
    %16 = arith.truncf %15 : vector<8x1024xf32> to vector<8x1024xbf16>
    %c0_12 = arith.constant 0 : index
    %c0_13 = arith.constant 0 : index
    %17 = vector.load %arg6[%c0_12, %c0_13] : memref<1024x128xbf16, #tpu.memory_space<vmem>>, vector<1024x128xbf16>
    %cst_14 = arith.constant dense<0.000000e+00> : vector<8x128xf32>
    %18 = tpu.matmul %16, %17, %cst_14 {dimension_numbers = #tpu.dot_dimension_numbers<[1], [0], [0], [1], [0, 0, 1, 1], [], []>} : vector<8x1024xbf16>, vector<1024x128xbf16>, vector<8x128xf32> -> vector<8x128xf32>
    %c0_15 = arith.constant 0 : index
    %c0_16 = arith.constant 0 : index
    %19 = vector.load %arg7[%c0_15, %c0_16] : memref<1x128xf32, #tpu.memory_space<vmem>>, vector<1x128xf32>
    %20 = vector.broadcast %19 : vector<1x128xf32> to vector<8x128xf32>
    %21 = arith.addf %18, %20 : vector<8x128xf32>
    %c0_17 = arith.constant 0 : index
    %c0_18 = arith.constant 0 : index
    %22 = vector.load %arg8[%c0_17, %c0_18] : memref<8x128xf32, #tpu.memory_space<vmem>>, vector<8x128xf32>
    tpu.vector_store %arg8[%c0_17, %c0_18], %21 {strides = array<i32>} : memref<8x128xf32, #tpu.memory_space<vmem>>, vector<8x128xf32>,
    return
  }
  func.func @transform_0(%arg0: i32) -> (i32, i32) {
    %c0_i32 = arith.constant 0 : i32
    %c0_i32_0 = arith.constant 0 : i32
    return %arg0, %c0_i32 : i32, i32
  }
  func.func @transform_1(%arg0: i32) -> (i32, i32) {
    %c0_i32 = arith.constant 0 : i32
    %c0_i32_0 = arith.constant 0 : i32
    %c0_i32_1 = arith.constant 0 : i32
    return %c0_i32, %c0_i32_0 : i32, i32
  }
  func.func @transform_2(%arg0: i32) -> (i32, i32) {
    %c0_i32 = arith.constant 0 : i32
    %c0_i32_0 = arith.constant 0 : i32
    %c0_i32_1 = arith.constant 0 : i32
    return %c0_i32, %c0_i32_0 : i32, i32
  }
  func.func @transform_3(%arg0: i32) -> (i32, i32) {
    %c0_i32 = arith.constant 0 : i32
    %c0_i32_0 = arith.constant 0 : i32
    %c0_i32_1 = arith.constant 0 : i32
    return %c0_i32, %c0_i32_0 : i32, i32
  }
  func.func @transform_4(%arg0: i32) -> (i32, i32) {
    %c0_i32 = arith.constant 0 : i32
    %c0_i32_0 = arith.constant 0 : i32
    %c0_i32_1 = arith.constant 0 : i32
    return %c0_i32, %c0_i32_0 : i32, i32
  }
  func.func @transform_5(%arg0: i32) -> (i32, i32) {
    %c0_i32 = arith.constant 0 : i32
    %c0_i32_0 = arith.constant 0 : i32
    %c0_i32_1 = arith.constant 0 : i32
    return %c0_i32, %c0_i32_0 : i32, i32
  }
  func.func @transform_6(%arg0: i32) -> (i32, i32) {
    %c0_i32 = arith.constant 0 : i32
    %c0_i32_0 = arith.constant 0 : i32
    %c0_i32_1 = arith.constant 0 : i32
    return %c0_i32, %c0_i32_0 : i32, i32
  }
  func.func @transform_7(%arg0: i32) -> (i32, i32) {
    %c0_i32 = arith.constant 0 : i32
    %c0_i32_0 = arith.constant 0 : i32
    return %arg0, %c0_i32 : i32, i32
  }
}

</mosaic_0001>

<bundles_post_ra>
// kernel: vgg13_split1_forward.1
= control target key start
LH: loop header
LB: loop body
LE: loop exit
PB: predicated region body
PF: predicated region fallthrough
CT: control target
= control target key end

     0   :  { %s10229_s1 = inlined_call_operand.vmem [shape: bf16[512,1024], index: 1, kind: input, shape index: {}]   ;;  %s10230_s0 = inlined_call_operand.vmem [shape: bf16[8,512], index: 0, kind: input, shape index: {}]   ;;  %s10231_s3 = inlined_call_operand.vmem [shape: bf16[1024,1024], index: 3, kind: input, shape index: {}]   ;;  %s10232_s2 = inlined_call_operand.vmem [shape: f32[1,1024], index: 2, kind: input, shape index: {}]   ;;  %s10233_s5 = inlined_call_operand.vmem [shape: bf16[1024,128], index: 5, kind: input, shape index: {}]   ;;  %s10234_s4 = inlined_call_operand.vmem [shape: f32[1,1024], index: 4, kind: input, shape index: {}]   ;;  %s10235_s6 = inlined_call_operand.vmem [shape: f32[1,128], index: 6, kind: input, shape index: {}]   ;;  %s10236_s7 = inlined_call_operand.vmem [shape: f32[8,128], index: 7, kind: output, shape index: {}]  }
   0x1   :  { %v29_v0 = vld [vmem:[%s10229_s1] sm:$0xff]  ;;  %v30_v2 = vld [vmem:[%s10229_s1 + $0x8] sm:$0xff] }
   0x2   :  { %v33_v1 = vld [vmem:[%s10229_s1 + $0x20] sm:$0xff]  ;;  %v34_v4 = vld [vmem:[%s10229_s1 + $0x28] sm:$0xff] }
   0x3   :  { %v6440_v3 = vcombine.high %v29_v0, %v33_v1  ;;  %v6439_v5 = vcombine.low %v29_v0, %v33_v1  ;;  %v37_v6 = vld [vmem:[%s10229_s1 + $0x40] sm:$0xff]  ;;  %v6442_v8 = vcombine.high %v30_v2, %v34_v4  ;;  %v6441_v9 = vcombine.low %v30_v2, %v34_v4  ;;  %v38_v11 = vld [vmem:[%s10229_s1 + $0x48] sm:$0xff] }
   0x4   :  { %v41_v7 = vld [vmem:[%s10229_s1 + $0x60] sm:$0xff]  ;;  %v42_v12 = vld [vmem:[%s10229_s1 + $0x68] sm:$0xff] }
   0x5   :  { %v6448_v10 = vcombine.high %v37_v6, %v41_v7  ;;  %v45_v13 = vld [vmem:[%s10229_s1 + $0x80] sm:$0xff]  ;;  %1621 = vmatprep.subr.bf16.mxu0 %v6440_v3  ;;  %v6450_v14 = vcombine.high %v38_v11, %v42_v12  ;;  %v46_v16 = vld [vmem:[%s10229_s1 + $0x88] sm:$0xff]  ;;  %1703 = vmatprep.subr.bf16.mxu1 %v6442_v8  ;;  %v6447_v18 = vcombine.low %v37_v6, %v41_v7 }
   0x6   :  { %v49_v15 = vld [vmem:[%s10229_s1 + $0xa0] sm:$0xff]  ;;  %v50_v17 = vld [vmem:[%s10229_s1 + $0xa8] sm:$0xff]  ;;  %1622 = vmatpush1.bf16.msra.mxu0 %v6439_v5  ;;  %1704 = vmatpush1.bf16.msra.mxu1 %v6441_v9  ;;  %v6449_v19 = vcombine.low %v38_v11, %v42_v12 }
   0x7   :  { %1623 = vmatprep.subr.bf16.mxu0 %v6448_v10  ;;  %v6456_v20 = vcombine.high %v45_v13, %v49_v15  ;;  %1705 = vmatprep.subr.bf16.mxu1 %v6450_v14  ;;  %v6458_v21 = vcombine.high %v46_v16, %v50_v17  ;;  %v53_v22 = vld [vmem:[%s10229_s1 + $0xc0] sm:$0xff]  ;;  %v54_v24 = vld [vmem:[%s10229_s1 + $0xc8] sm:$0xff]  ;;  %v6455_v26 = vcombine.low %v45_v13, %v49_v15 }
   0x8   :  { %v57_v23 = vld [vmem:[%s10229_s1 + $0xe0] sm:$0xff]  ;;  %v58_v25 = vld [vmem:[%s10229_s1 + $0xe8] sm:$0xff]  ;;  %v6457_v27 = vcombine.low %v46_v16, %v50_v17 }
   0x9   :  { %v6464_v28 = vcombine.high %v53_v22, %v57_v23  ;;  %v6466_v29 = vcombine.high %v54_v24, %v58_v25  ;;  %v61_v30 = vld [vmem:[%s10229_s1 + $0x100] sm:$0xff]  ;;  %v62_v32 = vld [vmem:[%s10229_s1 + $0x108] sm:$0xff]  ;;  %v6463_v34 = vcombine.low %v53_v22, %v57_v23  ;;  %v6465_v35 = vcombine.low %v54_v24, %v58_v25 }
   0xa   :  { %1624 = vmatpush1.bf16.msra.mxu0 %v6447_v18  ;;  %1706 = vmatpush1.bf16.msra.mxu1 %v6449_v19  ;;  %v65_v31 = vld [vmem:[%s10229_s1 + $0x120] sm:$0xff]  ;;  %v66_v33 = vld [vmem:[%s10229_s1 + $0x128] sm:$0xff] }
   0xb   :  { %1625 = vmatprep.subr.bf16.mxu0 %v6456_v20  ;;  %1707 = vmatprep.subr.bf16.mxu1 %v6458_v21  ;;  %v6472_v36 = vcombine.high %v61_v30, %v65_v31  ;;  %v6474_v37 = vcombine.high %v62_v32, %v66_v33  ;;  %v69_v38 = vld [vmem:[%s10229_s1 + $0x140] sm:$0xff]  ;;  %v70_v40 = vld [vmem:[%s10229_s1 + $0x148] sm:$0xff]  ;;  %v6471_v42 = vcombine.low %v61_v30, %v65_v31 }
   0xc   :  { %v73_v39 = vld [vmem:[%s10229_s1 + $0x160] sm:$0xff]  ;;  %v74_v41 = vld [vmem:[%s10229_s1 + $0x168] sm:$0xff]  ;;  %v6473_v43 = vcombine.low %v62_v32, %v66_v33 }
   0xd   :  { %v6480_v44 = vcombine.high %v69_v38, %v73_v39  ;;  %v6482_v45 = vcombine.high %v70_v40, %v74_v41  ;;  %v77_v46 = vld [vmem:[%s10229_s1 + $0x180] sm:$0xff]  ;;  %v78_v48 = vld [vmem:[%s10229_s1 + $0x188] sm:$0xff]  ;;  %v6479_v50 = vcombine.low %v69_v38, %v73_v39  ;;  %v6481_v51 = vcombine.low %v70_v40, %v74_v41 }
   0xe   :  { %1626 = vmatpush1.bf16.msra.mxu0 %v6455_v26  ;;  %1708 = vmatpush1.bf16.msra.mxu1 %v6457_v27  ;;  %v81_v47 = vld [vmem:[%s10229_s1 + $0x1a0] sm:$0xff]  ;;  %v82_v49 = vld [vmem:[%s10229_s1 + $0x1a8] sm:$0xff] }
   0xf   :  { %1627 = vmatprep.subr.bf16.mxu0 %v6464_v28  ;;  %1709 = vmatprep.subr.bf16.mxu1 %v6466_v29  ;;  %v6488_v52 = vcombine.high %v77_v46, %v81_v47  ;;  %v7636_v53 = vld [vmem:[%s10230_s0] sm:$0xff]  ;;  %v6490_v54 = vcombine.high %v78_v48, %v82_v49  ;;  %v86_v58 = vld [vmem:[%s10229_s1 + $0x1c8] sm:$0xff]  ;;  %v6487_v60 = vcombine.low %v77_v46, %v81_v47 }
  0x10   :  { %v85_v55 = vld [vmem:[%s10229_s1 + $0x1c0] sm:$0xff]  ;;  %v7646_v57 = vcombine.high %v7636_v53, %v7636_v53  ;;  %v90_v59 = vld [vmem:[%s10229_s1 + $0x1e8] sm:$0xff]  ;;  %v6489_v61 = vcombine.low %v78_v48, %v82_v49 }
  0x11   :  { %v89_v56 = vld [vmem:[%s10229_s1 + $0x1e0] sm:$0xff]  ;;  %v6498_v63 = vcombine.high %v86_v58, %v90_v59  ;;  %v94_v2 = vld [vmem:[%s10229_s1 + $0x208] sm:$0xff]  ;;  %v6497_v5 = vcombine.low %v86_v58, %v90_v59 }
  0x12   :  { %1628 = vmatpush1.bf16.msra.mxu0 %v6463_v34  ;;  %1710 = vmatpush1.bf16.msra.mxu1 %v6465_v35  ;;  %v6496_v62 = vcombine.high %v85_v55, %v89_v56  ;;  %v93_v0 = vld [vmem:[%s10229_s1 + $0x200] sm:$0xff]  ;;  %v98_v3 = vld [vmem:[%s10229_s1 + $0x228] sm:$0xff]  ;;  %v6495_v4 = vcombine.low %v85_v55, %v89_v56 }
  0x13   :  { %1629 = vmatprep.subr.bf16.mxu0 %v6472_v36  ;;  %1711 = vmatprep.subr.bf16.mxu1 %v6474_v37  ;;  %v97_v1 = vld [vmem:[%s10229_s1 + $0x220] sm:$0xff]  ;;  %v6506_v7 = vcombine.high %v94_v2, %v98_v3  ;;  %v102_v10 = vld [vmem:[%s10229_s1 + $0x248] sm:$0xff]  ;;  %v6505_v13 = vcombine.low %v94_v2, %v98_v3 }
  0x14   :  { %1653 = vmatprep.mubr.bf16.mxu0 %v7646_v57  ;;  %1735 = vmatprep.mubr.bf16.mxu1 %v7646_v57  ;;  %v6504_v6 = vcombine.high %v93_v0, %v97_v1  ;;  %v101_v8 = vld [vmem:[%s10229_s1 + $0x240] sm:$0xff]  ;;  %v106_v11 = vld [vmem:[%s10229_s1 + $0x268] sm:$0xff]  ;;  %v6503_v12 = vcombine.low %v93_v0, %v97_v1 }
  0x15   :  { %v105_v9 = vld [vmem:[%s10229_s1 + $0x260] sm:$0xff]  ;;  %v6514_v15 = vcombine.high %v102_v10, %v106_v11  ;;  %v110_v18 = vld [vmem:[%s10229_s1 + $0x288] sm:$0xff]  ;;  %v6513_v21 = vcombine.low %v102_v10, %v106_v11 }
  0x16   :  { %1630 = vmatpush1.bf16.msra.mxu0 %v6471_v42  ;;  %1712 = vmatpush1.bf16.msra.mxu1 %v6473_v43  ;;  %v6512_v14 = vcombine.high %v101_v8, %v105_v9  ;;  %v109_v16 = vld [vmem:[%s10229_s1 + $0x280] sm:$0xff]  ;;  %v114_v19 = vld [vmem:[%s10229_s1 + $0x2a8] sm:$0xff]  ;;  %v6511_v20 = vcombine.low %v101_v8, %v105_v9 }
  0x17   :  { %1631 = vmatprep.subr.bf16.mxu0 %v6480_v44  ;;  %1713 = vmatprep.subr.bf16.mxu1 %v6482_v45  ;;  %v113_v17 = vld [vmem:[%s10229_s1 + $0x2a0] sm:$0xff]  ;;  %v6522_v23 = vcombine.high %v110_v18, %v114_v19  ;;  %v118_v26 = vld [vmem:[%s10229_s1 + $0x2c8] sm:$0xff]  ;;  %v6521_v29 = vcombine.low %v110_v18, %v114_v19 }
  0x18   :  { %v6520_v22 = vcombine.high %v109_v16, %v113_v17  ;;  %v117_v24 = vld [vmem:[%s10229_s1 + $0x2c0] sm:$0xff]  ;;  %v122_v27 = vld [vmem:[%s10229_s1 + $0x2e8] sm:$0xff]  ;;  %v6519_v28 = vcombine.low %v109_v16, %v113_v17 }
  0x19   :  { %v121_v25 = vld [vmem:[%s10229_s1 + $0x2e0] sm:$0xff]  ;;  %v6530_v31 = vcombine.high %v118_v26, %v122_v27  ;;  %v126_v34 = vld [vmem:[%s10229_s1 + $0x308] sm:$0xff]  ;;  %v6529_v37 = vcombine.low %v118_v26, %v122_v27 }
  0x1a   :  { %1632 = vmatpush1.bf16.msra.mxu0 %v6479_v50  ;;  %1714 = vmatpush1.bf16.msra.mxu1 %v6481_v51  ;;  %v6528_v30 = vcombine.high %v117_v24, %v121_v25  ;;  %v125_v32 = vld [vmem:[%s10229_s1 + $0x300] sm:$0xff]  ;;  %v130_v35 = vld [vmem:[%s10229_s1 + $0x328] sm:$0xff]  ;;  %v6527_v36 = vcombine.low %v117_v24, %v121_v25 }
  0x1b   :  { %1633 = vmatprep.subr.bf16.mxu0 %v6488_v52  ;;  %1715 = vmatprep.subr.bf16.mxu1 %v6490_v54  ;;  %v129_v33 = vld [vmem:[%s10229_s1 + $0x320] sm:$0xff]  ;;  %v6538_v39 = vcombine.high %v126_v34, %v130_v35  ;;  %v134_v42 = vld [vmem:[%s10229_s1 + $0x348] sm:$0xff]  ;;  %v6537_v45 = vcombine.low %v126_v34, %v130_v35 }
  0x1c   :  { %v6536_v38 = vcombine.high %v125_v32, %v129_v33  ;;  %v133_v40 = vld [vmem:[%s10229_s1 + $0x340] sm:$0xff]  ;;  %v138_v43 = vld [vmem:[%s10229_s1 + $0x368] sm:$0xff]  ;;  %v6535_v44 = vcombine.low %v125_v32, %v129_v33 }
  0x1d   :  { %v137_v41 = vld [vmem:[%s10229_s1 + $0x360] sm:$0xff]  ;;  %v6546_v47 = vcombine.high %v134_v42, %v138_v43  ;;  %v142_v50 = vld [vmem:[%s10229_s1 + $0x388] sm:$0xff]  ;;  %v6545_v54 = vcombine.low %v134_v42, %v138_v43 }
  0x1e   :  { %1634 = vmatpush1.bf16.msra.mxu0 %v6487_v60  ;;  %1716 = vmatpush1.bf16.msra.mxu1 %v6489_v61  ;;  %v6544_v46 = vcombine.high %v133_v40, %v137_v41  ;;  %v141_v48 = vld [vmem:[%s10229_s1 + $0x380] sm:$0xff]  ;;  %v146_v51 = vld [vmem:[%s10229_s1 + $0x3a8] sm:$0xff]  ;;  %v6543_v52 = vcombine.low %v133_v40, %v137_v41 }
  0x1f   :  { %1635 = vmatprep.subr.bf16.mxu0 %v6496_v62  ;;  %1717 = vmatprep.subr.bf16.mxu1 %v6498_v63  ;;  %v145_v49 = vld [vmem:[%s10229_s1 + $0x3a0] sm:$0xff]  ;;  %v6554_v56 = vcombine.high %v142_v50, %v146_v51  ;;  %v150_v60 = vld [vmem:[%s10229_s1 + $0x3c8] sm:$0xff]  ;;  %v6553_v63 = vcombine.low %v142_v50, %v146_v51 }
  0x20   :  { %v6552_v55 = vcombine.high %v141_v48, %v145_v49  ;;  %v149_v58 = vld [vmem:[%s10229_s1 + $0x3c0] sm:$0xff]  ;;  %v154_v61 = vld [vmem:[%s10229_s1 + $0x3e8] sm:$0xff]  ;;  %v6551_v62 = vcombine.low %v141_v48, %v145_v49 }
  0x21   :  { %v153_v59 = vld [vmem:[%s10229_s1 + $0x3e0] sm:$0xff]  ;;  %v6562_v1 = vcombine.high %v150_v60, %v154_v61 }
  0x22   :  { %1636 = vmatpush1.bf16.msra.mxu0 %v6495_v4  ;;  %1718 = vmatpush1.bf16.msra.mxu1 %v6497_v5  ;;  %v6560_v0 = vcombine.high %v149_v58, %v153_v59  ;;  %v157_v2 = vld [vmem:[%s10229_s1 + $0x400] sm:$0xff]  ;;  %v158_v4 = vld [vmem:[%s10229_s1 + $0x408] sm:$0xff] }
  0x23   :  { %1637 = vmatprep.subr.bf16.mxu0 %v6504_v6  ;;  %1719 = vmatprep.subr.bf16.mxu1 %v6506_v7  ;;  %v161_v3 = vld [vmem:[%s10229_s1 + $0x420] sm:$0xff]  ;;  %v162_v5 = vld [vmem:[%s10229_s1 + $0x428] sm:$0xff]  ;;  %v6559_v6 = vcombine.low %v149_v58, %v153_v59  ;;  %v6561_v7 = vcombine.low %v150_v60, %v154_v61 }
  0x24   :  { %v6568_v8 = vcombine.high %v157_v2, %v161_v3  ;;  %v6570_v9 = vcombine.high %v158_v4, %v162_v5  ;;  %v165_v10 = vld [vmem:[%s10229_s1 + $0x440] sm:$0xff]  ;;  %v6567_v16 = vcombine.low %v157_v2, %v161_v3  ;;  %v6569_v17 = vcombine.low %v158_v4, %v162_v5 }
  0x25   :  { %v169_v11 = vld [vmem:[%s10229_s1 + $0x460] sm:$0xff] }
  0x26   :  { %1638 = vmatpush1.bf16.msra.mxu0 %v6503_v12  ;;  %1720 = vmatpush1.bf16.msra.mxu1 %v6505_v13  ;;  %v7772_v12 = vcombine.low %v7636_v53, %v7636_v53  ;;  %v166_v13 = vld [vmem:[%s10229_s1 + $0x448] sm:$0xff]  ;;  %v6576_v53 = vcombine.high %v165_v10, %v169_v11  ;;  %v173_v19 = vld [vmem:[%s10229_s1 + $0x480] sm:$0xff]  ;;  %v6575_v24 = vcombine.low %v165_v10, %v169_v11 }
  0x27   :  { %1639 = vmatprep.subr.bf16.mxu0 %v6512_v14  ;;  %1721 = vmatprep.subr.bf16.mxu1 %v6514_v15  ;;  %v170_v14 = vld [vmem:[%s10229_s1 + $0x468] sm:$0xff] }
  0x28   :  { %v7783_v15 = vld [vmem:[%s10230_s0 + $0x8] sm:$0xff]  ;;  %v6578_v18 = vcombine.high %v166_v13, %v170_v14  ;;  %v6577_v25 = vcombine.low %v166_v13, %v170_v14 }
  0x2a   :  { %1640 = vmatpush1.bf16.msra.mxu0 %v6511_v20  ;;  %1722 = vmatpush1.bf16.msra.mxu1 %v6513_v21  ;;  %v177_v20 = vld [vmem:[%s10229_s1 + $0x4a0] sm:$0xff]  ;;  %v7793_v21 = vcombine.high %v7783_v15, %v7783_v15 }
  0x2b   :  { %1641 = vmatprep.subr.bf16.mxu0 %v6520_v22  ;;  %1723 = vmatprep.subr.bf16.mxu1 %v6522_v23  ;;  %v174_v22 = vld [vmem:[%s10229_s1 + $0x488] sm:$0xff]  ;;  %v6584_v26 = vcombine.high %v173_v19, %v177_v20  ;;  %v6583_v32 = vcombine.low %v173_v19, %v177_v20 }
  0x2c   :  { %v178_v23 = vld [vmem:[%s10229_s1 + $0x4a8] sm:$0xff] }
  0x2d   :  { %v6586_v27 = vcombine.high %v174_v22, %v178_v23  ;;  %v6585_v33 = vcombine.low %v174_v22, %v178_v23 }
  0x2e   :  { %1642 = vmatpush1.bf16.msra.mxu0 %v6519_v28  ;;  %1724 = vmatpush1.bf16.msra.mxu1 %v6521_v29  ;;  %v181_v28 = vld [vmem:[%s10229_s1 + $0x4c0] sm:$0xff] }
  0x2f   :  { %1643 = vmatprep.subr.bf16.mxu0 %v6528_v30  ;;  %1725 = vmatprep.subr.bf16.mxu1 %v6530_v31  ;;  %v185_v29 = vld [vmem:[%s10229_s1 + $0x4e0] sm:$0xff]  ;;  %v182_v30 = vld [vmem:[%s10229_s1 + $0x4c8] sm:$0xff] }
  0x30   :  { %v186_v31 = vld [vmem:[%s10229_s1 + $0x4e8] sm:$0xff]  ;;  %v6592_v34 = vcombine.high %v181_v28, %v185_v29  ;;  %v6591_v40 = vcombine.low %v181_v28, %v185_v29 }
  0x31   :  { %v6594_v35 = vcombine.high %v182_v30, %v186_v31  ;;  %v6593_v41 = vcombine.low %v182_v30, %v186_v31 }
  0x32   :  { %1644 = vmatpush1.bf16.msra.mxu0 %v6527_v36  ;;  %1726 = vmatpush1.bf16.msra.mxu1 %v6529_v37  ;;  %v189_v36 = vld [vmem:[%s10229_s1 + $0x500] sm:$0xff] }
  0x33   :  { %1645 = vmatprep.subr.bf16.mxu0 %v6536_v38  ;;  %1727 = vmatprep.subr.bf16.mxu1 %v6538_v39  ;;  %v193_v37 = vld [vmem:[%s10229_s1 + $0x520] sm:$0xff]  ;;  %v190_v38 = vld [vmem:[%s10229_s1 + $0x508] sm:$0xff] }
  0x34   :  { %v194_v39 = vld [vmem:[%s10229_s1 + $0x528] sm:$0xff]  ;;  %v6600_v42 = vcombine.high %v189_v36, %v193_v37  ;;  %v6599_v48 = vcombine.low %v189_v36, %v193_v37 }
  0x35   :  { %v6602_v43 = vcombine.high %v190_v38, %v194_v39  ;;  %v6601_v49 = vcombine.low %v190_v38, %v194_v39 }
  0x36   :  { %1646 = vmatpush1.bf16.msra.mxu0 %v6535_v44  ;;  %1728 = vmatpush1.bf16.msra.mxu1 %v6537_v45  ;;  %v197_v44 = vld [vmem:[%s10229_s1 + $0x540] sm:$0xff] }
  0x37   :  { %1647 = vmatprep.subr.bf16.mxu0 %v6544_v46  ;;  %1729 = vmatprep.subr.bf16.mxu1 %v6546_v47  ;;  %v201_v45 = vld [vmem:[%s10229_s1 + $0x560] sm:$0xff]  ;;  %v198_v46 = vld [vmem:[%s10229_s1 + $0x548] sm:$0xff] }
  0x38   :  { %v202_v47 = vld [vmem:[%s10229_s1 + $0x568] sm:$0xff]  ;;  %v6608_v50 = vcombine.high %v197_v44, %v201_v45  ;;  %v6607_v58 = vcombine.low %v197_v44, %v201_v45 }
  0x39   :  { %v6610_v51 = vcombine.high %v198_v46, %v202_v47  ;;  %v6609_v59 = vcombine.low %v198_v46, %v202_v47 }
  0x3a   :  { %1648 = vmatpush1.bf16.msra.mxu0 %v6543_v52  ;;  %1730 = vmatpush1.bf16.msra.mxu1 %v6545_v54  ;;  %v205_v52 = vld [vmem:[%s10229_s1 + $0x580] sm:$0xff] }
  0x3b   :  { %1649 = vmatprep.subr.bf16.mxu0 %v6552_v55  ;;  %1731 = vmatprep.subr.bf16.mxu1 %v6554_v56  ;;  %v209_v54 = vld [vmem:[%s10229_s1 + $0x5a0] sm:$0xff]  ;;  %v206_v55 = vld [vmem:[%s10229_s1 + $0x588] sm:$0xff] }
  0x3c   :  { %v210_v56 = vld [vmem:[%s10229_s1 + $0x5a8] sm:$0xff]  ;;  %v6616_v60 = vcombine.high %v205_v52, %v209_v54  ;;  %v6615_v2 = vcombine.low %v205_v52, %v209_v54 }
  0x3d   :  { %v6618_v61 = vcombine.high %v206_v55, %v210_v56  ;;  %v6617_v3 = vcombine.low %v206_v55, %v210_v56 }
  0x3e   :  { %1650 = vmatpush1.bf16.msra.mxu0 %v6551_v62  ;;  %1732 = vmatpush1.bf16.msra.mxu1 %v6553_v63  ;;  %v213_v62 = vld [vmem:[%s10229_s1 + $0x5c0] sm:$0xff] }
  0x3f   :  { %1651 = vmatprep.subr.bf16.mxu0 %v6560_v0  ;;  %1733 = vmatprep.subr.bf16.mxu1 %v6562_v1  ;;  %v217_v63 = vld [vmem:[%s10229_s1 + $0x5e0] sm:$0xff]  ;;  %v214_v0 = vld [vmem:[%s10229_s1 + $0x5c8] sm:$0xff] }
  0x40   :  { %v218_v1 = vld [vmem:[%s10229_s1 + $0x5e8] sm:$0xff]  ;;  %v6624_v4 = vcombine.high %v213_v62, %v217_v63  ;;  %v6623_v10 = vcombine.low %v213_v62, %v217_v63 }
  0x41   :  { %v6626_v5 = vcombine.high %v214_v0, %v218_v1  ;;  %v6625_v11 = vcombine.low %v214_v0, %v218_v1 }
  0x42   :  { %1652 = vmatpush1.bf16.msra.mxu0 %v6559_v6  ;;  %1734 = vmatpush1.bf16.msra.mxu1 %v6561_v7  ;;  %v221_v6 = vld [vmem:[%s10229_s1 + $0x600] sm:$0xff] }
  0x43   :  { %1662 = vmatprep.subr.bf16.mxu0 %v6568_v8  ;;  %1744 = vmatprep.subr.bf16.mxu1 %v6570_v9  ;;  %v225_v7 = vld [vmem:[%s10229_s1 + $0x620] sm:$0xff]  ;;  %v222_v8 = vld [vmem:[%s10229_s1 + $0x608] sm:$0xff] }
  0x44   :  { %v226_v9 = vld [vmem:[%s10229_s1 + $0x628] sm:$0xff]  ;;  %v6632_v13 = vcombine.high %v221_v6, %v225_v7  ;;  %v6631_v19 = vcombine.low %v221_v6, %v225_v7 }
  0x45   :  { %1654 = vmatmul.mubr.bf16.vlgmr.msra.gmra.mrb[0].mxu0 %v7772_v12  ;;  %1736 = vmatmul.mubr.bf16.vlgmr.msra.gmra.mrb[0].mxu1 %v7772_v12  ;;  %v6634_v14 = vcombine.high %v222_v8, %v226_v9  ;;  %v6633_v20 = vcombine.low %v222_v8, %v226_v9 }
  0x46   :  { %1663 = vmatpush1.bf16.msra.mxu0 %v6567_v16  ;;  %1745 = vmatpush1.bf16.msra.mxu1 %v6569_v17  ;;  %v229_v16 = vld [vmem:[%s10229_s1 + $0x640] sm:$0xff] }
  0x47   :  { %1664 = vmatprep.subr.bf16.mxu0 %v6576_v53  ;;  %1746 = vmatprep.subr.bf16.mxu1 %v6578_v18  ;;  %v233_v17 = vld [vmem:[%s10229_s1 + $0x660] sm:$0xff]  ;;  %v230_v53 = vld [vmem:[%s10229_s1 + $0x648] sm:$0xff] }
  0x48   :  { %1694 = vmatprep.mubr.bf16.mxu0 %v7793_v21  ;;  %1776 = vmatprep.mubr.bf16.mxu1 %v7793_v21  ;;  %v234_v18 = vld [vmem:[%s10229_s1 + $0x668] sm:$0xff]  ;;  %v6640_v22 = vcombine.high %v229_v16, %v233_v17  ;;  %v6639_v28 = vcombine.low %v229_v16, %v233_v17 }
  0x49   :  { %v6642_v23 = vcombine.high %v230_v53, %v234_v18  ;;  %v6641_v29 = vcombine.low %v230_v53, %v234_v18 }
  0x4a   :  { %1665 = vmatpush1.bf16.msra.mxu0 %v6575_v24  ;;  %1747 = vmatpush1.bf16.msra.mxu1 %v6577_v25  ;;  %v237_v24 = vld [vmem:[%s10229_s1 + $0x680] sm:$0xff] }
  0x4b   :  { %1666 = vmatprep.subr.bf16.mxu0 %v6584_v26  ;;  %1748 = vmatprep.subr.bf16.mxu1 %v6586_v27  ;;  %v241_v25 = vld [vmem:[%s10229_s1 + $0x6a0] sm:$0xff]  ;;  %v238_v26 = vld [vmem:[%s10229_s1 + $0x688] sm:$0xff] }
  0x4c   :  { %v242_v27 = vld [vmem:[%s10229_s1 + $0x6a8] sm:$0xff]  ;;  %v6648_v30 = vcombine.high %v237_v24, %v241_v25  ;;  %v6647_v36 = vcombine.low %v237_v24, %v241_v25  ;;  %v44_v24 = vld [vmem:[%s10229_s1 + $0x78] sm:$0xff] }
  0x4d   :  { %v6650_v31 = vcombine.high %v238_v26, %v242_v27  ;;  %v6649_v37 = vcombine.low %v238_v26, %v242_v27 }
  0x4e   :  { %1667 = vmatpush1.bf16.msra.mxu0 %v6583_v32  ;;  %1749 = vmatpush1.bf16.msra.mxu1 %v6585_v33  ;;  %v245_v32 = vld [vmem:[%s10229_s1 + $0x6c0] sm:$0xff] }
  0x4f   :  { %1668 = vmatprep.subr.bf16.mxu0 %v6592_v34  ;;  %1750 = vmatprep.subr.bf16.mxu1 %v6594_v35  ;;  %v249_v33 = vld [vmem:[%s10229_s1 + $0x6e0] sm:$0xff]  ;;  %v246_v34 = vld [vmem:[%s10229_s1 + $0x6c8] sm:$0xff] }
  0x50   :  { %v250_v35 = vld [vmem:[%s10229_s1 + $0x6e8] sm:$0xff]  ;;  %v6656_v38 = vcombine.high %v245_v32, %v249_v33  ;;  %v6655_v44 = vcombine.low %v245_v32, %v249_v33 }
  0x51   :  { %v6658_v39 = vcombine.high %v246_v34, %v250_v35  ;;  %v6657_v45 = vcombine.low %v246_v34, %v250_v35 }
  0x52   :  { %1669 = vmatpush1.bf16.msra.mxu0 %v6591_v40  ;;  %1751 = vmatpush1.bf16.msra.mxu1 %v6593_v41  ;;  %v253_v40 = vld [vmem:[%s10229_s1 + $0x700] sm:$0xff] }
  0x53   :  { %1670 = vmatprep.subr.bf16.mxu0 %v6600_v42  ;;  %1752 = vmatprep.subr.bf16.mxu1 %v6602_v43  ;;  %v257_v41 = vld [vmem:[%s10229_s1 + $0x720] sm:$0xff]  ;;  %v254_v42 = vld [vmem:[%s10229_s1 + $0x708] sm:$0xff] }
  0x54   :  { %v258_v43 = vld [vmem:[%s10229_s1 + $0x728] sm:$0xff]  ;;  %v6664_v46 = vcombine.high %v253_v40, %v257_v41  ;;  %v6663_v52 = vcombine.low %v253_v40, %v257_v41 }
  0x55   :  { %v6666_v47 = vcombine.high %v254_v42, %v258_v43  ;;  %v6665_v54 = vcombine.low %v254_v42, %v258_v43 }
  0x56   :  { %1671 = vmatpush1.bf16.msra.mxu0 %v6599_v48  ;;  %1753 = vmatpush1.bf16.msra.mxu1 %v6601_v49  ;;  %v261_v48 = vld [vmem:[%s10229_s1 + $0x740] sm:$0xff] }
  0x57   :  { %1672 = vmatprep.subr.bf16.mxu0 %v6608_v50  ;;  %1754 = vmatprep.subr.bf16.mxu1 %v6610_v51  ;;  %v265_v49 = vld [vmem:[%s10229_s1 + $0x760] sm:$0xff]  ;;  %v262_v50 = vld [vmem:[%s10229_s1 + $0x748] sm:$0xff] }
  0x58   :  { %v266_v51 = vld [vmem:[%s10229_s1 + $0x768] sm:$0xff]  ;;  %v6672_v55 = vcombine.high %v261_v48, %v265_v49  ;;  %v6671_v62 = vcombine.low %v261_v48, %v265_v49 }
  0x59   :  { %v6674_v56 = vcombine.high %v262_v50, %v266_v51  ;;  %v6673_v63 = vcombine.low %v262_v50, %v266_v51  ;;  %v71_v51 = vld [vmem:[%s10229_s1 + $0x150] sm:$0xff] }
  0x5a   :  { %1673 = vmatpush1.bf16.msra.mxu0 %v6607_v58  ;;  %1755 = vmatpush1.bf16.msra.mxu1 %v6609_v59  ;;  %v269_v58 = vld [vmem:[%s10229_s1 + $0x780] sm:$0xff] }
  0x5b   :  { %1674 = vmatprep.subr.bf16.mxu0 %v6616_v60  ;;  %1756 = vmatprep.subr.bf16.mxu1 %v6618_v61  ;;  %v273_v59 = vld [vmem:[%s10229_s1 + $0x7a0] sm:$0xff]  ;;  %v270_v60 = vld [vmem:[%s10229_s1 + $0x788] sm:$0xff] }
  0x5c   :  { %v274_v61 = vld [vmem:[%s10229_s1 + $0x7a8] sm:$0xff]  ;;  %v6680_v0 = vcombine.high %v269_v58, %v273_v59  ;;  %v6679_v6 = vcombine.low %v269_v58, %v273_v59 }
  0x5d   :  { %v6682_v1 = vcombine.high %v270_v60, %v274_v61  ;;  %v6681_v7 = vcombine.low %v270_v60, %v274_v61  ;;  %v79_v61 = vld [vmem:[%s10229_s1 + $0x190] sm:$0xff] }
  0x5e   :  { %1675 = vmatpush1.bf16.msra.mxu0 %v6615_v2  ;;  %1757 = vmatpush1.bf16.msra.mxu1 %v6617_v3  ;;  %v277_v2 = vld [vmem:[%s10229_s1 + $0x7c0] sm:$0xff] }
  0x5f   :  { %1676 = vmatprep.subr.bf16.mxu0 %v6624_v4  ;;  %1758 = vmatprep.subr.bf16.mxu1 %v6626_v5  ;;  %v281_v3 = vld [vmem:[%s10229_s1 + $0x7e0] sm:$0xff]  ;;  %v278_v4 = vld [vmem:[%s10229_s1 + $0x7c8] sm:$0xff] }
  0x60   :  { %v282_v5 = vld [vmem:[%s10229_s1 + $0x7e8] sm:$0xff]  ;;  %v6688_v8 = vcombine.high %v277_v2, %v281_v3  ;;  %v6687_v16 = vcombine.low %v277_v2, %v281_v3 }
  0x61   :  { %v6690_v9 = vcombine.high %v278_v4, %v282_v5  ;;  %v6689_v17 = vcombine.low %v278_v4, %v282_v5  ;;  %v87_v5 = vld [vmem:[%s10229_s1 + $0x1d0] sm:$0xff] }
  0x62   :  { %1677 = vmatpush1.bf16.msra.mxu0 %v6623_v10  ;;  %1759 = vmatpush1.bf16.msra.mxu1 %v6625_v11  ;;  %v31_v10 = vld [vmem:[%s10229_s1 + $0x10] sm:$0xff] }
  0x63   :  { %1678 = vmatprep.subr.bf16.mxu0 %v6632_v13  ;;  %1760 = vmatprep.subr.bf16.mxu1 %v6634_v14  ;;  %v35_v11 = vld [vmem:[%s10229_s1 + $0x30] sm:$0xff]  ;;  %v32_v13 = vld [vmem:[%s10229_s1 + $0x18] sm:$0xff] }
  0x64   :  { %v36_v14 = vld [vmem:[%s10229_s1 + $0x38] sm:$0xff]  ;;  %v6444_v53 = vcombine.high %v31_v10, %v35_v11  ;;  %v6443_v25 = vcombine.low %v31_v10, %v35_v11 }
  0x65   :  { %v6446_v18 = vcombine.high %v32_v13, %v36_v14  ;;  %v6445_v26 = vcombine.low %v32_v13, %v36_v14  ;;  %v95_v14 = vld [vmem:[%s10229_s1 + $0x210] sm:$0xff] }
  0x66   :  { %1679 = vmatpush1.bf16.msra.mxu0 %v6631_v19  ;;  %1761 = vmatpush1.bf16.msra.mxu1 %v6633_v20  ;;  %v39_v19 = vld [vmem:[%s10229_s1 + $0x50] sm:$0xff] }
  0x67   :  { %1680 = vmatprep.subr.bf16.mxu0 %v6640_v22  ;;  %1762 = vmatprep.subr.bf16.mxu1 %v6642_v23  ;;  %v43_v20 = vld [vmem:[%s10229_s1 + $0x70] sm:$0xff]  ;;  %v7981_v22 = vcombine.low %v7783_v15, %v7783_v15  ;;  %v40_v23 = vld [vmem:[%s10229_s1 + $0x58] sm:$0xff] }
  0x68   :  { %v6452_v27 = vcombine.high %v39_v19, %v43_v20  ;;  %v47_v15 = vld [vmem:[%s10229_s1 + $0x90] sm:$0xff]  ;;  %v6451_v32 = vcombine.low %v39_v19, %v43_v20  ;;  %v6453_v33 = vcombine.low %v40_v23, %v44_v24 }
  0x6a   :  { %1681 = vmatpush1.bf16.msra.mxu0 %v6639_v28  ;;  %1763 = vmatpush1.bf16.msra.mxu1 %v6641_v29  ;;  %v6454_v28 = vcombine.high %v40_v23, %v44_v24  ;;  %v51_v29 = vld [vmem:[%s10229_s1 + $0xb0] sm:$0xff] }
  0x6b   :  { %1682 = vmatprep.subr.bf16.mxu0 %v6648_v30  ;;  %1764 = vmatprep.subr.bf16.mxu1 %v6650_v31  ;;  %v48_v30 = vld [vmem:[%s10229_s1 + $0x98] sm:$0xff]  ;;  %v6460_v34 = vcombine.high %v47_v15, %v51_v29  ;;  %v6459_v40 = vcombine.low %v47_v15, %v51_v29  ;;  %v103_v24 = vld [vmem:[%s10229_s1 + $0x250] sm:$0xff] }
  0x6c   :  { %v52_v31 = vld [vmem:[%s10229_s1 + $0xb8] sm:$0xff] }
  0x6d   :  { %v6462_v35 = vcombine.high %v48_v30, %v52_v31  ;;  %v6461_v41 = vcombine.low %v48_v30, %v52_v31  ;;  %v111_v31 = vld [vmem:[%s10229_s1 + $0x290] sm:$0xff] }
  0x6e   :  { %1683 = vmatpush1.bf16.msra.mxu0 %v6647_v36  ;;  %1765 = vmatpush1.bf16.msra.mxu1 %v6649_v37  ;;  %v55_v36 = vld [vmem:[%s10229_s1 + $0xd0] sm:$0xff] }
  0x6f   :  { %1684 = vmatprep.subr.bf16.mxu0 %v6656_v38  ;;  %1766 = vmatprep.subr.bf16.mxu1 %v6658_v39  ;;  %v59_v37 = vld [vmem:[%s10229_s1 + $0xf0] sm:$0xff]  ;;  %v56_v38 = vld [vmem:[%s10229_s1 + $0xd8] sm:$0xff] }
  0x70   :  { %v60_v39 = vld [vmem:[%s10229_s1 + $0xf8] sm:$0xff]  ;;  %v6468_v42 = vcombine.high %v55_v36, %v59_v37 }
  0x71   :  { %v6470_v43 = vcombine.high %v56_v38, %v60_v39  ;;  %v6469_v48 = vcombine.low %v56_v38, %v60_v39  ;;  %v119_v39 = vld [vmem:[%s10229_s1 + $0x2d0] sm:$0xff] }
  0x72   :  { %1685 = vmatpush1.bf16.msra.mxu0 %v6655_v44  ;;  %1767 = vmatpush1.bf16.msra.mxu1 %v6657_v45  ;;  %v63_v44 = vld [vmem:[%s10229_s1 + $0x110] sm:$0xff] }
  0x73   :  { %1686 = vmatprep.subr.bf16.mxu0 %v6664_v46  ;;  %1768 = vmatprep.subr.bf16.mxu1 %v6666_v47  ;;  %v67_v45 = vld [vmem:[%s10229_s1 + $0x130] sm:$0xff]  ;;  %v68_v46 = vld [vmem:[%s10229_s1 + $0x138] sm:$0xff]  ;;  %v6467_v47 = vcombine.low %v55_v36, %v59_v37 }
  0x74   :  { %v6476_v49 = vcombine.high %v63_v44, %v67_v45 }
  0x76   :  { %1687 = vmatpush1.bf16.msra.mxu0 %v6663_v52  ;;  %1769 = vmatpush1.bf16.msra.mxu1 %v6665_v54  ;;  %v75_v52 = vld [vmem:[%s10229_s1 + $0x170] sm:$0xff]  ;;  %v72_v54 = vld [vmem:[%s10229_s1 + $0x158] sm:$0xff] }
  0x77   :  { %1688 = vmatprep.subr.bf16.mxu0 %v6672_v55  ;;  %1770 = vmatprep.subr.bf16.mxu1 %v6674_v56  ;;  %v76_v55 = vld [vmem:[%s10229_s1 + $0x178] sm:$0xff]  ;;  %v6475_v56 = vcombine.low %v63_v44, %v67_v45  ;;  %v6484_v59 = vcombine.high %v71_v51, %v75_v52 }
  0x78   :  { %v6486_v60 = vcombine.high %v72_v54, %v76_v55  ;;  %v6485_v2 = vcombine.low %v72_v54, %v76_v55  ;;  %v135_v55 = vld [vmem:[%s10229_s1 + $0x350] sm:$0xff] }
  0x7a   :  { %1689 = vmatpush1.bf16.msra.mxu0 %v6671_v62  ;;  %1771 = vmatpush1.bf16.msra.mxu1 %v6673_v63  ;;  %v83_v62 = vld [vmem:[%s10229_s1 + $0x1b0] sm:$0xff]  ;;  %v80_v63 = vld [vmem:[%s10229_s1 + $0x198] sm:$0xff] }
  0x7b   :  { %1690 = vmatprep.subr.bf16.mxu0 %v6680_v0  ;;  %1772 = vmatprep.subr.bf16.mxu1 %v6682_v1  ;;  %v84_v0 = vld [vmem:[%s10229_s1 + $0x1b8] sm:$0xff]  ;;  %v6483_v1 = vcombine.low %v71_v51, %v75_v52  ;;  %v6492_v3 = vcombine.high %v79_v61, %v83_v62 }
  0x7c   :  { %v6494_v4 = vcombine.high %v80_v63, %v84_v0  ;;  %v6493_v10 = vcombine.low %v80_v63, %v84_v0  ;;  %v143_v0 = vld [vmem:[%s10229_s1 + $0x390] sm:$0xff] }
  0x7e   :  { %1691 = vmatpush1.bf16.msra.mxu0 %v6679_v6  ;;  %1773 = vmatpush1.bf16.msra.mxu1 %v6681_v7  ;;  %v91_v6 = vld [vmem:[%s10229_s1 + $0x1f0] sm:$0xff]  ;;  %v88_v7 = vld [vmem:[%s10229_s1 + $0x1d8] sm:$0xff] }
  0x7f   :  { %1692 = vmatprep.subr.bf16.mxu0 %v6688_v8  ;;  %1774 = vmatprep.subr.bf16.mxu1 %v6690_v9  ;;  %v92_v8 = vld [vmem:[%s10229_s1 + $0x1f8] sm:$0xff]  ;;  %v6491_v9 = vcombine.low %v79_v61, %v83_v62  ;;  %v6500_v11 = vcombine.high %v87_v5, %v91_v6 }
  0x80   :  { %v6502_v13 = vcombine.high %v88_v7, %v92_v8  ;;  %v6501_v19 = vcombine.low %v88_v7, %v92_v8  ;;  %v151_v8 = vld [vmem:[%s10229_s1 + $0x3d0] sm:$0xff] }
  0x82   :  { %1693 = vmatpush1.bf16.msra.mxu0 %v6687_v16  ;;  %1775 = vmatpush1.bf16.msra.mxu1 %v6689_v17  ;;  %v99_v16 = vld [vmem:[%s10229_s1 + $0x230] sm:$0xff]  ;;  %v96_v17 = vld [vmem:[%s10229_s1 + $0x218] sm:$0xff] }
  0x83   :  { %1785 = vmatprep.subr.bf16.mxu0 %v6444_v53  ;;  %1867 = vmatprep.subr.bf16.mxu1 %v6446_v18  ;;  %v100_v53 = vld [vmem:[%s10229_s1 + $0x238] sm:$0xff]  ;;  %v6499_v18 = vcombine.low %v87_v5, %v91_v6  ;;  %v6508_v20 = vcombine.high %v95_v14, %v99_v16 }
  0x84   :  { %v6510_v23 = vcombine.high %v96_v17, %v100_v53  ;;  %v6509_v15 = vcombine.low %v96_v17, %v100_v53  ;;  %v159_v53 = vld [vmem:[%s10229_s1 + $0x410] sm:$0xff] }
  0x85   :  { %1695 = vmatmul.mubr.bf16.vlgmr.msra.gmra.mrb[0].mxu0 %v7981_v22  ;;  %1777 = vmatmul.mubr.bf16.vlgmr.msra.gmra.mrb[0].mxu1 %v7981_v22 }
  0x86   :  { %1786 = vmatpush1.bf16.msra.mxu0 %v6443_v25  ;;  %1868 = vmatpush1.bf16.msra.mxu1 %v6445_v26  ;;  %v107_v25 = vld [vmem:[%s10229_s1 + $0x270] sm:$0xff]  ;;  %v104_v26 = vld [vmem:[%s10229_s1 + $0x258] sm:$0xff] }
  0x87   :  { %1787 = vmatprep.subr.bf16.mxu0 %v6452_v27  ;;  %1869 = vmatprep.subr.bf16.mxu1 %v6454_v28  ;;  %v108_v27 = vld [vmem:[%s10229_s1 + $0x278] sm:$0xff]  ;;  %v6507_v28 = vcombine.low %v95_v14, %v99_v16  ;;  %v6516_v29 = vcombine.high %v103_v24, %v107_v25 }
  0x88   :  { %1817 = vmatprep.mubr.bf16.mxu0 %v7646_v57  ;;  %1899 = vmatprep.mubr.bf16.mxu1 %v7646_v57  ;;  %v64_v57 = vld [vmem:[%s10229_s1 + $0x118] sm:$0xff]  ;;  %v6518_v30 = vcombine.high %v104_v26, %v108_v27  ;;  %v6517_v36 = vcombine.low %v104_v26, %v108_v27  ;;  %v167_v27 = vld [vmem:[%s10229_s1 + $0x450] sm:$0xff] }
  0x89   :  { %v6478_v50 = vcombine.high %v64_v57, %v68_v46  ;;  %v6477_v58 = vcombine.low %v64_v57, %v68_v46  ;;  %v127_v46 = vld [vmem:[%s10229_s1 + $0x310] sm:$0xff] }
  0x8a   :  { %1788 = vmatpush1.bf16.msra.mxu0 %v6451_v32  ;;  %1870 = vmatpush1.bf16.msra.mxu1 %v6453_v33  ;;  %v115_v32 = vld [vmem:[%s10229_s1 + $0x2b0] sm:$0xff]  ;;  %v112_v33 = vld [vmem:[%s10229_s1 + $0x298] sm:$0xff] }
  0x8b   :  { %1789 = vmatprep.subr.bf16.mxu0 %v6460_v34  ;;  %1871 = vmatprep.subr.bf16.mxu1 %v6462_v35  ;;  %v116_v34 = vld [vmem:[%s10229_s1 + $0x2b8] sm:$0xff]  ;;  %v6515_v35 = vcombine.low %v103_v24, %v107_v25  ;;  %v6524_v37 = vcombine.high %v111_v31, %v115_v32 }
  0x8c   :  { %v6526_v38 = vcombine.high %v112_v33, %v116_v34  ;;  %v6525_v44 = vcombine.low %v112_v33, %v116_v34  ;;  %v175_v34 = vld [vmem:[%s10229_s1 + $0x490] sm:$0xff] }
  0x8e   :  { %1790 = vmatpush1.bf16.msra.mxu0 %v6459_v40  ;;  %1872 = vmatpush1.bf16.msra.mxu1 %v6461_v41  ;;  %v123_v40 = vld [vmem:[%s10229_s1 + $0x2f0] sm:$0xff]  ;;  %v120_v41 = vld [vmem:[%s10229_s1 + $0x2d8] sm:$0xff] }
  0x8f   :  { %1791 = vmatprep.subr.bf16.mxu0 %v6468_v42  ;;  %1873 = vmatprep.subr.bf16.mxu1 %v6470_v43  ;;  %v124_v42 = vld [vmem:[%s10229_s1 + $0x2f8] sm:$0xff]  ;;  %v6523_v43 = vcombine.low %v111_v31, %v115_v32  ;;  %v6532_v45 = vcombine.high %v119_v39, %v123_v40 }
  0x90   :  { %v6534_v57 = vcombine.high %v120_v41, %v124_v42  ;;  %v6533_v51 = vcombine.low %v120_v41, %v124_v42  ;;  %v183_v42 = vld [vmem:[%s10229_s1 + $0x4d0] sm:$0xff] }
  0x92   :  { %1792 = vmatpush1.bf16.msra.mxu0 %v6467_v47  ;;  %1874 = vmatpush1.bf16.msra.mxu1 %v6469_v48  ;;  %v131_v47 = vld [vmem:[%s10229_s1 + $0x330] sm:$0xff]  ;;  %v128_v48 = vld [vmem:[%s10229_s1 + $0x318] sm:$0xff] }
  0x93   :  { %1793 = vmatprep.subr.bf16.mxu0 %v6476_v49  ;;  %1875 = vmatprep.subr.bf16.mxu1 %v6478_v50  ;;  %v132_v49 = vld [vmem:[%s10229_s1 + $0x338] sm:$0xff]  ;;  %v6531_v50 = vcombine.low %v119_v39, %v123_v40  ;;  %v6540_v52 = vcombine.high %v127_v46, %v131_v47 }
  0x94   :  { %v6542_v54 = vcombine.high %v128_v48, %v132_v49  ;;  %v6541_v61 = vcombine.low %v128_v48, %v132_v49  ;;  %v191_v48 = vld [vmem:[%s10229_s1 + $0x510] sm:$0xff] }
  0x95   :  { %v195_v49 = vld [vmem:[%s10229_s1 + $0x530] sm:$0xff] }
  0x96   :  { %1794 = vmatpush1.bf16.msra.mxu0 %v6475_v56  ;;  %1876 = vmatpush1.bf16.msra.mxu1 %v6477_v58  ;;  %v139_v56 = vld [vmem:[%s10229_s1 + $0x370] sm:$0xff]  ;;  %v136_v58 = vld [vmem:[%s10229_s1 + $0x358] sm:$0xff] }
  0x97   :  { %1795 = vmatprep.subr.bf16.mxu0 %v6484_v59  ;;  %1877 = vmatprep.subr.bf16.mxu1 %v6486_v60  ;;  %v140_v59 = vld [vmem:[%s10229_s1 + $0x378] sm:$0xff]  ;;  %v6539_v60 = vcombine.low %v127_v46, %v131_v47  ;;  %v6548_v62 = vcombine.high %v135_v55, %v139_v56 }
  0x98   :  { %v6550_v63 = vcombine.high %v136_v58, %v140_v59  ;;  %v6549_v5 = vcombine.low %v136_v58, %v140_v59  ;;  %v203_v58 = vld [vmem:[%s10229_s1 + $0x570] sm:$0xff]  ;;  %v200_v59 = vld [vmem:[%s10229_s1 + $0x558] sm:$0xff] }
  0x9a   :  { %1796 = vmatpush1.bf16.msra.mxu0 %v6483_v1  ;;  %1878 = vmatpush1.bf16.msra.mxu1 %v6485_v2  ;;  %v147_v1 = vld [vmem:[%s10229_s1 + $0x3b0] sm:$0xff]  ;;  %v144_v2 = vld [vmem:[%s10229_s1 + $0x398] sm:$0xff] }
  0x9b   :  { %1797 = vmatprep.subr.bf16.mxu0 %v6492_v3  ;;  %1879 = vmatprep.subr.bf16.mxu1 %v6494_v4  ;;  %v148_v3 = vld [vmem:[%s10229_s1 + $0x3b8] sm:$0xff]  ;;  %v6547_v4 = vcombine.low %v135_v55, %v139_v56  ;;  %v6556_v6 = vcombine.high %v143_v0, %v147_v1  ;;  %v199_v56 = vld [vmem:[%s10229_s1 + $0x550] sm:$0xff] }
  0x9c   :  { %v6558_v7 = vcombine.high %v144_v2, %v148_v3  ;;  %v6557_v14 = vcombine.low %v144_v2, %v148_v3  ;;  %v211_v2 = vld [vmem:[%s10229_s1 + $0x5b0] sm:$0xff]  ;;  %v208_v3 = vld [vmem:[%s10229_s1 + $0x598] sm:$0xff] }
  0x9e   :  { %1798 = vmatpush1.bf16.msra.mxu0 %v6491_v9  ;;  %1880 = vmatpush1.bf16.msra.mxu1 %v6493_v10  ;;  %v155_v9 = vld [vmem:[%s10229_s1 + $0x3f0] sm:$0xff]  ;;  %v152_v10 = vld [vmem:[%s10229_s1 + $0x3d8] sm:$0xff] }
  0x9f   :  { %1799 = vmatprep.subr.bf16.mxu0 %v6500_v11  ;;  %1881 = vmatprep.subr.bf16.mxu1 %v6502_v13  ;;  %v156_v11 = vld [vmem:[%s10229_s1 + $0x3f8] sm:$0xff]  ;;  %v6555_v13 = vcombine.low %v143_v0, %v147_v1  ;;  %v6564_v16 = vcombine.high %v151_v8, %v155_v9  ;;  %v207_v1 = vld [vmem:[%s10229_s1 + $0x590] sm:$0xff] }
  0xa0   :  { %v6566_v17 = vcombine.high %v152_v10, %v156_v11  ;;  %v6565_v24 = vcombine.low %v152_v10, %v156_v11  ;;  %v219_v10 = vld [vmem:[%s10229_s1 + $0x5f0] sm:$0xff]  ;;  %v216_v11 = vld [vmem:[%s10229_s1 + $0x5d8] sm:$0xff] }
  0xa2   :  { %1800 = vmatpush1.bf16.msra.mxu0 %v6499_v18  ;;  %1882 = vmatpush1.bf16.msra.mxu1 %v6501_v19  ;;  %v163_v18 = vld [vmem:[%s10229_s1 + $0x430] sm:$0xff]  ;;  %v160_v19 = vld [vmem:[%s10229_s1 + $0x418] sm:$0xff] }
  0xa3   :  { %1801 = vmatprep.subr.bf16.mxu0 %v6508_v20  ;;  %1883 = vmatprep.subr.bf16.mxu1 %v6510_v23  ;;  %v164_v20 = vld [vmem:[%s10229_s1 + $0x438] sm:$0xff]  ;;  %v6563_v23 = vcombine.low %v151_v8, %v155_v9  ;;  %v6572_v25 = vcombine.high %v159_v53, %v163_v18  ;;  %v215_v9 = vld [vmem:[%s10229_s1 + $0x5d0] sm:$0xff] }
  0xa4   :  { %v6574_v26 = vcombine.high %v160_v19, %v164_v20  ;;  %v6573_v31 = vcombine.low %v160_v19, %v164_v20  ;;  %v227_v19 = vld [vmem:[%s10229_s1 + $0x630] sm:$0xff]  ;;  %v224_v20 = vld [vmem:[%s10229_s1 + $0x618] sm:$0xff] }
  0xa6   :  { %1802 = vmatpush1.bf16.msra.mxu0 %v6507_v28  ;;  %1884 = vmatpush1.bf16.msra.mxu1 %v6509_v15  ;;  %v171_v28 = vld [vmem:[%s10229_s1 + $0x470] sm:$0xff]  ;;  %v168_v15 = vld [vmem:[%s10229_s1 + $0x458] sm:$0xff] }
  0xa7   :  { %1803 = vmatprep.subr.bf16.mxu0 %v6516_v29  ;;  %1885 = vmatprep.subr.bf16.mxu1 %v6518_v30  ;;  %v172_v29 = vld [vmem:[%s10229_s1 + $0x478] sm:$0xff]  ;;  %v6571_v30 = vcombine.low %v159_v53, %v163_v18  ;;  %v6580_v32 = vcombine.high %v167_v27, %v171_v28  ;;  %v223_v18 = vld [vmem:[%s10229_s1 + $0x610] sm:$0xff] }
  0xa8   :  { %v6582_v33 = vcombine.high %v168_v15, %v172_v29  ;;  %v6581_v39 = vcombine.low %v168_v15, %v172_v29  ;;  %v235_v15 = vld [vmem:[%s10229_s1 + $0x670] sm:$0xff]  ;;  %v232_v29 = vld [vmem:[%s10229_s1 + $0x658] sm:$0xff] }
  0xaa   :  { %1804 = vmatpush1.bf16.msra.mxu0 %v6515_v35  ;;  %1886 = vmatpush1.bf16.msra.mxu1 %v6517_v36  ;;  %v179_v35 = vld [vmem:[%s10229_s1 + $0x4b0] sm:$0xff]  ;;  %v176_v36 = vld [vmem:[%s10229_s1 + $0x498] sm:$0xff] }
  0xab   :  { %1805 = vmatprep.subr.bf16.mxu0 %v6524_v37  ;;  %1887 = vmatprep.subr.bf16.mxu1 %v6526_v38  ;;  %v180_v37 = vld [vmem:[%s10229_s1 + $0x4b8] sm:$0xff]  ;;  %v6579_v38 = vcombine.low %v167_v27, %v171_v28  ;;  %v6588_v40 = vcombine.high %v175_v34, %v179_v35  ;;  %v231_v28 = vld [vmem:[%s10229_s1 + $0x650] sm:$0xff] }
  0xac   :  { %v6590_v41 = vcombine.high %v176_v36, %v180_v37 }
  0xae   :  { %1806 = vmatpush1.bf16.msra.mxu0 %v6523_v43  ;;  %1888 = vmatpush1.bf16.msra.mxu1 %v6525_v44  ;;  %v187_v43 = vld [vmem:[%s10229_s1 + $0x4f0] sm:$0xff]  ;;  %v188_v44 = vld [vmem:[%s10229_s1 + $0x4f8] sm:$0xff] }
  0xaf   :  { %1807 = vmatprep.subr.bf16.mxu0 %v6532_v45  ;;  %1889 = vmatprep.subr.bf16.mxu1 %v6534_v57  ;;  %v6587_v45 = vcombine.low %v175_v34, %v179_v35  ;;  %v6589_v57 = vcombine.low %v176_v36, %v180_v37  ;;  %v6596_v46 = vcombine.high %v183_v42, %v187_v43  ;;  %v239_v35 = vld [vmem:[%s10229_s1 + $0x690] sm:$0xff]  ;;  %v240_v37 = vld [vmem:[%s10229_s1 + $0x698] sm:$0xff] }
  0xb0   :  { %v243_v36 = vld [vmem:[%s10229_s1 + $0x6b0] sm:$0xff] }
  0xb2   :  { %1808 = vmatpush1.bf16.msra.mxu0 %v6531_v50  ;;  %1890 = vmatpush1.bf16.msra.mxu1 %v6533_v51  ;;  %v196_v50 = vld [vmem:[%s10229_s1 + $0x538] sm:$0xff]  ;;  %v6595_v51 = vcombine.low %v183_v42, %v187_v43  ;;  %v247_v43 = vld [vmem:[%s10229_s1 + $0x6d0] sm:$0xff] }
  0xb3   :  { %1809 = vmatprep.subr.bf16.mxu0 %v6540_v52  ;;  %1891 = vmatprep.subr.bf16.mxu1 %v6542_v54  ;;  %v6604_v54 = vcombine.high %v191_v48, %v195_v49 }
  0xb6   :  { %1810 = vmatpush1.bf16.msra.mxu0 %v6539_v60  ;;  %1892 = vmatpush1.bf16.msra.mxu1 %v6541_v61  ;;  %v204_v60 = vld [vmem:[%s10229_s1 + $0x578] sm:$0xff]  ;;  %v6603_v61 = vcombine.low %v191_v48, %v195_v49  ;;  %v255_v49 = vld [vmem:[%s10229_s1 + $0x710] sm:$0xff] }
  0xb7   :  { %1811 = vmatprep.subr.bf16.mxu0 %v6548_v62  ;;  %1893 = vmatprep.subr.bf16.mxu1 %v6550_v63  ;;  %v6612_v63 = vcombine.high %v199_v56, %v203_v58  ;;  %v6614_v0 = vcombine.high %v200_v59, %v204_v60 }
  0xba   :  { %1812 = vmatpush1.bf16.msra.mxu0 %v6547_v4  ;;  %1894 = vmatpush1.bf16.msra.mxu1 %v6549_v5  ;;  %v212_v4 = vld [vmem:[%s10229_s1 + $0x5b8] sm:$0xff]  ;;  %v6611_v5 = vcombine.low %v199_v56, %v203_v58  ;;  %v263_v58 = vld [vmem:[%s10229_s1 + $0x750] sm:$0xff] }
  0xbb   :  { %1813 = vmatprep.subr.bf16.mxu0 %v6556_v6  ;;  %1895 = vmatprep.subr.bf16.mxu1 %v6558_v7  ;;  %v6613_v6 = vcombine.low %v200_v59, %v204_v60  ;;  %v6620_v7 = vcombine.high %v207_v1, %v211_v2  ;;  %v6622_v8 = vcombine.high %v208_v3, %v212_v4  ;;  %v267_v59 = vld [vmem:[%s10229_s1 + $0x770] sm:$0xff]  ;;  %v264_v60 = vld [vmem:[%s10229_s1 + $0x758] sm:$0xff] }
  0xbe   :  { %1814 = vmatpush1.bf16.msra.mxu0 %v6555_v13  ;;  %1896 = vmatpush1.bf16.msra.mxu1 %v6557_v14  ;;  %v220_v13 = vld [vmem:[%s10229_s1 + $0x5f8] sm:$0xff]  ;;  %v6619_v14 = vcombine.low %v207_v1, %v211_v2  ;;  %v271_v2 = vld [vmem:[%s10229_s1 + $0x790] sm:$0xff] }
  0xbf   :  { %1815 = vmatprep.subr.bf16.mxu0 %v6564_v16  ;;  %1897 = vmatprep.subr.bf16.mxu1 %v6566_v17  ;;  %v6621_v16 = vcombine.low %v208_v3, %v212_v4  ;;  %v6628_v17 = vcombine.high %v215_v9, %v219_v10  ;;  %v6630_v53 = vcombine.high %v216_v11, %v220_v13  ;;  %v275_v3 = vld [vmem:[%s10229_s1 + $0x7b0] sm:$0xff]  ;;  %v272_v4 = vld [vmem:[%s10229_s1 + $0x798] sm:$0xff] }
  0xc2   :  { %1816 = vmatpush1.bf16.msra.mxu0 %v6563_v23  ;;  %1898 = vmatpush1.bf16.msra.mxu1 %v6565_v24  ;;  %v228_v23 = vld [vmem:[%s10229_s1 + $0x638] sm:$0xff]  ;;  %v6627_v24 = vcombine.low %v215_v9, %v219_v10  ;;  %v279_v10 = vld [vmem:[%s10229_s1 + $0x7d0] sm:$0xff] }
  0xc3   :  { %1826 = vmatprep.subr.bf16.mxu0 %v6572_v25  ;;  %1908 = vmatprep.subr.bf16.mxu1 %v6574_v26  ;;  %v6629_v25 = vcombine.low %v216_v11, %v220_v13  ;;  %v6636_v26 = vcombine.high %v223_v18, %v227_v19  ;;  %v6638_v27 = vcombine.high %v224_v20, %v228_v23  ;;  %v283_v11 = vld [vmem:[%s10229_s1 + $0x7f0] sm:$0xff]  ;;  %v280_v13 = vld [vmem:[%s10229_s1 + $0x7d8] sm:$0xff] }
  0xc5   :  { %1818 = vmatmul.mubr.bf16.vlgmr.msra.gmra.mrb[4].mxu0 %v7772_v12  ;;  %1900 = vmatmul.mubr.bf16.vlgmr.msra.gmra.mrb[4].mxu1 %v7772_v12  ;;  %v184_v12 = vld [vmem:[%s10229_s1 + $0x4d8] sm:$0xff] }
  0xc6   :  { %1827 = vmatpush1.bf16.msra.mxu0 %v6571_v30  ;;  %1909 = vmatpush1.bf16.msra.mxu1 %v6573_v31  ;;  %v6598_v47 = vcombine.high %v184_v12, %v188_v44  ;;  %v6597_v52 = vcombine.low %v184_v12, %v188_v44  ;;  %v236_v30 = vld [vmem:[%s10229_s1 + $0x678] sm:$0xff]  ;;  %v6635_v31 = vcombine.low %v223_v18, %v227_v19  ;;  %v251_v12 = vld [vmem:[%s10229_s1 + $0x6f0] sm:$0xff]  ;;  %v1965_v19 = vld [vmem:[%s10231_s3] sm:$0xff] }
  0xc7   :  { %1828 = vmatprep.subr.bf16.mxu0 %v6580_v32  ;;  %1910 = vmatprep.subr.bf16.mxu1 %v6582_v33  ;;  %v6637_v32 = vcombine.low %v224_v20, %v228_v23  ;;  %v6644_v33 = vcombine.high %v231_v28, %v235_v15  ;;  %v6646_v34 = vcombine.high %v232_v29, %v236_v30  ;;  %v248_v44 = vld [vmem:[%s10229_s1 + $0x6d8] sm:$0xff]  ;;  %v1969_v20 = vld [vmem:[%s10231_s3 + $0x20] sm:$0xff]  ;;  %v1966_v23 = vld [vmem:[%s10231_s3 + $0x8] sm:$0xff] }
  0xc8   :  { %1858 = vmatprep.mubr.bf16.mxu0 %v7793_v21  ;;  %1940 = vmatprep.mubr.bf16.mxu1 %v7793_v21  ;;  %v192_v21 = vld [vmem:[%s10229_s1 + $0x518] sm:$0xff] }
  0xc9   :  { %v6606_v55 = vcombine.high %v192_v21, %v196_v50  ;;  %v6605_v62 = vcombine.low %v192_v21, %v196_v50  ;;  %v259_v21 = vld [vmem:[%s10229_s1 + $0x730] sm:$0xff]  ;;  %v256_v50 = vld [vmem:[%s10229_s1 + $0x718] sm:$0xff] }
  0xca   :  { %1829 = vmatpush1.bf16.msra.mxu0 %v6579_v38  ;;  %1911 = vmatpush1.bf16.msra.mxu1 %v6581_v39  ;;  %v244_v38 = vld [vmem:[%s10229_s1 + $0x6b8] sm:$0xff]  ;;  %v6643_v39 = vcombine.low %v231_v28, %v235_v15  ;;  %v1973_v15 = vld [vmem:[%s10231_s3 + $0x40] sm:$0xff] }
  0xcb   :  { %1830 = vmatprep.subr.bf16.mxu0 %v6588_v40  ;;  %1912 = vmatprep.subr.bf16.mxu1 %v6590_v41  ;;  %v6645_v40 = vcombine.low %v232_v29, %v236_v30  ;;  %v6652_v41 = vcombine.high %v239_v35, %v243_v36  ;;  %v6654_v42 = vcombine.high %v240_v37, %v244_v38  ;;  %v1977_v29 = vld [vmem:[%s10231_s3 + $0x60] sm:$0xff]  ;;  %v1974_v30 = vld [vmem:[%s10231_s3 + $0x48] sm:$0xff] }
  0xce   :  { %1831 = vmatpush1.bf16.msra.mxu0 %v6587_v45  ;;  %1913 = vmatpush1.bf16.msra.mxu1 %v6589_v57  ;;  %v252_v45 = vld [vmem:[%s10229_s1 + $0x6f8] sm:$0xff]  ;;  %v6651_v57 = vcombine.low %v239_v35, %v243_v36  ;;  %v1981_v36 = vld [vmem:[%s10231_s3 + $0x80] sm:$0xff] }
  0xcf   :  { %1832 = vmatprep.subr.bf16.mxu0 %v6596_v46  ;;  %1914 = vmatprep.subr.bf16.mxu1 %v6598_v47  ;;  %v6653_v46 = vcombine.low %v240_v37, %v244_v38  ;;  %v6660_v47 = vcombine.high %v247_v43, %v251_v12  ;;  %v6662_v48 = vcombine.high %v248_v44, %v252_v45  ;;  %v1985_v37 = vld [vmem:[%s10231_s3 + $0xa0] sm:$0xff]  ;;  %v1982_v38 = vld [vmem:[%s10231_s3 + $0x88] sm:$0xff] }
  0xd2   :  { %1833 = vmatpush1.bf16.msra.mxu0 %v6595_v51  ;;  %1915 = vmatpush1.bf16.msra.mxu1 %v6597_v52  ;;  %v260_v51 = vld [vmem:[%s10229_s1 + $0x738] sm:$0xff]  ;;  %v6659_v52 = vcombine.low %v247_v43, %v251_v12  ;;  %v1989_v12 = vld [vmem:[%s10231_s3 + $0xc0] sm:$0xff] }
  0xd3   :  { %1834 = vmatprep.subr.bf16.mxu0 %v6604_v54  ;;  %1916 = vmatprep.subr.bf16.mxu1 %v6606_v55  ;;  %v6661_v54 = vcombine.low %v248_v44, %v252_v45  ;;  %v6668_v55 = vcombine.high %v255_v49, %v259_v21  ;;  %v6670_v56 = vcombine.high %v256_v50, %v260_v51  ;;  %v1993_v44 = vld [vmem:[%s10231_s3 + $0xe0] sm:$0xff]  ;;  %v1994_v45 = vld [vmem:[%s10231_s3 + $0xe8] sm:$0xff] }
  0xd6   :  { %1835 = vmatpush1.bf16.msra.mxu0 %v6603_v61  ;;  %1917 = vmatpush1.bf16.msra.mxu1 %v6605_v62  ;;  %v268_v61 = vld [vmem:[%s10229_s1 + $0x778] sm:$0xff]  ;;  %v6667_v62 = vcombine.low %v255_v49, %v259_v21  ;;  %v1997_v49 = vld [vmem:[%s10231_s3 + $0x100] sm:$0xff] }
  0xd7   :  { %1836 = vmatprep.subr.bf16.mxu0 %v6612_v63  ;;  %1918 = vmatprep.subr.bf16.mxu1 %v6614_v0  ;;  %v6669_v63 = vcombine.low %v256_v50, %v260_v51  ;;  %v6676_v0 = vcombine.high %v263_v58, %v267_v59  ;;  %v6678_v1 = vcombine.high %v264_v60, %v268_v61  ;;  %v2001_v21 = vld [vmem:[%s10231_s3 + $0x120] sm:$0xff]  ;;  %v1998_v50 = vld [vmem:[%s10231_s3 + $0x108] sm:$0xff] }
  0xd8   :  { %v2002_v51 = vld [vmem:[%s10231_s3 + $0x128] sm:$0xff] }
  0xda   :  { %1837 = vmatpush1.bf16.msra.mxu0 %v6611_v5  ;;  %1919 = vmatpush1.bf16.msra.mxu1 %v6613_v6  ;;  %v276_v5 = vld [vmem:[%s10229_s1 + $0x7b8] sm:$0xff]  ;;  %v6675_v6 = vcombine.low %v263_v58, %v267_v59  ;;  %v2005_v58 = vld [vmem:[%s10231_s3 + $0x140] sm:$0xff] }
  0xdb   :  { %1838 = vmatprep.subr.bf16.mxu0 %v6620_v7  ;;  %1920 = vmatprep.subr.bf16.mxu1 %v6622_v8  ;;  %v6677_v7 = vcombine.low %v264_v60, %v268_v61  ;;  %v6684_v8 = vcombine.high %v271_v2, %v275_v3  ;;  %v6686_v9 = vcombine.high %v272_v4, %v276_v5  ;;  %v2009_v59 = vld [vmem:[%s10231_s3 + $0x160] sm:$0xff]  ;;  %v2006_v60 = vld [vmem:[%s10231_s3 + $0x148] sm:$0xff] }
  0xdc   :  { %v2010_v61 = vld [vmem:[%s10231_s3 + $0x168] sm:$0xff] }
  0xde   :  { %1839 = vmatpush1.bf16.msra.mxu0 %v6619_v14  ;;  %1921 = vmatpush1.bf16.msra.mxu1 %v6621_v16  ;;  %v284_v14 = vld [vmem:[%s10229_s1 + $0x7f8] sm:$0xff]  ;;  %v6683_v16 = vcombine.low %v271_v2, %v275_v3  ;;  %v2013_v2 = vld [vmem:[%s10231_s3 + $0x180] sm:$0xff] }
  0xdf   :  { %1840 = vmatprep.subr.bf16.mxu0 %v6628_v17  ;;  %1922 = vmatprep.subr.bf16.mxu1 %v6630_v53  ;;  %v6685_v17 = vcombine.low %v272_v4, %v276_v5  ;;  %v6692_v53 = vcombine.high %v279_v10, %v283_v11  ;;  %v6694_v18 = vcombine.high %v280_v13, %v284_v14  ;;  %v2017_v3 = vld [vmem:[%s10231_s3 + $0x1a0] sm:$0xff]  ;;  %v2014_v4 = vld [vmem:[%s10231_s3 + $0x188] sm:$0xff] }
  0xe0   :  { %v2018_v5 = vld [vmem:[%s10231_s3 + $0x1a8] sm:$0xff] }
  0xe2   :  { %1841 = vmatpush1.bf16.msra.mxu0 %v6627_v24  ;;  %1923 = vmatpush1.bf16.msra.mxu1 %v6629_v25  ;;  %v1970_v24 = vld [vmem:[%s10231_s3 + $0x28] sm:$0xff]  ;;  %v6691_v25 = vcombine.low %v279_v10, %v283_v11  ;;  %v2021_v10 = vld [vmem:[%s10231_s3 + $0x1c0] sm:$0xff] }
  0xe3   :  { %1842 = vmatprep.subr.bf16.mxu0 %v6636_v26  ;;  %1924 = vmatprep.subr.bf16.mxu1 %v6638_v27  ;;  %v6693_v26 = vcombine.low %v280_v13, %v284_v14  ;;  %v6696_v27 = vcombine.high %v1965_v19, %v1969_v20  ;;  %v6698_v28 = vcombine.high %v1966_v23, %v1970_v24  ;;  %v2025_v11 = vld [vmem:[%s10231_s3 + $0x1e0] sm:$0xff]  ;;  %v2022_v13 = vld [vmem:[%s10231_s3 + $0x1c8] sm:$0xff] }
  0xe4   :  { %v2026_v14 = vld [vmem:[%s10231_s3 + $0x1e8] sm:$0xff] }
  0xe6   :  { %1843 = vmatpush1.bf16.msra.mxu0 %v6635_v31  ;;  %1925 = vmatpush1.bf16.msra.mxu1 %v6637_v32  ;;  %v1978_v31 = vld [vmem:[%s10231_s3 + $0x68] sm:$0xff]  ;;  %v6695_v32 = vcombine.low %v1965_v19, %v1969_v20  ;;  %v2029_v19 = vld [vmem:[%s10231_s3 + $0x200] sm:$0xff] }
  0xe7   :  { %1844 = vmatprep.subr.bf16.mxu0 %v6644_v33  ;;  %1926 = vmatprep.subr.bf16.mxu1 %v6646_v34  ;;  %v6697_v33 = vcombine.low %v1966_v23, %v1970_v24  ;;  %v6704_v34 = vcombine.high %v1973_v15, %v1977_v29  ;;  %v6706_v35 = vcombine.high %v1974_v30, %v1978_v31  ;;  %v2033_v20 = vld [vmem:[%s10231_s3 + $0x220] sm:$0xff]  ;;  %v2030_v23 = vld [vmem:[%s10231_s3 + $0x208] sm:$0xff] }
  0xe8   :  { %v2034_v24 = vld [vmem:[%s10231_s3 + $0x228] sm:$0xff] }
  0xea   :  { %1845 = vmatpush1.bf16.msra.mxu0 %v6643_v39  ;;  %1927 = vmatpush1.bf16.msra.mxu1 %v6645_v40  ;;  %v1986_v39 = vld [vmem:[%s10231_s3 + $0xa8] sm:$0xff]  ;;  %v6703_v40 = vcombine.low %v1973_v15, %v1977_v29  ;;  %v2037_v15 = vld [vmem:[%s10231_s3 + $0x240] sm:$0xff] }
  0xeb   :  { %1846 = vmatprep.subr.bf16.mxu0 %v6652_v41  ;;  %1928 = vmatprep.subr.bf16.mxu1 %v6654_v42  ;;  %v6705_v41 = vcombine.low %v1974_v30, %v1978_v31  ;;  %v6712_v42 = vcombine.high %v1981_v36, %v1985_v37  ;;  %v6714_v43 = vcombine.high %v1982_v38, %v1986_v39  ;;  %v2041_v29 = vld [vmem:[%s10231_s3 + $0x260] sm:$0xff]  ;;  %v2038_v30 = vld [vmem:[%s10231_s3 + $0x248] sm:$0xff] }
  0xec   :  { %v2042_v31 = vld [vmem:[%s10231_s3 + $0x268] sm:$0xff] }
  0xee   :  { %1847 = vmatpush1.bf16.msra.mxu0 %v6651_v57  ;;  %1929 = vmatpush1.bf16.msra.mxu1 %v6653_v46  ;;  %v6711_v57 = vcombine.low %v1981_v36, %v1985_v37  ;;  %v6713_v46 = vcombine.low %v1982_v38, %v1986_v39  ;;  %v2045_v36 = vld [vmem:[%s10231_s3 + $0x280] sm:$0xff]  ;;  %v2046_v38 = vld [vmem:[%s10231_s3 + $0x288] sm:$0xff] }
  0xef   :  { %1848 = vmatprep.subr.bf16.mxu0 %v6660_v47  ;;  %1930 = vmatprep.subr.bf16.mxu1 %v6662_v48  ;;  %v6720_v47 = vcombine.high %v1989_v12, %v1993_v44  ;;  %v2049_v37 = vld [vmem:[%s10231_s3 + $0x2a0] sm:$0xff]  ;;  %v2050_v39 = vld [vmem:[%s10231_s3 + $0x2a8] sm:$0xff] }
  0xf2   :  { %1849 = vmatpush1.bf16.msra.mxu0 %v6659_v52  ;;  %1931 = vmatpush1.bf16.msra.mxu1 %v6661_v54  ;;  %v6719_v52 = vcombine.low %v1989_v12, %v1993_v44  ;;  %v2053_v12 = vld [vmem:[%s10231_s3 + $0x2c0] sm:$0xff] }
  0xf3   :  { %1850 = vmatprep.subr.bf16.mxu0 %v6668_v55  ;;  %1932 = vmatprep.subr.bf16.mxu1 %v6670_v56  ;;  %v6728_v55 = vcombine.high %v1997_v49, %v2001_v21  ;;  %v6730_v56 = vcombine.high %v1998_v50, %v2002_v51  ;;  %v2057_v44 = vld [vmem:[%s10231_s3 + $0x2e0] sm:$0xff] }
  0xf6   :  { %1851 = vmatpush1.bf16.msra.mxu0 %v6667_v62  ;;  %1933 = vmatpush1.bf16.msra.mxu1 %v6669_v63  ;;  %v6727_v62 = vcombine.low %v1997_v49, %v2001_v21  ;;  %v6729_v63 = vcombine.low %v1998_v50, %v2002_v51  ;;  %v2061_v49 = vld [vmem:[%s10231_s3 + $0x300] sm:$0xff]  ;;  %v2062_v50 = vld [vmem:[%s10231_s3 + $0x308] sm:$0xff] }
  0xf7   :  { %1852 = vmatprep.subr.bf16.mxu0 %v6676_v0  ;;  %1934 = vmatprep.subr.bf16.mxu1 %v6678_v1  ;;  %v6736_v0 = vcombine.high %v2005_v58, %v2009_v59  ;;  %v6738_v1 = vcombine.high %v2006_v60, %v2010_v61  ;;  %v2065_v21 = vld [vmem:[%s10231_s3 + $0x320] sm:$0xff]  ;;  %v2066_v51 = vld [vmem:[%s10231_s3 + $0x328] sm:$0xff] }
  0xfa   :  { %1853 = vmatpush1.bf16.msra.mxu0 %v6675_v6  ;;  %1935 = vmatpush1.bf16.msra.mxu1 %v6677_v7  ;;  %v6735_v6 = vcombine.low %v2005_v58, %v2009_v59  ;;  %v6737_v7 = vcombine.low %v2006_v60, %v2010_v61  ;;  %v2069_v58 = vld [vmem:[%s10231_s3 + $0x340] sm:$0xff]  ;;  %v2070_v60 = vld [vmem:[%s10231_s3 + $0x348] sm:$0xff] }
  0xfb   :  { %1854 = vmatprep.subr.bf16.mxu0 %v6684_v8  ;;  %1936 = vmatprep.subr.bf16.mxu1 %v6686_v9  ;;  %v6744_v8 = vcombine.high %v2013_v2, %v2017_v3  ;;  %v6746_v9 = vcombine.high %v2014_v4, %v2018_v5  ;;  %v2073_v59 = vld [vmem:[%s10231_s3 + $0x360] sm:$0xff]  ;;  %v2074_v61 = vld [vmem:[%s10231_s3 + $0x368] sm:$0xff] }
  0xfe   :  { %1855 = vmatpush1.bf16.msra.mxu0 %v6683_v16  ;;  %1937 = vmatpush1.bf16.msra.mxu1 %v6685_v17  ;;  %v6743_v16 = vcombine.low %v2013_v2, %v2017_v3  ;;  %v6745_v17 = vcombine.low %v2014_v4, %v2018_v5  ;;  %v2077_v2 = vld [vmem:[%s10231_s3 + $0x380] sm:$0xff]  ;;  %v2078_v4 = vld [vmem:[%s10231_s3 + $0x388] sm:$0xff] }
  0xff   :  { %1856 = vmatprep.subr.bf16.mxu0 %v6692_v53  ;;  %1938 = vmatprep.subr.bf16.mxu1 %v6694_v18  ;;  %v6752_v53 = vcombine.high %v2021_v10, %v2025_v11  ;;  %v6754_v18 = vcombine.high %v2022_v13, %v2026_v14  ;;  %v2081_v3 = vld [vmem:[%s10231_s3 + $0x3a0] sm:$0xff]  ;;  %v2082_v5 = vld [vmem:[%s10231_s3 + $0x3a8] sm:$0xff] }
 0x102   :  { %1857 = vmatpush1.bf16.msra.mxu0 %v6691_v25  ;;  %1939 = vmatpush1.bf16.msra.mxu1 %v6693_v26  ;;  %v6751_v25 = vcombine.low %v2021_v10, %v2025_v11  ;;  %v6753_v26 = vcombine.low %v2022_v13, %v2026_v14  ;;  %v2085_v10 = vld [vmem:[%s10231_s3 + $0x3c0] sm:$0xff]  ;;  %v2086_v13 = vld [vmem:[%s10231_s3 + $0x3c8] sm:$0xff] }
 0x103   :  { %5079 = vmatprep.subr.bf16.mxu0 %v6696_v27  ;;  %5243 = vmatprep.subr.bf16.mxu1 %v6698_v28  ;;  %v6760_v27 = vcombine.high %v2029_v19, %v2033_v20  ;;  %v6762_v28 = vcombine.high %v2030_v23, %v2034_v24  ;;  %v2089_v11 = vld [vmem:[%s10231_s3 + $0x3e0] sm:$0xff]  ;;  %v2090_v14 = vld [vmem:[%s10231_s3 + $0x3e8] sm:$0xff] }
 0x105   :  { %1859 = vmatmul.mubr.bf16.vlgmr.msra.gmra.mrb[4].mxu0 %v7981_v22  ;;  %1941 = vmatmul.mubr.bf16.vlgmr.msra.gmra.mrb[4].mxu1 %v7981_v22  ;;  %v1990_v22 = vld [vmem:[%s10231_s3 + $0xc8] sm:$0xff] }
 0x106   :  { %5080 = vmatpush1.bf16.msra.mxu0 %v6695_v32  ;;  %5244 = vmatpush1.bf16.msra.mxu1 %v6697_v33  ;;  %v6722_v48 = vcombine.high %v1990_v22, %v1994_v45  ;;  %v6721_v54 = vcombine.low %v1990_v22, %v1994_v45  ;;  %v6759_v32 = vcombine.low %v2029_v19, %v2033_v20  ;;  %v2054_v22 = vld [vmem:[%s10231_s3 + $0x2c8] sm:$0xff]  ;;  %v2093_v19 = vld [vmem:[%s10231_s3 + $0x400] sm:$0xff] }
 0x107   :  { %5081 = vmatprep.subr.bf16.mxu0 %v6704_v34  ;;  %5245 = vmatprep.subr.bf16.mxu1 %v6706_v35  ;;  %v6761_v33 = vcombine.low %v2030_v23, %v2034_v24  ;;  %v6768_v34 = vcombine.high %v2037_v15, %v2041_v29  ;;  %v6770_v35 = vcombine.high %v2038_v30, %v2042_v31  ;;  %v2058_v45 = vld [vmem:[%s10231_s3 + $0x2e8] sm:$0xff]  ;;  %v2097_v20 = vld [vmem:[%s10231_s3 + $0x420] sm:$0xff] }
 0x108   :  { %v2094_v23 = vld [vmem:[%s10231_s3 + $0x408] sm:$0xff] }
 0x109   :  { %v2098_v24 = vld [vmem:[%s10231_s3 + $0x428] sm:$0xff] }
 0x10a   :  { %5082 = vmatpush1.bf16.msra.mxu0 %v6703_v40  ;;  %5246 = vmatpush1.bf16.msra.mxu1 %v6705_v41  ;;  %v6767_v40 = vcombine.low %v2037_v15, %v2041_v29  ;;  %v6769_v41 = vcombine.low %v2038_v30, %v2042_v31  ;;  %v287_v15 = vlaneseq  ;;  %v8569_v31 = vld [vmem:[%s10232_s2] sm:$0xff] }
 0x10b   :  { %5083 = vmatprep.subr.bf16.mxu0 %v6712_v42  ;;  %5247 = vmatprep.subr.bf16.mxu1 %v6714_v43  ;;  %v6776_v42 = vcombine.high %v2045_v36, %v2049_v37  ;;  %v6778_v43 = vcombine.high %v2046_v38, %v2050_v39 }
 0x10c   :  { %v8563_v29 = vshrl.u32 %v287_v15, 7 }
 0x10e   :  { %5084 = vmatpush1.bf16.msra.mxu0 %v6711_v57  ;;  %5248 = vmatpush1.bf16.msra.mxu1 %v6713_v46  ;;  %v6775_v57 = vcombine.low %v2045_v36, %v2049_v37  ;;  %v6777_v46 = vcombine.low %v2046_v38, %v2050_v39  ;;  %v289_v30 = vsub.s32 0, %v8563_v29 }
 0x10f   :  { %5085 = vmatprep.subr.bf16.mxu0 %v6720_v47  ;;  %5249 = vmatprep.subr.bf16.mxu1 %v6722_v48  ;;  %v6784_v47 = vcombine.high %v2053_v12, %v2057_v44  ;;  %v6786_v48 = vcombine.high %v2054_v22, %v2058_v45 }
 0x112   :  { %5086 = vmatpush1.bf16.msra.mxu0 %v6719_v52  ;;  %5250 = vmatpush1.bf16.msra.mxu1 %v6721_v54  ;;  %v6783_v52 = vcombine.low %v2053_v12, %v2057_v44  ;;  %v6785_v54 = vcombine.low %v2054_v22, %v2058_v45 }
 0x113   :  { %5087 = vmatprep.subr.bf16.mxu0 %v6728_v55  ;;  %5251 = vmatprep.subr.bf16.mxu1 %v6730_v56  ;;  %v6792_v55 = vcombine.high %v2061_v49, %v2065_v21  ;;  %v6794_v56 = vcombine.high %v2062_v50, %v2066_v51 }
 0x116   :  { %5088 = vmatpush1.bf16.msra.mxu0 %v6727_v62  ;;  %5252 = vmatpush1.bf16.msra.mxu1 %v6729_v63  ;;  %v6791_v62 = vcombine.low %v2061_v49, %v2065_v21  ;;  %v6793_v63 = vcombine.low %v2062_v50, %v2066_v51  ;;  %v2105_v49 = vld [vmem:[%s10231_s3 + $0x460] sm:$0xff]  ;;  %v2102_v21 = vld [vmem:[%s10231_s3 + $0x448] sm:$0xff] }
 0x117   :  { %5089 = vmatprep.subr.bf16.mxu0 %v6736_v0  ;;  %5253 = vmatprep.subr.bf16.mxu1 %v6738_v1  ;;  %v6800_v0 = vcombine.high %v2069_v58, %v2073_v59  ;;  %v6802_v1 = vcombine.high %v2070_v60, %v2074_v61  ;;  %v2106_v50 = vld [vmem:[%s10231_s3 + $0x468] sm:$0xff] }
 0x11a   :  { %5090 = vmatpush1.bf16.msra.mxu0 %v6735_v6  ;;  %5254 = vmatpush1.bf16.msra.mxu1 %v6737_v7  ;;  %v6799_v6 = vcombine.low %v2069_v58, %v2073_v59  ;;  %v6801_v7 = vcombine.low %v2070_v60, %v2074_v61  ;;  %v6834_v59 = vcombine.high %v2102_v21, %v2106_v50  ;;  %v2113_v60 = vld [vmem:[%s10231_s3 + $0x4a0] sm:$0xff]  ;;  %v2110_v61 = vld [vmem:[%s10231_s3 + $0x488] sm:$0xff] }
 0x11b   :  { %5091 = vmatprep.subr.bf16.mxu0 %v6744_v8  ;;  %5255 = vmatprep.subr.bf16.mxu1 %v6746_v9  ;;  %v6808_v8 = vcombine.high %v2077_v2, %v2081_v3  ;;  %v6810_v9 = vcombine.high %v2078_v4, %v2082_v5 }
 0x11e   :  { %5092 = vmatpush1.bf16.msra.mxu0 %v6743_v16  ;;  %5256 = vmatpush1.bf16.msra.mxu1 %v6745_v17  ;;  %v6807_v16 = vcombine.low %v2077_v2, %v2081_v3  ;;  %v6809_v17 = vcombine.low %v2078_v4, %v2082_v5  ;;  %v2117_v4 = vld [vmem:[%s10231_s3 + $0x4c0] sm:$0xff] }
 0x11f   :  { %5093 = vmatprep.subr.bf16.mxu0 %v6752_v53  ;;  %5257 = vmatprep.subr.bf16.mxu1 %v6754_v18  ;;  %v6816_v53 = vcombine.high %v2085_v10, %v2089_v11  ;;  %v6818_v18 = vcombine.high %v2086_v13, %v2090_v14  ;;  %v2121_v5 = vld [vmem:[%s10231_s3 + $0x4e0] sm:$0xff] }
 0x122   :  { %5094 = vmatpush1.bf16.msra.mxu0 %v6751_v25  ;;  %5258 = vmatpush1.bf16.msra.mxu1 %v6753_v26  ;;  %v6815_v25 = vcombine.low %v2085_v10, %v2089_v11  ;;  %v6817_v26 = vcombine.low %v2086_v13, %v2090_v14  ;;  %v6848_v10 = vcombine.high %v2117_v4, %v2121_v5  ;;  %v2125_v13 = vld [vmem:[%s10231_s3 + $0x500] sm:$0xff] }
 0x123   :  { %5095 = vmatprep.subr.bf16.mxu0 %v6760_v27  ;;  %5259 = vmatprep.subr.bf16.mxu1 %v6762_v28  ;;  %v6824_v27 = vcombine.high %v2093_v19, %v2097_v20  ;;  %v6826_v28 = vcombine.high %v2094_v23, %v2098_v24  ;;  %v2129_v14 = vld [vmem:[%s10231_s3 + $0x520] sm:$0xff] }
 0x126   :  { %5096 = vmatpush1.bf16.msra.mxu0 %v6759_v32  ;;  %5260 = vmatpush1.bf16.msra.mxu1 %v6761_v33  ;;  %v293_v32 = vsub.s32 1, %v8563_v29  ;;  %v301_v33 = vsub.s32 3, %v8563_v29 }
 0x127   :  { %5097 = vmatprep.subr.bf16.mxu0 %v6768_v34  ;;  %5261 = vmatprep.subr.bf16.mxu1 %v6770_v35  ;;  %v290_v34 = vrot.slane %v8569_v31, %v289_v30 }
 0x128   :  { %v294_v35 = vrot.slane %v8569_v31, %v293_v32  ;;  %v302_v36 = vrot.slane %v8569_v31, %v301_v33 }
 0x12a   :  { %5098 = vmatpush1.bf16.msra.mxu0 %v6767_v40  ;;  %5262 = vmatpush1.bf16.msra.mxu1 %v6769_v41 }
 0x12b   :  { %5099 = vmatprep.subr.bf16.mxu0 %v6776_v42  ;;  %5263 = vmatprep.subr.bf16.mxu1 %v6778_v43 }
 0x12e   :  { %5100 = vmatpush1.bf16.msra.mxu0 %v6775_v57  ;;  %5264 = vmatpush1.bf16.msra.mxu1 %v6777_v46 }
 0x12f   :  { %5101 = vmatprep.subr.bf16.mxu0 %v6784_v47  ;;  %5265 = vmatprep.subr.bf16.mxu1 %v6786_v48  ;;  %v2101_v47 = vld [vmem:[%s10231_s3 + $0x440] sm:$0xff] }
 0x130   :  { %v6832_v58 = vcombine.high %v2101_v47, %v2105_v49 }
 0x132   :  { %5102 = vmatpush1.bf16.msra.mxu0 %v6783_v52  ;;  %5266 = vmatpush1.bf16.msra.mxu1 %v6785_v54  ;;  %v6823_v52 = vcombine.low %v2093_v19, %v2097_v20  ;;  %v6825_v54 = vcombine.low %v2094_v23, %v2098_v24  ;;  %v6856_v19 = vcombine.high %v2125_v13, %v2129_v14  ;;  %v2133_v23 = vld [vmem:[%s10231_s3 + $0x540] sm:$0xff] }
 0x133   :  { %5103 = vmatprep.subr.bf16.mxu0 %v6792_v55  ;;  %5267 = vmatprep.subr.bf16.mxu1 %v6794_v56  ;;  %v2109_v56 = vld [vmem:[%s10231_s3 + $0x480] sm:$0xff] }
 0x134   :  { %v6840_v2 = vcombine.high %v2109_v56, %v2113_v60  ;;  %v2137_v24 = vld [vmem:[%s10231_s3 + $0x560] sm:$0xff] }
 0x135   :  { %v6864_v15 = vcombine.high %v2133_v23, %v2137_v24 }
 0x136   :  { %5104 = vmatpush1.bf16.msra.mxu0 %v6791_v62  ;;  %5268 = vmatpush1.bf16.msra.mxu1 %v6793_v63  ;;  %v2114_v62 = vld [vmem:[%s10231_s3 + $0x4a8] sm:$0xff] }
 0x137   :  { %5105 = vmatprep.subr.bf16.mxu0 %v6800_v0  ;;  %5269 = vmatprep.subr.bf16.mxu1 %v6802_v1  ;;  %v6831_v0 = vcombine.low %v2101_v47, %v2105_v49  ;;  %v6833_v1 = vcombine.low %v2102_v21, %v2106_v50  ;;  %v6842_v3 = vcombine.high %v2110_v61, %v2114_v62  ;;  %v2157_v49 = vld [vmem:[%s10231_s3 + $0x600] sm:$0xff]  ;;  %v2158_v50 = vld [vmem:[%s10231_s3 + $0x608] sm:$0xff] }
 0x138   :  { %v2161_v21 = vld [vmem:[%s10231_s3 + $0x620] sm:$0xff] }
 0x13a   :  { %5106 = vmatpush1.bf16.msra.mxu0 %v6799_v6  ;;  %5270 = vmatpush1.bf16.msra.mxu1 %v6801_v7  ;;  %v2118_v6 = vld [vmem:[%s10231_s3 + $0x4c8] sm:$0xff] }
 0x13b   :  { %5107 = vmatprep.subr.bf16.mxu0 %v6808_v8  ;;  %5271 = vmatprep.subr.bf16.mxu1 %v6810_v9  ;;  %v2122_v7 = vld [vmem:[%s10231_s3 + $0x4e8] sm:$0xff]  ;;  %v6839_v8 = vcombine.low %v2109_v56, %v2113_v60  ;;  %v6841_v9 = vcombine.low %v2110_v61, %v2114_v62  ;;  %v2165_v60 = vld [vmem:[%s10231_s3 + $0x640] sm:$0xff] }
 0x13c   :  { %v6850_v11 = vcombine.high %v2118_v6, %v2122_v7  ;;  %v2169_v61 = vld [vmem:[%s10231_s3 + $0x660] sm:$0xff]  ;;  %v2166_v62 = vld [vmem:[%s10231_s3 + $0x648] sm:$0xff] }
 0x13e   :  { %5108 = vmatpush1.bf16.msra.mxu0 %v6807_v16  ;;  %5272 = vmatpush1.bf16.msra.mxu1 %v6809_v17  ;;  %v2126_v16 = vld [vmem:[%s10231_s3 + $0x508] sm:$0xff] }
 0x13f   :  { %5109 = vmatprep.subr.bf16.mxu0 %v6816_v53  ;;  %5273 = vmatprep.subr.bf16.mxu1 %v6818_v18  ;;  %v2130_v17 = vld [vmem:[%s10231_s3 + $0x528] sm:$0xff]  ;;  %v6847_v53 = vcombine.low %v2117_v4, %v2121_v5  ;;  %v6849_v18 = vcombine.low %v2118_v6, %v2122_v7  ;;  %v2173_v5 = vld [vmem:[%s10231_s3 + $0x680] sm:$0xff] }
 0x140   :  { %v6858_v20 = vcombine.high %v2126_v16, %v2130_v17  ;;  %v2177_v6 = vld [vmem:[%s10231_s3 + $0x6a0] sm:$0xff]  ;;  %v2174_v7 = vld [vmem:[%s10231_s3 + $0x688] sm:$0xff] }
 0x142   :  { %5110 = vmatpush1.bf16.msra.mxu0 %v6815_v25  ;;  %5274 = vmatpush1.bf16.msra.mxu1 %v6817_v26  ;;  %v2134_v25 = vld [vmem:[%s10231_s3 + $0x548] sm:$0xff] }
 0x143   :  { %5120 = vmatprep.subr.bf16.mxu0 %v6824_v27  ;;  %5284 = vmatprep.subr.bf16.mxu1 %v6826_v28  ;;  %v2138_v26 = vld [vmem:[%s10231_s3 + $0x568] sm:$0xff]  ;;  %v6855_v27 = vcombine.low %v2125_v13, %v2129_v14  ;;  %v6857_v28 = vcombine.low %v2126_v16, %v2130_v17  ;;  %v2181_v14 = vld [vmem:[%s10231_s3 + $0x6c0] sm:$0xff] }
 0x144   :  { %v2185_v16 = vld [vmem:[%s10231_s3 + $0x6e0] sm:$0xff]  ;;  %v2182_v17 = vld [vmem:[%s10231_s3 + $0x6c8] sm:$0xff] }
 0x158   :  { %v1696_v37 = vpop.f32.mrb[0].mxu0  ;;  %v8582_v39 = vpop.f32.mrb[0].mxu1 }
 0x159   :  { %v7360_v38 = vadd.f32 %v1696_v37, %v290_v34  ;;  %v1698_v40 = vpop.f32.mrb[1].mxu0  ;;  %v1780_v42 = vpop.f32.mrb[1].mxu1  ;;  %v6866_v34 = vcombine.high %v2134_v25, %v2138_v26  ;;  %v2142_v37 = vld [vmem:[%s10231_s3 + $0x588] sm:$0xff] }
 0x15a   :  { %v7361_v41 = vadd.f32 %v1698_v40, %v294_v35  ;;  %v1700_v43 = vpop.f32.mrb[2].mxu0  ;;  %v7363_v44 = vadd.f32 %v1780_v42, %v302_v36  ;;  %v1782_v22 = vpop.f32.mrb[2].mxu1  ;;  %v2141_v35 = vld [vmem:[%s10231_s3 + $0x580] sm:$0xff]  ;;  %v6863_v40 = vcombine.low %v2133_v23, %v2137_v24 }
 0x15b   :  { %v1949_v12 = vmax.f32 %v7360_v38, 0.0  ;;  %v1701_v45 = vpop.f32.mrb[3].mxu0  ;;  %v1783_v46 = vpop.f32.mrb[3].mxu1  ;;  %v2145_v36 = vld [vmem:[%s10231_s3 + $0x5a0] sm:$0xff]  ;;  %v2146_v38 = vld [vmem:[%s10231_s3 + $0x5a8] sm:$0xff] }
 0x15c   :  { %v1950_v57 = vmax.f32 %v7361_v41, 0.0  ;;  %v1952_v48 = vmax.f32 %v7363_v44, 0.0  ;;  %v6865_v41 = vcombine.low %v2134_v25, %v2138_v26  ;;  %v6872_v42 = vcombine.high %v2141_v35, %v2145_v36  ;;  %v2153_v44 = vld [vmem:[%s10231_s3 + $0x5e0] sm:$0xff]  ;;  %v2150_v22 = vld [vmem:[%s10231_s3 + $0x5c8] sm:$0xff] }
 0x15d   :  { %v8598_v55 = vpack.c.bf16 %v1949_v12, %v1949_v12  ;;  %v6874_v43 = vcombine.high %v2142_v37, %v2146_v38  ;;  %v2149_v12 = vld [vmem:[%s10231_s3 + $0x5c0] sm:$0xff]  ;;  %v2154_v45 = vld [vmem:[%s10231_s3 + $0x5e8] sm:$0xff]  ;;  %v6873_v46 = vcombine.low %v2142_v37, %v2146_v38 }
 0x15e   :  { %v8596_v51 = vpack.c.bf16 %v1950_v57, %v1950_v57  ;;  %v8614_v63 = vpack.c.bf16 %v1952_v48, %v1952_v48  ;;  %v6871_v57 = vcombine.low %v2141_v35, %v2145_v36  ;;  %v6880_v47 = vcombine.high %v2149_v12, %v2153_v44  ;;  %v2189_v24 = vld [vmem:[%s10231_s3 + $0x700] sm:$0xff]  ;;  %v2190_v26 = vld [vmem:[%s10231_s3 + $0x708] sm:$0xff] }
 0x15f   :  { %v6882_v48 = vcombine.high %v2150_v22, %v2154_v45  ;;  %v6881_v56 = vcombine.low %v2150_v22, %v2154_v45  ;;  %v2193_v25 = vld [vmem:[%s10231_s3 + $0x720] sm:$0xff]  ;;  %v2198_v38 = vld [vmem:[%s10231_s3 + $0x748] sm:$0xff] }
 0x160   :  { %5111 = vmatprep.mubr.bf16.mxu0 %v8596_v51  ;;  %5275 = vmatprep.mubr.bf16.mxu1 %v8596_v51  ;;  %v2197_v36 = vld [vmem:[%s10231_s3 + $0x740] sm:$0xff] }
 0x161   :  { %5112 = vmatmul.mubr.bf16.vlgmr.msra.gmra.mrb[8].mxu0 %v8598_v55  ;;  %5276 = vmatmul.mubr.bf16.vlgmr.msra.gmra.mrb[8].mxu1 %v8598_v55  ;;  %v2201_v37 = vld [vmem:[%s10231_s3 + $0x760] sm:$0xff] }
 0x162   :  { %5121 = vmatpush1.bf16.msra.mxu0 %v6823_v52  ;;  %5285 = vmatpush1.bf16.msra.mxu1 %v6825_v54  ;;  %v2162_v52 = vld [vmem:[%s10231_s3 + $0x628] sm:$0xff]  ;;  %v6879_v54 = vcombine.low %v2149_v12, %v2153_v44  ;;  %v6928_v12 = vcombine.high %v2197_v36, %v2201_v37  ;;  %v2205_v22 = vld [vmem:[%s10231_s3 + $0x780] sm:$0xff] }
 0x163   :  { %5152 = vmatprep.mubr.bf16.mxu0 %v8614_v63  ;;  %5316 = vmatprep.mubr.bf16.mxu1 %v8614_v63  ;;  %v2209_v45 = vld [vmem:[%s10231_s3 + $0x7a0] sm:$0xff] }
 0x164   :  { %5122 = vmatprep.subr.bf16.mxu0 %v6832_v58  ;;  %5286 = vmatprep.subr.bf16.mxu1 %v6834_v59  ;;  %v6888_v58 = vcombine.high %v2157_v49, %v2161_v21  ;;  %v6890_v59 = vcombine.high %v2158_v50, %v2162_v52 }
 0x166   :  { %5123 = vmatpush1.bf16.msra.mxu0 %v6831_v0  ;;  %5287 = vmatpush1.bf16.msra.mxu1 %v6833_v1  ;;  %v2170_v0 = vld [vmem:[%s10231_s3 + $0x668] sm:$0xff]  ;;  %v6887_v1 = vcombine.low %v2157_v49, %v2161_v21  ;;  %v6936_v21 = vcombine.high %v2205_v22, %v2209_v45 }
 0x167   :  { %5124 = vmatprep.subr.bf16.mxu0 %v6840_v2  ;;  %5288 = vmatprep.subr.bf16.mxu1 %v6842_v3  ;;  %v6889_v2 = vcombine.low %v2158_v50, %v2162_v52  ;;  %v6896_v3 = vcombine.high %v2165_v60, %v2169_v61  ;;  %v6898_v4 = vcombine.high %v2166_v62, %v2170_v0  ;;  %v2213_v52 = vld [vmem:[%s10231_s3 + $0x7c0] sm:$0xff] }
 0x16a   :  { %5125 = vmatpush1.bf16.msra.mxu0 %v6839_v8  ;;  %5289 = vmatpush1.bf16.msra.mxu1 %v6841_v9  ;;  %v2178_v8 = vld [vmem:[%s10231_s3 + $0x6a8] sm:$0xff]  ;;  %v6895_v9 = vcombine.low %v2165_v60, %v2169_v61 }
 0x16b   :  { %5126 = vmatprep.subr.bf16.mxu0 %v6848_v10  ;;  %5290 = vmatprep.subr.bf16.mxu1 %v6850_v11  ;;  %v6897_v10 = vcombine.low %v2166_v62, %v2170_v0  ;;  %v6904_v11 = vcombine.high %v2173_v5, %v2177_v6  ;;  %v6906_v13 = vcombine.high %v2174_v7, %v2178_v8 }
 0x16e   :  { %5127 = vmatpush1.bf16.msra.mxu0 %v6847_v53  ;;  %5291 = vmatpush1.bf16.msra.mxu1 %v6849_v18  ;;  %v2186_v53 = vld [vmem:[%s10231_s3 + $0x6e8] sm:$0xff]  ;;  %v6903_v18 = vcombine.low %v2173_v5, %v2177_v6 }
 0x16f   :  { %5128 = vmatprep.subr.bf16.mxu0 %v6856_v19  ;;  %5292 = vmatprep.subr.bf16.mxu1 %v6858_v20  ;;  %v6905_v19 = vcombine.low %v2174_v7, %v2178_v8  ;;  %v6912_v20 = vcombine.high %v2181_v14, %v2185_v16  ;;  %v6914_v23 = vcombine.high %v2182_v17, %v2186_v53 }
 0x172   :  { %5129 = vmatpush1.bf16.msra.mxu0 %v6855_v27  ;;  %5293 = vmatpush1.bf16.msra.mxu1 %v6857_v28  ;;  %v2194_v27 = vld [vmem:[%s10231_s3 + $0x728] sm:$0xff]  ;;  %v6911_v28 = vcombine.low %v2181_v14, %v2185_v16 }
 0x173   :  { %5130 = vmatprep.subr.bf16.mxu0 %v6864_v15  ;;  %5294 = vmatprep.subr.bf16.mxu1 %v6866_v34  ;;  %v6913_v15 = vcombine.low %v2182_v17, %v2186_v53  ;;  %v6920_v34 = vcombine.high %v2189_v24, %v2193_v25  ;;  %v6922_v35 = vcombine.high %v2190_v26, %v2194_v27 }
 0x176   :  { %5131 = vmatpush1.bf16.msra.mxu0 %v6863_v40  ;;  %5295 = vmatpush1.bf16.msra.mxu1 %v6865_v41  ;;  %v2202_v40 = vld [vmem:[%s10231_s3 + $0x768] sm:$0xff]  ;;  %v6919_v41 = vcombine.low %v2189_v24, %v2193_v25 }
 0x177   :  { %5132 = vmatprep.subr.bf16.mxu0 %v6872_v42  ;;  %5296 = vmatprep.subr.bf16.mxu1 %v6874_v43  ;;  %v6921_v42 = vcombine.low %v2190_v26, %v2194_v27  ;;  %v297_v43 = vsub.s32 2, %v8563_v29  ;;  %v6930_v44 = vcombine.high %v2198_v38, %v2202_v40  ;;  %v2242_v24 = vld [vmem:[%s10231_s3 + $0x8a8] sm:$0xff] }
 0x179   :  { %v298_v49 = vrot.slane %v8569_v31, %v297_v43 }
 0x17a   :  { %5133 = vmatpush1.bf16.msra.mxu0 %v6871_v57  ;;  %5297 = vmatpush1.bf16.msra.mxu1 %v6873_v46  ;;  %v2206_v57 = vld [vmem:[%s10231_s3 + $0x788] sm:$0xff] }
 0x17b   :  { %5134 = vmatprep.subr.bf16.mxu0 %v6880_v47  ;;  %5298 = vmatprep.subr.bf16.mxu1 %v6882_v48  ;;  %v2210_v46 = vld [vmem:[%s10231_s3 + $0x7a8] sm:$0xff]  ;;  %v6927_v47 = vcombine.low %v2197_v36, %v2201_v37  ;;  %v6929_v48 = vcombine.low %v2198_v38, %v2202_v40  ;;  %v7362_v61 = vadd.f32 %v8582_v39, %v298_v49  ;;  %v2265_v49 = vld [vmem:[%s10231_s3 + $0x960] sm:$0xff] }
 0x17c   :  { %v6938_v50 = vcombine.high %v2206_v57, %v2210_v46  ;;  %v6937_v60 = vcombine.low %v2206_v57, %v2210_v46  ;;  %v2226_v39 = vld [vmem:[%s10231_s3 + $0x828] sm:$0xff] }
 0x17d   :  { %v1951_v6 = vmax.f32 %v7362_v61, 0.0  ;;  %v2250_v36 = vld [vmem:[%s10231_s3 + $0x8e8] sm:$0xff] }
 0x17e   :  { %5135 = vmatpush1.bf16.msra.mxu0 %v6879_v54  ;;  %5299 = vmatpush1.bf16.msra.mxu1 %v6881_v56  ;;  %v2217_v54 = vld [vmem:[%s10231_s3 + $0x7e0] sm:$0xff]  ;;  %v2214_v56 = vld [vmem:[%s10231_s3 + $0x7c8] sm:$0xff] }
 0x17f   :  { %5136 = vmatprep.subr.bf16.mxu0 %v6888_v58  ;;  %5300 = vmatprep.subr.bf16.mxu1 %v6890_v59  ;;  %v2218_v58 = vld [vmem:[%s10231_s3 + $0x7e8] sm:$0xff]  ;;  %v6935_v59 = vcombine.low %v2205_v22, %v2209_v45  ;;  %v6944_v62 = vcombine.high %v2213_v52, %v2217_v54  ;;  %v8805_v17 = vpack.c.bf16 %v1951_v6, %v1951_v6 }
 0x180   :  { %v6946_v0 = vcombine.high %v2214_v56, %v2218_v58  ;;  %v6945_v5 = vcombine.low %v2214_v56, %v2218_v58  ;;  %v2258_v22 = vld [vmem:[%s10231_s3 + $0x928] sm:$0xff] }
 0x181   :  { %v2270_v61 = vld [vmem:[%s10231_s3 + $0x988] sm:$0xff] }
 0x182   :  { %5137 = vmatpush1.bf16.msra.mxu0 %v6887_v1  ;;  %5301 = vmatpush1.bf16.msra.mxu1 %v6889_v2  ;;  %v2221_v1 = vld [vmem:[%s10231_s3 + $0x800] sm:$0xff]  ;;  %v2282_v6 = vld [vmem:[%s10231_s3 + $0x9e8] sm:$0xff] }
 0x183   :  { %5138 = vmatprep.subr.bf16.mxu0 %v6896_v3  ;;  %5302 = vmatprep.subr.bf16.mxu1 %v6898_v4  ;;  %v2225_v2 = vld [vmem:[%s10231_s3 + $0x820] sm:$0xff]  ;;  %v2222_v3 = vld [vmem:[%s10231_s3 + $0x808] sm:$0xff]  ;;  %v6943_v4 = vcombine.low %v2213_v52, %v2217_v54 }
 0x184   :  { %v6952_v7 = vcombine.high %v2221_v1, %v2225_v2  ;;  %v6954_v8 = vcombine.high %v2222_v3, %v2226_v39  ;;  %v6951_v14 = vcombine.low %v2221_v1, %v2225_v2  ;;  %v6953_v16 = vcombine.low %v2222_v3, %v2226_v39  ;;  %v2277_v39 = vld [vmem:[%s10231_s3 + $0x9c0] sm:$0xff] }
 0x186   :  { %5139 = vmatpush1.bf16.msra.mxu0 %v6895_v9  ;;  %5303 = vmatpush1.bf16.msra.mxu1 %v6897_v10  ;;  %v2229_v9 = vld [vmem:[%s10231_s3 + $0x840] sm:$0xff] }
 0x187   :  { %5140 = vmatprep.subr.bf16.mxu0 %v6904_v11  ;;  %5304 = vmatprep.subr.bf16.mxu1 %v6906_v13  ;;  %v2233_v10 = vld [vmem:[%s10231_s3 + $0x860] sm:$0xff]  ;;  %v2230_v11 = vld [vmem:[%s10231_s3 + $0x848] sm:$0xff] }
 0x188   :  { %v2234_v13 = vld [vmem:[%s10231_s3 + $0x868] sm:$0xff]  ;;  %v6960_v53 = vcombine.high %v2229_v9, %v2233_v10  ;;  %v6959_v25 = vcombine.low %v2229_v9, %v2233_v10 }
 0x189   :  { %v6961_v26 = vcombine.low %v2230_v11, %v2234_v13 }
 0x18a   :  { %5141 = vmatpush1.bf16.msra.mxu0 %v6903_v18  ;;  %5305 = vmatpush1.bf16.msra.mxu1 %v6905_v19  ;;  %v6962_v18 = vcombine.high %v2230_v11, %v2234_v13  ;;  %v2237_v19 = vld [vmem:[%s10231_s3 + $0x880] sm:$0xff] }
 0x18b   :  { %5142 = vmatprep.subr.bf16.mxu0 %v6912_v20  ;;  %5306 = vmatprep.subr.bf16.mxu1 %v6914_v23  ;;  %v2241_v20 = vld [vmem:[%s10231_s3 + $0x8a0] sm:$0xff]  ;;  %v2238_v23 = vld [vmem:[%s10231_s3 + $0x888] sm:$0xff] }
 0x18c   :  { %v6968_v27 = vcombine.high %v2237_v19, %v2241_v20  ;;  %v6967_v37 = vcombine.low %v2237_v19, %v2241_v20  ;;  %v6969_v38 = vcombine.low %v2238_v23, %v2242_v24  ;;  %v2285_v11 = vld [vmem:[%s10231_s3 + $0xa00] sm:$0xff] }
 0x18d   :  { %v2289_v13 = vld [vmem:[%s10231_s3 + $0xa20] sm:$0xff] }
 0x18e   :  { %5143 = vmatpush1.bf16.msra.mxu0 %v6911_v28  ;;  %5307 = vmatpush1.bf16.msra.mxu1 %v6913_v15  ;;  %v6970_v28 = vcombine.high %v2238_v23, %v2242_v24  ;;  %v2245_v15 = vld [vmem:[%s10231_s3 + $0x8c0] sm:$0xff]  ;;  %v7016_v19 = vcombine.high %v2285_v11, %v2289_v13 }
 0x18f   :  { %5144 = vmatprep.subr.bf16.mxu0 %v6920_v34  ;;  %5308 = vmatprep.subr.bf16.mxu1 %v6922_v35  ;;  %v2249_v34 = vld [vmem:[%s10231_s3 + $0x8e0] sm:$0xff]  ;;  %v2246_v35 = vld [vmem:[%s10231_s3 + $0x8c8] sm:$0xff] }
 0x190   :  { %v6976_v40 = vcombine.high %v2245_v15, %v2249_v34  ;;  %v6975_v45 = vcombine.low %v2245_v15, %v2249_v34  ;;  %v6977_v57 = vcombine.low %v2246_v35, %v2250_v36  ;;  %v2293_v23 = vld [vmem:[%s10231_s3 + $0xa40] sm:$0xff] }
 0x191   :  { %v2297_v24 = vld [vmem:[%s10231_s3 + $0xa60] sm:$0xff] }
 0x192   :  { %5145 = vmatpush1.bf16.msra.mxu0 %v6919_v41  ;;  %5309 = vmatpush1.bf16.msra.mxu1 %v6921_v42  ;;  %v6978_v41 = vcombine.high %v2246_v35, %v2250_v36  ;;  %v2253_v42 = vld [vmem:[%s10231_s3 + $0x900] sm:$0xff]  ;;  %v7024_v15 = vcombine.high %v2293_v23, %v2297_v24 }
 0x193   :  { %5146 = vmatprep.subr.bf16.mxu0 %v6928_v12  ;;  %5310 = vmatprep.subr.bf16.mxu1 %v6930_v44  ;;  %v2257_v12 = vld [vmem:[%s10231_s3 + $0x920] sm:$0xff]  ;;  %v2254_v44 = vld [vmem:[%s10231_s3 + $0x908] sm:$0xff] }
 0x194   :  { %v6984_v46 = vcombine.high %v2253_v42, %v2257_v12  ;;  %v6983_v52 = vcombine.low %v2253_v42, %v2257_v12  ;;  %v6985_v54 = vcombine.low %v2254_v44, %v2258_v22  ;;  %v2301_v35 = vld [vmem:[%s10231_s3 + $0xa80] sm:$0xff] }
 0x195   :  { %v2305_v36 = vld [vmem:[%s10231_s3 + $0xaa0] sm:$0xff] }
 0x196   :  { %5147 = vmatpush1.bf16.msra.mxu0 %v6927_v47  ;;  %5311 = vmatpush1.bf16.msra.mxu1 %v6929_v48  ;;  %v6986_v47 = vcombine.high %v2254_v44, %v2258_v22  ;;  %v2261_v48 = vld [vmem:[%s10231_s3 + $0x940] sm:$0xff]  ;;  %v7032_v42 = vcombine.high %v2301_v35, %v2305_v36 }
 0x197   :  { %5148 = vmatprep.subr.bf16.mxu0 %v6936_v21  ;;  %5312 = vmatprep.subr.bf16.mxu1 %v6938_v50  ;;  %v2262_v21 = vld [vmem:[%s10231_s3 + $0x948] sm:$0xff]  ;;  %v6992_v56 = vcombine.high %v2261_v48, %v2265_v49  ;;  %v2309_v44 = vld [vmem:[%s10231_s3 + $0xac0] sm:$0xff] }
 0x198   :  { %v2266_v50 = vld [vmem:[%s10231_s3 + $0x968] sm:$0xff]  ;;  %v2313_v22 = vld [vmem:[%s10231_s3 + $0xae0] sm:$0xff] }
 0x199   :  { %v6994_v58 = vcombine.high %v2262_v21, %v2266_v50  ;;  %v6993_v1 = vcombine.low %v2262_v21, %v2266_v50  ;;  %v2317_v21 = vld [vmem:[%s10231_s3 + $0xb00] sm:$0xff] }
 0x19a   :  { %5149 = vmatpush1.bf16.msra.mxu0 %v6935_v59  ;;  %5313 = vmatpush1.bf16.msra.mxu1 %v6937_v60  ;;  %v2269_v59 = vld [vmem:[%s10231_s3 + $0x980] sm:$0xff] }
 0x19b   :  { %5150 = vmatprep.subr.bf16.mxu0 %v6944_v62  ;;  %5314 = vmatprep.subr.bf16.mxu1 %v6946_v0  ;;  %v2273_v60 = vld [vmem:[%s10231_s3 + $0x9a0] sm:$0xff]  ;;  %v2274_v62 = vld [vmem:[%s10231_s3 + $0x9a8] sm:$0xff]  ;;  %v6991_v0 = vcombine.low %v2261_v48, %v2265_v49  ;;  %v7040_v48 = vcombine.high %v2309_v44, %v2313_v22 }
 0x19c   :  { %v7000_v2 = vcombine.high %v2269_v59, %v2273_v60  ;;  %v7002_v3 = vcombine.high %v2270_v61, %v2274_v62  ;;  %v2321_v50 = vld [vmem:[%s10231_s3 + $0xb20] sm:$0xff] }
 0x19e   :  { %5151 = vmatpush1.bf16.msra.mxu0 %v6943_v4  ;;  %5315 = vmatpush1.bf16.msra.mxu1 %v6945_v5  ;;  %v2281_v4 = vld [vmem:[%s10231_s3 + $0x9e0] sm:$0xff]  ;;  %v2278_v5 = vld [vmem:[%s10231_s3 + $0x9c8] sm:$0xff] }
 0x19f   :  { %5161 = vmatprep.subr.bf16.mxu0 %v6952_v7  ;;  %5325 = vmatprep.subr.bf16.mxu1 %v6954_v8  ;;  %v6999_v7 = vcombine.low %v2269_v59, %v2273_v60  ;;  %v7001_v8 = vcombine.low %v2270_v61, %v2274_v62  ;;  %v7008_v9 = vcombine.high %v2277_v39, %v2281_v4  ;;  %v2325_v61 = vld [vmem:[%s10231_s3 + $0xb40] sm:$0xff] }
 0x1a0   :  { %v7010_v10 = vcombine.high %v2278_v5, %v2282_v6  ;;  %v7048_v59 = vcombine.high %v2317_v21, %v2321_v50  ;;  %v2329_v62 = vld [vmem:[%s10231_s3 + $0xb60] sm:$0xff] }
 0x1a1   :  { %5153 = vmatmul.mubr.bf16.vlgmr.msra.gmra.mrb[8].mxu0 %v8805_v17  ;;  %5317 = vmatmul.mubr.bf16.vlgmr.msra.gmra.mrb[8].mxu1 %v8805_v17 }
 0x1a2   :  { %5162 = vmatpush1.bf16.msra.mxu0 %v6951_v14  ;;  %5326 = vmatpush1.bf16.msra.mxu1 %v6953_v16  ;;  %v2286_v14 = vld [vmem:[%s10231_s3 + $0xa08] sm:$0xff] }
 0x1a3   :  { %5163 = vmatprep.subr.bf16.mxu0 %v6960_v53  ;;  %5327 = vmatprep.subr.bf16.mxu1 %v6962_v18  ;;  %v2290_v16 = vld [vmem:[%s10231_s3 + $0xa28] sm:$0xff]  ;;  %v7007_v53 = vcombine.low %v2277_v39, %v2281_v4  ;;  %v7009_v18 = vcombine.low %v2278_v5, %v2282_v6  ;;  %v7056_v39 = vcombine.high %v2325_v61, %v2329_v62  ;;  %v2333_v5 = vld [vmem:[%s10231_s3 + $0xb80] sm:$0xff] }
 0x1a4   :  { %v7018_v20 = vcombine.high %v2286_v14, %v2290_v16  ;;  %v2337_v6 = vld [vmem:[%s10231_s3 + $0xba0] sm:$0xff] }
 0x1a6   :  { %5164 = vmatpush1.bf16.msra.mxu0 %v6959_v25  ;;  %5328 = vmatpush1.bf16.msra.mxu1 %v6961_v26  ;;  %v2294_v25 = vld [vmem:[%s10231_s3 + $0xa48] sm:$0xff] }
 0x1a7   :  { %5165 = vmatprep.subr.bf16.mxu0 %v6968_v27  ;;  %5329 = vmatprep.subr.bf16.mxu1 %v6970_v28  ;;  %v2298_v26 = vld [vmem:[%s10231_s3 + $0xa68] sm:$0xff]  ;;  %v7015_v27 = vcombine.low %v2285_v11, %v2289_v13  ;;  %v7017_v28 = vcombine.low %v2286_v14, %v2290_v16  ;;  %v309_v13 = vsub.s32 5, %v8563_v29  ;;  %v7064_v14 = vcombine.high %v2333_v5, %v2337_v6 }
 0x1a8   :  { %v7026_v34 = vcombine.high %v2294_v25, %v2298_v26 }
 0x1aa   :  { %5166 = vmatpush1.bf16.msra.mxu0 %v6967_v37  ;;  %5330 = vmatpush1.bf16.msra.mxu1 %v6969_v38  ;;  %v2302_v37 = vld [vmem:[%s10231_s3 + $0xa88] sm:$0xff] }
 0x1ab   :  { %5167 = vmatprep.subr.bf16.mxu0 %v6976_v40  ;;  %5331 = vmatprep.subr.bf16.mxu1 %v6978_v41  ;;  %v2306_v38 = vld [vmem:[%s10231_s3 + $0xaa8] sm:$0xff]  ;;  %v7023_v40 = vcombine.low %v2293_v23, %v2297_v24  ;;  %v7025_v41 = vcombine.low %v2294_v25, %v2298_v26  ;;  %v7063_v25 = vcombine.low %v2333_v5, %v2337_v6  ;;  %v2369_v5 = vld [vmem:[%s10231_s3 + $0xca0] sm:$0xff] }
 0x1ac   :  { %v7034_v12 = vcombine.high %v2302_v37, %v2306_v38  ;;  %v2346_v23 = vld [vmem:[%s10231_s3 + $0xbe8] sm:$0xff] }
 0x1ad   :  { %v2366_v6 = vld [vmem:[%s10231_s3 + $0xc88] sm:$0xff] }
 0x1ae   :  { %5168 = vmatpush1.bf16.msra.mxu0 %v6975_v45  ;;  %5332 = vmatpush1.bf16.msra.mxu1 %v6977_v57  ;;  %v2310_v45 = vld [vmem:[%s10231_s3 + $0xac8] sm:$0xff] }
 0x1af   :  { %5169 = vmatprep.subr.bf16.mxu0 %v6984_v46  ;;  %5333 = vmatprep.subr.bf16.mxu1 %v6986_v47  ;;  %v2314_v57 = vld [vmem:[%s10231_s3 + $0xae8] sm:$0xff]  ;;  %v7031_v46 = vcombine.low %v2301_v35, %v2305_v36  ;;  %v7033_v47 = vcombine.low %v2302_v37, %v2306_v38  ;;  %v2349_v35 = vld [vmem:[%s10231_s3 + $0xc00] sm:$0xff] }
 0x1b0   :  { %v7042_v49 = vcombine.high %v2310_v45, %v2314_v57  ;;  %v2353_v37 = vld [vmem:[%s10231_s3 + $0xc20] sm:$0xff]  ;;  %v2350_v38 = vld [vmem:[%s10231_s3 + $0xc08] sm:$0xff] }
 0x1b2   :  { %5170 = vmatpush1.bf16.msra.mxu0 %v6983_v52  ;;  %5334 = vmatpush1.bf16.msra.mxu1 %v6985_v54  ;;  %v2318_v52 = vld [vmem:[%s10231_s3 + $0xb08] sm:$0xff] }
 0x1b3   :  { %5171 = vmatprep.subr.bf16.mxu0 %v6992_v56  ;;  %5335 = vmatprep.subr.bf16.mxu1 %v6994_v58  ;;  %v2322_v54 = vld [vmem:[%s10231_s3 + $0xb28] sm:$0xff]  ;;  %v7039_v56 = vcombine.low %v2309_v44, %v2313_v22  ;;  %v7041_v58 = vcombine.low %v2310_v45, %v2314_v57 }
 0x1b4   :  { %v7050_v60 = vcombine.high %v2318_v52, %v2322_v54 }
 0x1b6   :  { %5172 = vmatpush1.bf16.msra.mxu0 %v6991_v0  ;;  %5336 = vmatpush1.bf16.msra.mxu1 %v6993_v1  ;;  %v2326_v0 = vld [vmem:[%s10231_s3 + $0xb48] sm:$0xff] }
 0x1b7   :  { %5173 = vmatprep.subr.bf16.mxu0 %v7000_v2  ;;  %5337 = vmatprep.subr.bf16.mxu1 %v7002_v3  ;;  %v2330_v1 = vld [vmem:[%s10231_s3 + $0xb68] sm:$0xff]  ;;  %v7047_v2 = vcombine.low %v2317_v21, %v2321_v50  ;;  %v7049_v3 = vcombine.low %v2318_v52, %v2322_v54  ;;  %v7080_v21 = vcombine.high %v2349_v35, %v2353_v37 }
 0x1b8   :  { %v7058_v4 = vcombine.high %v2326_v0, %v2330_v1  ;;  %v7057_v11 = vcombine.low %v2326_v0, %v2330_v1  ;;  %v7079_v0 = vcombine.low %v2349_v35, %v2353_v37  ;;  %v2386_v35 = vld [vmem:[%s10231_s3 + $0xd28] sm:$0xff] }
 0x1ba   :  { %5174 = vmatpush1.bf16.msra.mxu0 %v6999_v7  ;;  %5338 = vmatpush1.bf16.msra.mxu1 %v7001_v8  ;;  %v2334_v7 = vld [vmem:[%s10231_s3 + $0xb88] sm:$0xff] }
 0x1bb   :  { %5175 = vmatprep.subr.bf16.mxu0 %v7008_v9  ;;  %5339 = vmatprep.subr.bf16.mxu1 %v7010_v10  ;;  %v2338_v8 = vld [vmem:[%s10231_s3 + $0xba8] sm:$0xff]  ;;  %v305_v9 = vsub.s32 4, %v8563_v29  ;;  %v7055_v10 = vcombine.low %v2325_v61, %v2329_v62 }
 0x1bc   :  { %v7066_v16 = vcombine.high %v2334_v7, %v2338_v8  ;;  %v7065_v26 = vcombine.low %v2334_v7, %v2338_v8  ;;  %v2362_v61 = vld [vmem:[%s10231_s3 + $0xc68] sm:$0xff] }
 0x1bd   :  { %v306_v24 = vrot.slane %v8569_v31, %v305_v9  ;;  %v2370_v7 = vld [vmem:[%s10231_s3 + $0xca8] sm:$0xff] }
 0x1be   :  { %5176 = vmatpush1.bf16.msra.mxu0 %v7007_v53  ;;  %5340 = vmatpush1.bf16.msra.mxu1 %v7009_v18  ;;  %v317_v53 = vsub.s32 7, %v8563_v29  ;;  %v2341_v18 = vld [vmem:[%s10231_s3 + $0xbc0] sm:$0xff] }
 0x1bf   :  { %5177 = vmatprep.subr.bf16.mxu0 %v7016_v19  ;;  %5341 = vmatprep.subr.bf16.mxu1 %v7018_v20  ;;  %v2345_v19 = vld [vmem:[%s10231_s3 + $0xbe0] sm:$0xff]  ;;  %v2342_v20 = vld [vmem:[%s10231_s3 + $0xbc8] sm:$0xff] }
 0x1c0   :  { %v7071_v45 = vcombine.low %v2341_v18, %v2345_v19  ;;  %v7073_v57 = vcombine.low %v2342_v20, %v2346_v23 }
 0x1c2   :  { %5178 = vmatpush1.bf16.msra.mxu0 %v7015_v27  ;;  %5342 = vmatpush1.bf16.msra.mxu1 %v7017_v28  ;;  %v310_v27 = vrot.slane %v8569_v31, %v309_v13  ;;  %v318_v28 = vrot.slane %v8569_v31, %v317_v53 }
 0x1c3   :  { %5179 = vmatprep.subr.bf16.mxu0 %v7024_v15  ;;  %5343 = vmatprep.subr.bf16.mxu1 %v7026_v34  ;;  %v7072_v15 = vcombine.high %v2341_v18, %v2345_v19  ;;  %v7074_v34 = vcombine.high %v2342_v20, %v2346_v23  ;;  %v2373_v18 = vld [vmem:[%s10231_s3 + $0xcc0] sm:$0xff]  ;;  %v2374_v20 = vld [vmem:[%s10231_s3 + $0xcc8] sm:$0xff] }
 0x1c4   :  { %v2377_v19 = vld [vmem:[%s10231_s3 + $0xce0] sm:$0xff]  ;;  %v2378_v23 = vld [vmem:[%s10231_s3 + $0xce8] sm:$0xff] }
 0x1c5   :  { %v7105_v37 = vcombine.low %v2374_v20, %v2378_v23 }
 0x1c6   :  { %5180 = vmatpush1.bf16.msra.mxu0 %v7023_v40  ;;  %5344 = vmatpush1.bf16.msra.mxu1 %v7025_v41  ;;  %v2354_v40 = vld [vmem:[%s10231_s3 + $0xc28] sm:$0xff] }
 0x1c7   :  { %5181 = vmatprep.subr.bf16.mxu0 %v7032_v42  ;;  %5345 = vmatprep.subr.bf16.mxu1 %v7034_v12  ;;  %v7082_v50 = vcombine.high %v2350_v38, %v2354_v40  ;;  %v7081_v1 = vcombine.low %v2350_v38, %v2354_v40 }
 0x1ca   :  { %5182 = vmatpush1.bf16.msra.mxu0 %v7031_v46  ;;  %5346 = vmatpush1.bf16.msra.mxu1 %v7033_v47 }
 0x1cb   :  { %5183 = vmatprep.subr.bf16.mxu0 %v7040_v48  ;;  %5347 = vmatprep.subr.bf16.mxu1 %v7042_v49 }
 0x1ce   :  { %5184 = vmatpush1.bf16.msra.mxu0 %v7039_v56  ;;  %5348 = vmatpush1.bf16.msra.mxu1 %v7041_v58  ;;  %v2357_v56 = vld [vmem:[%s10231_s3 + $0xc40] sm:$0xff] }
 0x1cf   :  { %5185 = vmatprep.subr.bf16.mxu0 %v7048_v59  ;;  %5349 = vmatprep.subr.bf16.mxu1 %v7050_v60  ;;  %v2361_v59 = vld [vmem:[%s10231_s3 + $0xc60] sm:$0xff]  ;;  %v2358_v60 = vld [vmem:[%s10231_s3 + $0xc48] sm:$0xff] }
 0x1d2   :  { %5186 = vmatpush1.bf16.msra.mxu0 %v7047_v2  ;;  %5350 = vmatpush1.bf16.msra.mxu1 %v7049_v3  ;;  %v2365_v3 = vld [vmem:[%s10231_s3 + $0xc80] sm:$0xff] }
 0x1d3   :  { %5187 = vmatprep.subr.bf16.mxu0 %v7056_v39  ;;  %5351 = vmatprep.subr.bf16.mxu1 %v7058_v4  ;;  %v7088_v39 = vcombine.high %v2357_v56, %v2361_v59  ;;  %v7090_v4 = vcombine.high %v2358_v60, %v2362_v61 }
 0x1d6   :  { %5188 = vmatpush1.bf16.msra.mxu0 %v7055_v10  ;;  %5352 = vmatpush1.bf16.msra.mxu1 %v7057_v11  ;;  %v7087_v10 = vcombine.low %v2357_v56, %v2361_v59  ;;  %v7089_v11 = vcombine.low %v2358_v60, %v2362_v61  ;;  %v2409_v59 = vld [vmem:[%s10231_s3 + $0xde0] sm:$0xff]  ;;  %v2406_v60 = vld [vmem:[%s10231_s3 + $0xdc8] sm:$0xff] }
 0x1d7   :  { %5189 = vmatprep.subr.bf16.mxu0 %v7064_v14  ;;  %5353 = vmatprep.subr.bf16.mxu1 %v7066_v16  ;;  %v7096_v14 = vcombine.high %v2365_v3, %v2369_v5  ;;  %v7098_v16 = vcombine.high %v2366_v6, %v2370_v7  ;;  %v2410_v61 = vld [vmem:[%s10231_s3 + $0xde8] sm:$0xff] }
 0x1d8   :  { %v1860_v36 = vpop.f32.mrb[4].mxu0  ;;  %v9001_v41 = vpop.f32.mrb[4].mxu1 }
 0x1d9   :  { %v7364_v31 = vadd.f32 %v1860_v36, %v306_v24  ;;  %v1862_v42 = vpop.f32.mrb[5].mxu0  ;;  %v1944_v44 = vpop.f32.mrb[5].mxu1  ;;  %v7095_v24 = vcombine.low %v2365_v3, %v2369_v5  ;;  %v7103_v36 = vcombine.low %v2373_v18, %v2377_v19  ;;  %v2417_v5 = vld [vmem:[%s10231_s3 + $0xe20] sm:$0xff] }
 0x1da   :  { %v7365_v12 = vadd.f32 %v1862_v42, %v310_v27  ;;  %5190 = vmatpush1.bf16.msra.mxu0 %v7063_v25  ;;  %5354 = vmatpush1.bf16.msra.mxu1 %v7065_v26  ;;  %v1864_v22 = vpop.f32.mrb[6].mxu0  ;;  %v7367_v47 = vadd.f32 %v1944_v44, %v318_v28  ;;  %v1946_v48 = vpop.f32.mrb[6].mxu1  ;;  %v7097_v25 = vcombine.low %v2366_v6, %v2370_v7  ;;  %v2381_v28 = vld [vmem:[%s10231_s3 + $0xd00] sm:$0xff]  ;;  %v2394_v44 = vld [vmem:[%s10231_s3 + $0xd68] sm:$0xff] }
 0x1db   :  { %v1953_v46 = vmax.f32 %v7364_v31, 0.0  ;;  %v1865_v49 = vpop.f32.mrb[7].mxu0  ;;  %5191 = vmatprep.subr.bf16.mxu0 %v7072_v15  ;;  %5355 = vmatprep.subr.bf16.mxu1 %v7074_v34  ;;  %v1947_v54 = vpop.f32.mrb[7].mxu1  ;;  %v7104_v26 = vcombine.high %v2373_v18, %v2377_v19  ;;  %v7106_v27 = vcombine.high %v2374_v20, %v2378_v23  ;;  %v2385_v15 = vld [vmem:[%s10231_s3 + $0xd20] sm:$0xff]  ;;  %v2382_v34 = vld [vmem:[%s10231_s3 + $0xd08] sm:$0xff] }
 0x1dc   :  { %v1954_v52 = vmax.f32 %v7365_v12, 0.0  ;;  %v1956_v58 = vmax.f32 %v7367_v47, 0.0  ;;  %v7112_v38 = vcombine.high %v2381_v28, %v2385_v15  ;;  %v7114_v40 = vcombine.high %v2382_v34, %v2386_v35  ;;  %v2389_v31 = vld [vmem:[%s10231_s3 + $0xd40] sm:$0xff]  ;;  %v2390_v12 = vld [vmem:[%s10231_s3 + $0xd48] sm:$0xff] }
 0x1dd   :  { %v9017_v2 = vpack.c.bf16 %v1953_v46, %v1953_v46  ;;  %v2393_v42 = vld [vmem:[%s10231_s3 + $0xd60] sm:$0xff]  ;;  %v7111_v22 = vcombine.low %v2381_v28, %v2385_v15  ;;  %v7122_v46 = vcombine.high %v2390_v12, %v2394_v44  ;;  %v2398_v49 = vld [vmem:[%s10231_s3 + $0xd88] sm:$0xff] }
 0x1de   :  { %v9015_v62 = vpack.c.bf16 %v1954_v52, %v1954_v52  ;;  %5192 = vmatpush1.bf16.msra.mxu0 %v7071_v45  ;;  %5356 = vmatpush1.bf16.msra.mxu1 %v7073_v57  ;;  %v9033_v8 = vpack.c.bf16 %v1956_v58, %v1956_v58  ;;  %v7113_v45 = vcombine.low %v2382_v34, %v2386_v35  ;;  %v2397_v47 = vld [vmem:[%s10231_s3 + $0xd80] sm:$0xff]  ;;  %v2414_v6 = vld [vmem:[%s10231_s3 + $0xe08] sm:$0xff] }
 0x1df   :  { %5202 = vmatprep.subr.bf16.mxu0 %v7080_v21  ;;  %5366 = vmatprep.subr.bf16.mxu1 %v7082_v50  ;;  %v7120_v57 = vcombine.high %v2389_v31, %v2393_v42  ;;  %v2401_v48 = vld [vmem:[%s10231_s3 + $0xda0] sm:$0xff]  ;;  %v2402_v21 = vld [vmem:[%s10231_s3 + $0xda8] sm:$0xff]  ;;  %v7119_v50 = vcombine.low %v2389_v31, %v2393_v42  ;;  %v7121_v52 = vcombine.low %v2390_v12, %v2394_v44 }
 0x1e0   :  { %5193 = vmatprep.mubr.bf16.mxu0 %v9015_v62  ;;  %5357 = vmatprep.mubr.bf16.mxu1 %v9015_v62  ;;  %v7128_v54 = vcombine.high %v2397_v47, %v2401_v48  ;;  %v7130_v56 = vcombine.high %v2398_v49, %v2402_v21  ;;  %v2405_v58 = vld [vmem:[%s10231_s3 + $0xdc0] sm:$0xff]  ;;  %v2418_v7 = vld [vmem:[%s10231_s3 + $0xe28] sm:$0xff] }
 0x1e1   :  { %5194 = vmatmul.mubr.bf16.vlgmr.msra.gmra.mrb[8].mxu0 %v9017_v2  ;;  %5358 = vmatmul.mubr.bf16.vlgmr.msra.gmra.mrb[8].mxu1 %v9017_v2  ;;  %v7136_v3 = vcombine.high %v2405_v58, %v2409_v59  ;;  %v2421_v18 = vld [vmem:[%s10231_s3 + $0xe40] sm:$0xff]  ;;  %v2422_v20 = vld [vmem:[%s10231_s3 + $0xe48] sm:$0xff] }
 0x1e2   :  { %5203 = vmatpush1.bf16.msra.mxu0 %v7079_v0  ;;  %5367 = vmatpush1.bf16.msra.mxu1 %v7081_v1  ;;  %v7127_v0 = vcombine.low %v2397_v47, %v2401_v48  ;;  %v7129_v1 = vcombine.low %v2398_v49, %v2402_v21  ;;  %v2425_v19 = vld [vmem:[%s10231_s3 + $0xe60] sm:$0xff]  ;;  %v2426_v23 = vld [vmem:[%s10231_s3 + $0xe68] sm:$0xff] }
 0x1e3   :  { %5234 = vmatprep.mubr.bf16.mxu0 %v9033_v8  ;;  %5398 = vmatprep.mubr.bf16.mxu1 %v9033_v8  ;;  %v2429_v28 = vld [vmem:[%s10231_s3 + $0xe80] sm:$0xff]  ;;  %v2430_v34 = vld [vmem:[%s10231_s3 + $0xe88] sm:$0xff] }
 0x1e4   :  { %5204 = vmatprep.subr.bf16.mxu0 %v7088_v39  ;;  %5368 = vmatprep.subr.bf16.mxu1 %v7090_v4  ;;  %v7138_v39 = vcombine.high %v2406_v60, %v2410_v61  ;;  %v2413_v4 = vld [vmem:[%s10231_s3 + $0xe00] sm:$0xff]  ;;  %v2434_v35 = vld [vmem:[%s10231_s3 + $0xea8] sm:$0xff] }
 0x1e5   :  { %v2433_v15 = vld [vmem:[%s10231_s3 + $0xea0] sm:$0xff]  ;;  %v2438_v12 = vld [vmem:[%s10231_s3 + $0xec8] sm:$0xff] }
 0x1e6   :  { %5205 = vmatpush1.bf16.msra.mxu0 %v7087_v10  ;;  %5369 = vmatpush1.bf16.msra.mxu1 %v7089_v11  ;;  %v7135_v10 = vcombine.low %v2405_v58, %v2409_v59  ;;  %v7137_v11 = vcombine.low %v2406_v60, %v2410_v61  ;;  %v2437_v31 = vld [vmem:[%s10231_s3 + $0xec0] sm:$0xff]  ;;  %v2442_v44 = vld [vmem:[%s10231_s3 + $0xee8] sm:$0xff] }
 0x1e7   :  { %5206 = vmatprep.subr.bf16.mxu0 %v7096_v14  ;;  %5370 = vmatprep.subr.bf16.mxu1 %v7098_v16  ;;  %v7144_v14 = vcombine.high %v2413_v4, %v2417_v5  ;;  %v7146_v16 = vcombine.high %v2414_v6, %v2418_v7  ;;  %v2441_v42 = vld [vmem:[%s10231_s3 + $0xee0] sm:$0xff]  ;;  %v2446_v49 = vld [vmem:[%s10231_s3 + $0xf08] sm:$0xff] }
 0x1e8   :  { %v2445_v47 = vld [vmem:[%s10231_s3 + $0xf00] sm:$0xff]  ;;  %v2450_v21 = vld [vmem:[%s10231_s3 + $0xf28] sm:$0xff] }
 0x1e9   :  { %v2449_v48 = vld [vmem:[%s10231_s3 + $0xf20] sm:$0xff]  ;;  %v2454_v60 = vld [vmem:[%s10231_s3 + $0xf48] sm:$0xff] }
 0x1ea   :  { %5207 = vmatpush1.bf16.msra.mxu0 %v7095_v24  ;;  %5371 = vmatpush1.bf16.msra.mxu1 %v7097_v25  ;;  %v7143_v24 = vcombine.low %v2413_v4, %v2417_v5  ;;  %v7145_v25 = vcombine.low %v2414_v6, %v2418_v7  ;;  %v2453_v58 = vld [vmem:[%s10231_s3 + $0xf40] sm:$0xff]  ;;  %v2458_v61 = vld [vmem:[%s10231_s3 + $0xf68] sm:$0xff] }
 0x1eb   :  { %5208 = vmatprep.subr.bf16.mxu0 %v7104_v26  ;;  %5372 = vmatprep.subr.bf16.mxu1 %v7106_v27  ;;  %v7152_v26 = vcombine.high %v2421_v18, %v2425_v19  ;;  %v7154_v27 = vcombine.high %v2422_v20, %v2426_v23  ;;  %v2457_v59 = vld [vmem:[%s10231_s3 + $0xf60] sm:$0xff]  ;;  %v7186_v4 = vcombine.high %v2454_v60, %v2458_v61  ;;  %v2462_v7 = vld [vmem:[%s10231_s3 + $0xf88] sm:$0xff] }
 0x1ec   :  { %v2461_v5 = vld [vmem:[%s10231_s3 + $0xf80] sm:$0xff] }
 0x1ed   :  { %v2465_v6 = vld [vmem:[%s10231_s3 + $0xfa0] sm:$0xff] }
 0x1ee   :  { %5209 = vmatpush1.bf16.msra.mxu0 %v7103_v36  ;;  %5373 = vmatpush1.bf16.msra.mxu1 %v7105_v37  ;;  %v7151_v36 = vcombine.low %v2421_v18, %v2425_v19  ;;  %v7153_v37 = vcombine.low %v2422_v20, %v2426_v23  ;;  %v7192_v19 = vcombine.high %v2461_v5, %v2465_v6  ;;  %v2469_v23 = vld [vmem:[%s10231_s3 + $0xfc0] sm:$0xff] }
 0x1ef   :  { %5210 = vmatprep.subr.bf16.mxu0 %v7112_v38  ;;  %5374 = vmatprep.subr.bf16.mxu1 %v7114_v40  ;;  %v7160_v38 = vcombine.high %v2429_v28, %v2433_v15  ;;  %v7162_v40 = vcombine.high %v2430_v34, %v2434_v35 }
 0x1f2   :  { %5211 = vmatpush1.bf16.msra.mxu0 %v7111_v22  ;;  %5375 = vmatpush1.bf16.msra.mxu1 %v7113_v45  ;;  %v7159_v22 = vcombine.low %v2429_v28, %v2433_v15  ;;  %v7161_v45 = vcombine.low %v2430_v34, %v2434_v35 }
 0x1f3   :  { %5212 = vmatprep.subr.bf16.mxu0 %v7120_v57  ;;  %5376 = vmatprep.subr.bf16.mxu1 %v7122_v46  ;;  %v7168_v57 = vcombine.high %v2437_v31, %v2441_v42  ;;  %v7170_v46 = vcombine.high %v2438_v12, %v2442_v44 }
 0x1f6   :  { %5213 = vmatpush1.bf16.msra.mxu0 %v7119_v50  ;;  %5377 = vmatpush1.bf16.msra.mxu1 %v7121_v52  ;;  %v7167_v50 = vcombine.low %v2437_v31, %v2441_v42  ;;  %v7169_v52 = vcombine.low %v2438_v12, %v2442_v44 }
 0x1f7   :  { %5214 = vmatprep.subr.bf16.mxu0 %v7128_v54  ;;  %5378 = vmatprep.subr.bf16.mxu1 %v7130_v56  ;;  %v7176_v54 = vcombine.high %v2445_v47, %v2449_v48  ;;  %v7178_v56 = vcombine.high %v2446_v49, %v2450_v21 }
 0x1fa   :  { %5215 = vmatpush1.bf16.msra.mxu0 %v7127_v0  ;;  %5379 = vmatpush1.bf16.msra.mxu1 %v7129_v1  ;;  %v7175_v0 = vcombine.low %v2445_v47, %v2449_v48  ;;  %v7177_v1 = vcombine.low %v2446_v49, %v2450_v21 }
 0x1fb   :  { %5216 = vmatprep.subr.bf16.mxu0 %v7136_v3  ;;  %5380 = vmatprep.subr.bf16.mxu1 %v7138_v39  ;;  %v313_v3 = vsub.s32 6, %v8563_v29  ;;  %v7184_v39 = vcombine.high %v2453_v58, %v2457_v59 }
 0x1fe   :  { %5217 = vmatpush1.bf16.msra.mxu0 %v7135_v10  ;;  %5381 = vmatpush1.bf16.msra.mxu1 %v7137_v11  ;;  %v2466_v10 = vld [vmem:[%s10231_s3 + $0xfa8] sm:$0xff]  ;;  %v7183_v11 = vcombine.low %v2453_v58, %v2457_v59  ;;  %v1988_v58 = vld [vmem:[%s10231_s3 + $0xb8] sm:$0xff] }
 0x1ff   :  { %5218 = vmatprep.subr.bf16.mxu0 %v7144_v14  ;;  %5382 = vmatprep.subr.bf16.mxu1 %v7146_v16  ;;  %v7185_v14 = vcombine.low %v2454_v60, %v2458_v61  ;;  %v7508_v16 = vld [vmem:[%s10232_s2] sm:$0xff]  ;;  %v7194_v20 = vcombine.high %v2462_v7, %v2466_v10  ;;  %v7193_v28 = vcombine.low %v2462_v7, %v2466_v10 }
 0x200   :  { %v314_v18 = vrot.slane %v7508_v16, %v313_v3  ;;  %v2000_v16 = vld [vmem:[%s10231_s3 + $0x118] sm:$0xff] }
 0x202   :  { %5219 = vmatpush1.bf16.msra.mxu0 %v7143_v24  ;;  %5383 = vmatpush1.bf16.msra.mxu1 %v7145_v25  ;;  %v2473_v24 = vld [vmem:[%s10231_s3 + $0xfe0] sm:$0xff]  ;;  %v2470_v25 = vld [vmem:[%s10231_s3 + $0xfc8] sm:$0xff]  ;;  %v7366_v15 = vadd.f32 %v9001_v41, %v314_v18  ;;  %v1972_v41 = vld [vmem:[%s10231_s3 + $0x38] sm:$0xff] }
 0x203   :  { %5220 = vmatprep.subr.bf16.mxu0 %v7152_v26  ;;  %5384 = vmatprep.subr.bf16.mxu1 %v7154_v27  ;;  %v2474_v26 = vld [vmem:[%s10231_s3 + $0xfe8] sm:$0xff]  ;;  %v7191_v27 = vcombine.low %v2461_v5, %v2465_v6  ;;  %v7200_v34 = vcombine.high %v2469_v23, %v2473_v24  ;;  %v2004_v18 = vld [vmem:[%s10231_s3 + $0x138] sm:$0xff] }
 0x204   :  { %v7202_v35 = vcombine.high %v2470_v25, %v2474_v26  ;;  %v7201_v31 = vcombine.low %v2470_v25, %v2474_v26  ;;  %v1955_v42 = vmax.f32 %v7366_v15, 0.0  ;;  %v2007_v25 = vld [vmem:[%s10231_s3 + $0x150] sm:$0xff] }
 0x205   :  { %v2011_v26 = vld [vmem:[%s10231_s3 + $0x170] sm:$0xff] }
 0x206   :  { %5221 = vmatpush1.bf16.msra.mxu0 %v7151_v36  ;;  %5385 = vmatpush1.bf16.msra.mxu1 %v7153_v37  ;;  %v1967_v36 = vld [vmem:[%s10231_s3 + $0x10] sm:$0xff]  ;;  %v9226_v48 = vpack.c.bf16 %v1955_v42, %v1955_v42 }
 0x207   :  { %5222 = vmatprep.subr.bf16.mxu0 %v7160_v38  ;;  %5386 = vmatprep.subr.bf16.mxu1 %v7162_v40  ;;  %v1971_v37 = vld [vmem:[%s10231_s3 + $0x30] sm:$0xff]  ;;  %v1968_v38 = vld [vmem:[%s10231_s3 + $0x18] sm:$0xff]  ;;  %v7199_v40 = vcombine.low %v2469_v23, %v2473_v24  ;;  %v6734_v24 = vcombine.high %v2000_v16, %v2004_v18 }
 0x208   :  { %v6700_v12 = vcombine.high %v1967_v36, %v1971_v37  ;;  %v6702_v44 = vcombine.high %v1968_v38, %v1972_v41  ;;  %v6699_v47 = vcombine.low %v1967_v36, %v1971_v37  ;;  %v6701_v49 = vcombine.low %v1968_v38, %v1972_v41  ;;  %v2015_v37 = vld [vmem:[%s10231_s3 + $0x190] sm:$0xff]  ;;  %v2016_v41 = vld [vmem:[%s10231_s3 + $0x198] sm:$0xff] }
 0x209   :  { %v2019_v38 = vld [vmem:[%s10231_s3 + $0x1b0] sm:$0xff] }
 0x20a   :  { %5223 = vmatpush1.bf16.msra.mxu0 %v7159_v22  ;;  %5387 = vmatpush1.bf16.msra.mxu1 %v7161_v45  ;;  %v1975_v22 = vld [vmem:[%s10231_s3 + $0x50] sm:$0xff] }
 0x20b   :  { %5224 = vmatprep.subr.bf16.mxu0 %v7168_v57  ;;  %5388 = vmatprep.subr.bf16.mxu1 %v7170_v46  ;;  %v1979_v45 = vld [vmem:[%s10231_s3 + $0x70] sm:$0xff]  ;;  %v1976_v57 = vld [vmem:[%s10231_s3 + $0x58] sm:$0xff] }
 0x20c   :  { %v1980_v46 = vld [vmem:[%s10231_s3 + $0x78] sm:$0xff]  ;;  %v6708_v21 = vcombine.high %v1975_v22, %v1979_v45  ;;  %v6707_v59 = vcombine.low %v1975_v22, %v1979_v45  ;;  %v2023_v22 = vld [vmem:[%s10231_s3 + $0x1d0] sm:$0xff] }
 0x20d   :  { %v6709_v60 = vcombine.low %v1976_v57, %v1980_v46  ;;  %v2027_v45 = vld [vmem:[%s10231_s3 + $0x1f0] sm:$0xff] }
 0x20e   :  { %5225 = vmatpush1.bf16.msra.mxu0 %v7167_v50  ;;  %5389 = vmatpush1.bf16.msra.mxu1 %v7169_v52  ;;  %v6710_v50 = vcombine.high %v1976_v57, %v1980_v46  ;;  %v1983_v52 = vld [vmem:[%s10231_s3 + $0x90] sm:$0xff]  ;;  %v2024_v57 = vld [vmem:[%s10231_s3 + $0x1d8] sm:$0xff] }
 0x20f   :  { %5226 = vmatprep.subr.bf16.mxu0 %v7176_v54  ;;  %5390 = vmatprep.subr.bf16.mxu1 %v7178_v56  ;;  %v1987_v54 = vld [vmem:[%s10231_s3 + $0xb0] sm:$0xff]  ;;  %v1984_v56 = vld [vmem:[%s10231_s3 + $0x98] sm:$0xff] }
 0x210   :  { %v6716_v61 = vcombine.high %v1983_v52, %v1987_v54  ;;  %v6715_v5 = vcombine.low %v1983_v52, %v1987_v54  ;;  %v6717_v6 = vcombine.low %v1984_v56, %v1988_v58  ;;  %v2028_v46 = vld [vmem:[%s10231_s3 + $0x1f8] sm:$0xff]  ;;  %v2031_v52 = vld [vmem:[%s10231_s3 + $0x210] sm:$0xff] }
 0x211   :  { %v2035_v54 = vld [vmem:[%s10231_s3 + $0x230] sm:$0xff] }
 0x212   :  { %5227 = vmatpush1.bf16.msra.mxu0 %v7175_v0  ;;  %5391 = vmatpush1.bf16.msra.mxu1 %v7177_v1  ;;  %v6718_v0 = vcombine.high %v1984_v56, %v1988_v58  ;;  %v1991_v1 = vld [vmem:[%s10231_s3 + $0xd0] sm:$0xff]  ;;  %v2032_v56 = vld [vmem:[%s10231_s3 + $0x218] sm:$0xff] }
 0x213   :  { %5228 = vmatprep.subr.bf16.mxu0 %v7184_v39  ;;  %5392 = vmatprep.subr.bf16.mxu1 %v7186_v4  ;;  %v1995_v39 = vld [vmem:[%s10231_s3 + $0xf0] sm:$0xff]  ;;  %v1992_v4 = vld [vmem:[%s10231_s3 + $0xd8] sm:$0xff] }
 0x214   :  { %v6724_v7 = vcombine.high %v1991_v1, %v1995_v39  ;;  %v2036_v58 = vld [vmem:[%s10231_s3 + $0x238] sm:$0xff] }
 0x216   :  { %5229 = vmatpush1.bf16.msra.mxu0 %v7183_v11  ;;  %5393 = vmatpush1.bf16.msra.mxu1 %v7185_v14  ;;  %v1999_v11 = vld [vmem:[%s10231_s3 + $0x110] sm:$0xff] }
 0x217   :  { %5230 = vmatprep.subr.bf16.mxu0 %v7192_v19  ;;  %5394 = vmatprep.subr.bf16.mxu1 %v7194_v20  ;;  %v2003_v14 = vld [vmem:[%s10231_s3 + $0x130] sm:$0xff]  ;;  %v6723_v19 = vcombine.low %v1991_v1, %v1995_v39 }
 0x218   :  { %v6732_v23 = vcombine.high %v1999_v11, %v2003_v14  ;;  %v6731_v15 = vcombine.low %v1999_v11, %v2003_v14  ;;  %v2039_v1 = vld [vmem:[%s10231_s3 + $0x250] sm:$0xff] }
 0x219   :  { %v2043_v39 = vld [vmem:[%s10231_s3 + $0x270] sm:$0xff] }
 0x21a   :  { %5231 = vmatpush1.bf16.msra.mxu0 %v7191_v27  ;;  %5395 = vmatpush1.bf16.msra.mxu1 %v7193_v28  ;;  %v2008_v27 = vld [vmem:[%s10231_s3 + $0x158] sm:$0xff]  ;;  %v2047_v11 = vld [vmem:[%s10231_s3 + $0x290] sm:$0xff] }
 0x21b   :  { %5232 = vmatprep.subr.bf16.mxu0 %v7200_v34  ;;  %5396 = vmatprep.subr.bf16.mxu1 %v7202_v35  ;;  %v2012_v28 = vld [vmem:[%s10231_s3 + $0x178] sm:$0xff]  ;;  %v6733_v34 = vcombine.low %v2000_v16, %v2004_v18  ;;  %v6740_v35 = vcombine.high %v2007_v25, %v2011_v26  ;;  %v2051_v14 = vld [vmem:[%s10231_s3 + $0x2b0] sm:$0xff] }
 0x21c   :  { %v6742_v36 = vcombine.high %v2008_v27, %v2012_v28  ;;  %v6741_v42 = vcombine.low %v2008_v27, %v2012_v28  ;;  %v2048_v16 = vld [vmem:[%s10231_s3 + $0x298] sm:$0xff] }
 0x21d   :  { %v2052_v18 = vld [vmem:[%s10231_s3 + $0x2b8] sm:$0xff] }
 0x21e   :  { %5233 = vmatpush1.bf16.msra.mxu0 %v7199_v40  ;;  %5397 = vmatpush1.bf16.msra.mxu1 %v7201_v31  ;;  %v2020_v40 = vld [vmem:[%s10231_s3 + $0x1b8] sm:$0xff]  ;;  %v6739_v31 = vcombine.low %v2007_v25, %v2011_v26  ;;  %v2055_v25 = vld [vmem:[%s10231_s3 + $0x2d0] sm:$0xff] }
 0x21f   :  { %5407 = vmatprep.subr.bf16.mxu0 %v6700_v12  ;;  %5571 = vmatprep.subr.bf16.mxu1 %v6702_v44  ;;  %v6748_v12 = vcombine.high %v2015_v37, %v2019_v38  ;;  %v6750_v44 = vcombine.high %v2016_v41, %v2020_v40  ;;  %v2059_v26 = vld [vmem:[%s10231_s3 + $0x2f0] sm:$0xff]  ;;  %v2056_v27 = vld [vmem:[%s10231_s3 + $0x2d8] sm:$0xff] }
 0x220   :  { %v2060_v28 = vld [vmem:[%s10231_s3 + $0x2f8] sm:$0xff] }
 0x221   :  { %5235 = vmatmul.mubr.bf16.vlgmr.msra.gmra.mrb[8].mxu0 %v9226_v48  ;;  %5399 = vmatmul.mubr.bf16.vlgmr.msra.gmra.mrb[8].mxu1 %v9226_v48 }
 0x222   :  { %5408 = vmatpush1.bf16.msra.mxu0 %v6699_v47  ;;  %5439 = vmatprep.mubr.bf16.mxu0 %v8596_v51  ;;  %v6747_v47 = vcombine.low %v2015_v37, %v2019_v38  ;;  %v2063_v37 = vld [vmem:[%s10231_s3 + $0x310] sm:$0xff] }
 0x223   :  { %5572 = vmatpush1.bf16.msra.mxu1 %v6701_v49  ;;  %5603 = vmatprep.mubr.bf16.mxu1 %v8596_v51  ;;  %v1996_v51 = vld [vmem:[%s10231_s3 + $0xf8] sm:$0xff]  ;;  %v6749_v49 = vcombine.low %v2016_v41, %v2020_v40  ;;  %v2067_v38 = vld [vmem:[%s10231_s3 + $0x330] sm:$0xff] }
 0x224   :  { %5409 = vmatprep.subr.bf16.mxu0 %v6708_v21  ;;  %5573 = vmatprep.subr.bf16.mxu1 %v6710_v50  ;;  %v6726_v10 = vcombine.high %v1992_v4, %v1996_v51  ;;  %v6725_v20 = vcombine.low %v1992_v4, %v1996_v51  ;;  %v6756_v21 = vcombine.high %v2023_v22, %v2027_v45  ;;  %v2040_v4 = vld [vmem:[%s10231_s3 + $0x258] sm:$0xff] }
 0x225   :  { %v6758_v50 = vcombine.high %v2024_v57, %v2028_v46  ;;  %v2044_v51 = vld [vmem:[%s10231_s3 + $0x278] sm:$0xff] }
 0x226   :  { %5410 = vmatpush1.bf16.msra.mxu0 %v6707_v59  ;;  %v6755_v59 = vcombine.low %v2023_v22, %v2027_v45  ;;  %v2064_v41 = vld [vmem:[%s10231_s3 + $0x318] sm:$0xff]  ;;  %v2071_v22 = vld [vmem:[%s10231_s3 + $0x350] sm:$0xff] }
 0x227   :  { %5574 = vmatpush1.bf16.msra.mxu1 %v6709_v60  ;;  %5411 = vmatprep.subr.bf16.mxu0 %v6716_v61  ;;  %v6757_v60 = vcombine.low %v2024_v57, %v2028_v46  ;;  %v6764_v61 = vcombine.high %v2031_v52, %v2035_v54  ;;  %v2068_v40 = vld [vmem:[%s10231_s3 + $0x338] sm:$0xff]  ;;  %v2075_v45 = vld [vmem:[%s10231_s3 + $0x370] sm:$0xff] }
 0x228   :  { %5575 = vmatprep.subr.bf16.mxu1 %v6718_v0  ;;  %v6766_v0 = vcombine.high %v2032_v56, %v2036_v58  ;;  %v2072_v57 = vld [vmem:[%s10231_s3 + $0x358] sm:$0xff] }
 0x229   :  { %v2076_v46 = vld [vmem:[%s10231_s3 + $0x378] sm:$0xff] }
 0x22a   :  { %5412 = vmatpush1.bf16.msra.mxu0 %v6715_v5  ;;  %v6763_v5 = vcombine.low %v2031_v52, %v2035_v54  ;;  %v2079_v52 = vld [vmem:[%s10231_s3 + $0x390] sm:$0xff] }
 0x22b   :  { %5576 = vmatpush1.bf16.msra.mxu1 %v6717_v6  ;;  %5413 = vmatprep.subr.bf16.mxu0 %v6724_v7  ;;  %v6765_v6 = vcombine.low %v2032_v56, %v2036_v58  ;;  %v6772_v7 = vcombine.high %v2039_v1, %v2043_v39  ;;  %v2083_v54 = vld [vmem:[%s10231_s3 + $0x3b0] sm:$0xff]  ;;  %v2080_v56 = vld [vmem:[%s10231_s3 + $0x398] sm:$0xff] }
 0x22c   :  { %5577 = vmatprep.subr.bf16.mxu1 %v6726_v10  ;;  %v6774_v10 = vcombine.high %v2040_v4, %v2044_v51  ;;  %v2084_v58 = vld [vmem:[%s10231_s3 + $0x3b8] sm:$0xff] }
 0x22e   :  { %5414 = vmatpush1.bf16.msra.mxu0 %v6723_v19  ;;  %v6771_v19 = vcombine.low %v2039_v1, %v2043_v39  ;;  %v2087_v1 = vld [vmem:[%s10231_s3 + $0x3d0] sm:$0xff] }
 0x22f   :  { %5578 = vmatpush1.bf16.msra.mxu1 %v6725_v20  ;;  %5415 = vmatprep.subr.bf16.mxu0 %v6732_v23  ;;  %v6773_v20 = vcombine.low %v2040_v4, %v2044_v51  ;;  %v6780_v23 = vcombine.high %v2047_v11, %v2051_v14  ;;  %v2091_v39 = vld [vmem:[%s10231_s3 + $0x3f0] sm:$0xff]  ;;  %v2088_v4 = vld [vmem:[%s10231_s3 + $0x3d8] sm:$0xff] }
 0x230   :  { %5579 = vmatprep.subr.bf16.mxu1 %v6734_v24  ;;  %v6782_v24 = vcombine.high %v2048_v16, %v2052_v18  ;;  %v2092_v51 = vld [vmem:[%s10231_s3 + $0x3f8] sm:$0xff] }
 0x232   :  { %5416 = vmatpush1.bf16.msra.mxu0 %v6731_v15  ;;  %v6779_v15 = vcombine.low %v2047_v11, %v2051_v14  ;;  %v2095_v11 = vld [vmem:[%s10231_s3 + $0x410] sm:$0xff] }
 0x233   :  { %5580 = vmatpush1.bf16.msra.mxu1 %v6733_v34  ;;  %5417 = vmatprep.subr.bf16.mxu0 %v6740_v35  ;;  %v6781_v34 = vcombine.low %v2048_v16, %v2052_v18  ;;  %v6788_v35 = vcombine.high %v2055_v25, %v2059_v26  ;;  %v2099_v14 = vld [vmem:[%s10231_s3 + $0x430] sm:$0xff]  ;;  %v2096_v16 = vld [vmem:[%s10231_s3 + $0x418] sm:$0xff] }
 0x234   :  { %5581 = vmatprep.subr.bf16.mxu1 %v6742_v36  ;;  %v6790_v36 = vcombine.high %v2056_v27, %v2060_v28  ;;  %v2100_v18 = vld [vmem:[%s10231_s3 + $0x438] sm:$0xff] }
 0x236   :  { %5418 = vmatpush1.bf16.msra.mxu0 %v6739_v31  ;;  %v6787_v31 = vcombine.low %v2055_v25, %v2059_v26  ;;  %v2103_v25 = vld [vmem:[%s10231_s3 + $0x450] sm:$0xff] }
 0x237   :  { %5582 = vmatpush1.bf16.msra.mxu1 %v6741_v42  ;;  %5419 = vmatprep.subr.bf16.mxu0 %v6748_v12  ;;  %v6789_v42 = vcombine.low %v2056_v27, %v2060_v28  ;;  %v6796_v12 = vcombine.high %v2063_v37, %v2067_v38  ;;  %v2107_v26 = vld [vmem:[%s10231_s3 + $0x470] sm:$0xff]  ;;  %v6827_v27 = vcombine.low %v2095_v11, %v2099_v14  ;;  %v2104_v28 = vld [vmem:[%s10231_s3 + $0x458] sm:$0xff] }
 0x238   :  { %5583 = vmatprep.subr.bf16.mxu1 %v6750_v44  ;;  %v6798_v44 = vcombine.high %v2064_v41, %v2068_v40 }
 0x23a   :  { %5420 = vmatpush1.bf16.msra.mxu0 %v6747_v47  ;;  %v6795_v47 = vcombine.low %v2063_v37, %v2067_v38  ;;  %v2115_v37 = vld [vmem:[%s10231_s3 + $0x4b0] sm:$0xff] }
 0x23b   :  { %5584 = vmatpush1.bf16.msra.mxu1 %v6749_v49  ;;  %5421 = vmatprep.subr.bf16.mxu0 %v6756_v21  ;;  %v6797_v49 = vcombine.low %v2064_v41, %v2068_v40  ;;  %v6804_v21 = vcombine.high %v2071_v22, %v2075_v45  ;;  %v2112_v41 = vld [vmem:[%s10231_s3 + $0x498] sm:$0xff] }
 0x23c   :  { %5585 = vmatprep.subr.bf16.mxu1 %v6758_v50  ;;  %v6806_v50 = vcombine.high %v2072_v57, %v2076_v46  ;;  %v2116_v40 = vld [vmem:[%s10231_s3 + $0x4b8] sm:$0xff] }
 0x23e   :  { %5422 = vmatpush1.bf16.msra.mxu0 %v6755_v59  ;;  %v6803_v59 = vcombine.low %v2071_v22, %v2075_v45  ;;  %v2119_v22 = vld [vmem:[%s10231_s3 + $0x4d0] sm:$0xff] }
 0x23f   :  { %5586 = vmatpush1.bf16.msra.mxu1 %v6757_v60  ;;  %5423 = vmatprep.subr.bf16.mxu0 %v6764_v61  ;;  %v6805_v60 = vcombine.low %v2072_v57, %v2076_v46  ;;  %v6812_v61 = vcombine.high %v2079_v52, %v2083_v54  ;;  %v2123_v45 = vld [vmem:[%s10231_s3 + $0x4f0] sm:$0xff]  ;;  %v2124_v57 = vld [vmem:[%s10231_s3 + $0x4f8] sm:$0xff]  ;;  %v6845_v46 = vcombine.low %v2112_v41, %v2116_v40 }
 0x240   :  { %5587 = vmatprep.subr.bf16.mxu1 %v6766_v0  ;;  %v6814_v0 = vcombine.high %v2080_v56, %v2084_v58 }
 0x242   :  { %5424 = vmatpush1.bf16.msra.mxu0 %v6763_v5  ;;  %v6811_v5 = vcombine.low %v2079_v52, %v2083_v54  ;;  %v2128_v52 = vld [vmem:[%s10231_s3 + $0x518] sm:$0xff] }
 0x243   :  { %5588 = vmatpush1.bf16.msra.mxu1 %v6765_v6  ;;  %5425 = vmatprep.subr.bf16.mxu0 %v6772_v7  ;;  %v6813_v6 = vcombine.low %v2080_v56, %v2084_v58  ;;  %v6820_v7 = vcombine.high %v2087_v1, %v2091_v39  ;;  %v2132_v54 = vld [vmem:[%s10231_s3 + $0x538] sm:$0xff]  ;;  %v6851_v56 = vcombine.low %v2119_v22, %v2123_v45 }
 0x244   :  { %5589 = vmatprep.subr.bf16.mxu1 %v6774_v10  ;;  %v6822_v10 = vcombine.high %v2088_v4, %v2092_v51 }
 0x246   :  { %5426 = vmatpush1.bf16.msra.mxu0 %v6771_v19  ;;  %v6819_v19 = vcombine.low %v2087_v1, %v2091_v39  ;;  %v2136_v1 = vld [vmem:[%s10231_s3 + $0x558] sm:$0xff] }
 0x247   :  { %5590 = vmatpush1.bf16.msra.mxu1 %v6773_v20  ;;  %5427 = vmatprep.subr.bf16.mxu0 %v6780_v23  ;;  %v6821_v20 = vcombine.low %v2088_v4, %v2092_v51  ;;  %v6828_v23 = vcombine.high %v2095_v11, %v2099_v14  ;;  %v2140_v39 = vld [vmem:[%s10231_s3 + $0x578] sm:$0xff]  ;;  %v6861_v51 = vcombine.low %v2128_v52, %v2132_v54 }
 0x248   :  { %5591 = vmatprep.subr.bf16.mxu1 %v6782_v24  ;;  %v6830_v24 = vcombine.high %v2096_v16, %v2100_v18  ;;  %v2144_v11 = vld [vmem:[%s10231_s3 + $0x598] sm:$0xff] }
 0x249   :  { %v2148_v14 = vld [vmem:[%s10231_s3 + $0x5b8] sm:$0xff] }
 0x24a   :  { %5428 = vmatpush1.bf16.msra.mxu0 %v6779_v15  ;;  %v2108_v15 = vld [vmem:[%s10231_s3 + $0x478] sm:$0xff] }
 0x24b   :  { %5592 = vmatpush1.bf16.msra.mxu1 %v6781_v34  ;;  %5429 = vmatprep.subr.bf16.mxu0 %v6788_v35  ;;  %v6829_v34 = vcombine.low %v2096_v16, %v2100_v18  ;;  %v6836_v35 = vcombine.high %v2103_v25, %v2107_v26  ;;  %v6838_v38 = vcombine.high %v2104_v28, %v2108_v15 }
 0x24c   :  { %5593 = vmatprep.subr.bf16.mxu1 %v6790_v36  ;;  %v2111_v36 = vld [vmem:[%s10231_s3 + $0x490] sm:$0xff]  ;;  %v6869_v18 = vcombine.low %v2136_v1, %v2140_v39 }
 0x24e   :  { %5430 = vmatpush1.bf16.msra.mxu0 %v6787_v31  ;;  %v6835_v31 = vcombine.low %v2103_v25, %v2107_v26  ;;  %v2152_v25 = vld [vmem:[%s10231_s3 + $0x5d8] sm:$0xff] }
 0x24f   :  { %5594 = vmatpush1.bf16.msra.mxu1 %v6789_v42  ;;  %5431 = vmatprep.subr.bf16.mxu0 %v6796_v12  ;;  %v6837_v42 = vcombine.low %v2104_v28, %v2108_v15  ;;  %v6844_v12 = vcombine.high %v2111_v36, %v2115_v37  ;;  %v2156_v26 = vld [vmem:[%s10231_s3 + $0x5f8] sm:$0xff]  ;;  %v6877_v28 = vcombine.low %v2144_v11, %v2148_v14 }
 0x250   :  { %5595 = vmatprep.subr.bf16.mxu1 %v6798_v44  ;;  %v6846_v44 = vcombine.high %v2112_v41, %v2116_v40  ;;  %v6885_v40 = vcombine.low %v2152_v25, %v2156_v26 }
 0x252   :  { %5432 = vmatpush1.bf16.msra.mxu0 %v6795_v47  ;;  %v6852_v47 = vcombine.high %v2119_v22, %v2123_v45  ;;  %v2168_v22 = vld [vmem:[%s10231_s3 + $0x658] sm:$0xff] }
 0x253   :  { %5596 = vmatpush1.bf16.msra.mxu1 %v6797_v49  ;;  %5433 = vmatprep.subr.bf16.mxu0 %v6804_v21  ;;  %v2127_v21 = vld [vmem:[%s10231_s3 + $0x510] sm:$0xff]  ;;  %v2172_v45 = vld [vmem:[%s10231_s3 + $0x678] sm:$0xff] }
 0x254   :  { %5597 = vmatprep.subr.bf16.mxu1 %v6806_v50  ;;  %v2131_v50 = vld [vmem:[%s10231_s3 + $0x530] sm:$0xff] }
 0x255   :  { %v6859_v4 = vcombine.low %v2127_v21, %v2131_v50 }
 0x256   :  { %5434 = vmatpush1.bf16.msra.mxu0 %v6803_v59  ;;  %v6860_v59 = vcombine.high %v2127_v21, %v2131_v50  ;;  %v2176_v21 = vld [vmem:[%s10231_s3 + $0x698] sm:$0xff] }
 0x257   :  { %5598 = vmatpush1.bf16.msra.mxu1 %v6805_v60  ;;  %5435 = vmatprep.subr.bf16.mxu0 %v6812_v61  ;;  %v6862_v60 = vcombine.high %v2128_v52, %v2132_v54  ;;  %v2135_v61 = vld [vmem:[%s10231_s3 + $0x550] sm:$0xff]  ;;  %v2180_v50 = vld [vmem:[%s10231_s3 + $0x6b8] sm:$0xff]  ;;  %v6901_v54 = vcombine.low %v2168_v22, %v2172_v45 }
 0x258   :  { %5599 = vmatprep.subr.bf16.mxu1 %v6814_v0  ;;  %v2139_v0 = vld [vmem:[%s10231_s3 + $0x570] sm:$0xff] }
 0x259   :  { %v6867_v16 = vcombine.low %v2135_v61, %v2139_v0 }
 0x25a   :  { %5436 = vmatpush1.bf16.msra.mxu0 %v6811_v5  ;;  %v6868_v5 = vcombine.high %v2135_v61, %v2139_v0  ;;  %v2184_v61 = vld [vmem:[%s10231_s3 + $0x6d8] sm:$0xff] }
 0x25b   :  { %5600 = vmatpush1.bf16.msra.mxu1 %v6813_v6  ;;  %5437 = vmatprep.subr.bf16.mxu0 %v6820_v7  ;;  %v6870_v6 = vcombine.high %v2136_v1, %v2140_v39  ;;  %v2143_v7 = vld [vmem:[%s10231_s3 + $0x590] sm:$0xff]  ;;  %v2188_v0 = vld [vmem:[%s10231_s3 + $0x6f8] sm:$0xff]  ;;  %v6909_v39 = vcombine.low %v2176_v21, %v2180_v50 }
 0x25c   :  { %5601 = vmatprep.subr.bf16.mxu1 %v6822_v10  ;;  %v2147_v10 = vld [vmem:[%s10231_s3 + $0x5b0] sm:$0xff] }
 0x25e   :  { %5438 = vmatpush1.bf16.msra.mxu0 %v6819_v19  ;;  %v6876_v19 = vcombine.high %v2143_v7, %v2147_v10 }
 0x25f   :  { %5602 = vmatpush1.bf16.msra.mxu1 %v6821_v20  ;;  %5448 = vmatprep.subr.bf16.mxu0 %v6828_v23  ;;  %v6878_v20 = vcombine.high %v2144_v11, %v2148_v14  ;;  %v2151_v23 = vld [vmem:[%s10231_s3 + $0x5d0] sm:$0xff]  ;;  %v6917_v14 = vcombine.low %v2184_v61, %v2188_v0 }
 0x260   :  { %5612 = vmatprep.subr.bf16.mxu1 %v6830_v24  ;;  %v2155_v24 = vld [vmem:[%s10231_s3 + $0x5f0] sm:$0xff] }
 0x261   :  { %5440 = vmatmul.mubr.bf16.vlgmr.msra.gmra.mrb[12].mxu0 %v8598_v55  ;;  %v6884_v15 = vcombine.high %v2151_v23, %v2155_v24  ;;  %v6883_v41 = vcombine.low %v2151_v23, %v2155_v24  ;;  %v2200_v23 = vld [vmem:[%s10231_s3 + $0x758] sm:$0xff] }
 0x262   :  { %5604 = vmatmul.mubr.bf16.vlgmr.msra.gmra.mrb[12].mxu1 %v8598_v55  ;;  %5449 = vmatpush1.bf16.msra.mxu0 %v6827_v27  ;;  %v2120_v55 = vld [vmem:[%s10231_s3 + $0x4d8] sm:$0xff]  ;;  %v6875_v27 = vcombine.low %v2143_v7, %v2147_v10 }
 0x263   :  { %5480 = vmatprep.mubr.bf16.mxu0 %v8614_v63  ;;  %5613 = vmatpush1.bf16.msra.mxu1 %v6829_v34  ;;  %v6854_v49 = vcombine.high %v2120_v55, %v2124_v57  ;;  %v6853_v58 = vcombine.low %v2120_v55, %v2124_v57  ;;  %v6886_v34 = vcombine.high %v2152_v25, %v2156_v26  ;;  %v2192_v7 = vld [vmem:[%s10231_s3 + $0x718] sm:$0xff] }
 0x264   :  { %5644 = vmatprep.mubr.bf16.mxu1 %v8614_v63  ;;  %5450 = vmatprep.subr.bf16.mxu0 %v6836_v35  ;;  %v6843_v63 = vcombine.low %v2111_v36, %v2115_v37  ;;  %v2159_v35 = vld [vmem:[%s10231_s3 + $0x610] sm:$0xff]  ;;  %v2160_v37 = vld [vmem:[%s10231_s3 + $0x618] sm:$0xff] }
 0x265   :  { %5614 = vmatprep.subr.bf16.mxu1 %v6838_v38  ;;  %v2163_v36 = vld [vmem:[%s10231_s3 + $0x630] sm:$0xff]  ;;  %v2164_v38 = vld [vmem:[%s10231_s3 + $0x638] sm:$0xff] }
 0x266   :  { %5451 = vmatpush1.bf16.msra.mxu0 %v6835_v31  ;;  %v6892_v31 = vcombine.high %v2159_v35, %v2163_v36  ;;  %v6891_v55 = vcombine.low %v2159_v35, %v2163_v36  ;;  %v6893_v57 = vcombine.low %v2160_v37, %v2164_v38  ;;  %v2196_v10 = vld [vmem:[%s10231_s3 + $0x738] sm:$0xff] }
 0x267   :  { %5615 = vmatpush1.bf16.msra.mxu1 %v6837_v42  ;;  %5452 = vmatprep.subr.bf16.mxu0 %v6844_v12  ;;  %v6894_v42 = vcombine.high %v2160_v37, %v2164_v38  ;;  %v2167_v12 = vld [vmem:[%s10231_s3 + $0x650] sm:$0xff]  ;;  %v2204_v24 = vld [vmem:[%s10231_s3 + $0x778] sm:$0xff]  ;;  %v6925_v26 = vcombine.low %v2192_v7, %v2196_v10 }
 0x268   :  { %5616 = vmatprep.subr.bf16.mxu1 %v6846_v44  ;;  %v2171_v44 = vld [vmem:[%s10231_s3 + $0x670] sm:$0xff]  ;;  %v2208_v35 = vld [vmem:[%s10231_s3 + $0x798] sm:$0xff]  ;;  %v6933_v38 = vcombine.low %v2200_v23, %v2204_v24 }
 0x269   :  { %v6899_v52 = vcombine.low %v2167_v12, %v2171_v44  ;;  %v2212_v36 = vld [vmem:[%s10231_s3 + $0x7b8] sm:$0xff] }
 0x26a   :  { %5453 = vmatpush1.bf16.msra.mxu0 %v6843_v63  ;;  %v6900_v63 = vcombine.high %v2167_v12, %v2171_v44  ;;  %v2216_v12 = vld [vmem:[%s10231_s3 + $0x7d8] sm:$0xff] }
 0x26b   :  { %5617 = vmatpush1.bf16.msra.mxu1 %v6845_v46  ;;  %5454 = vmatprep.subr.bf16.mxu0 %v6852_v47  ;;  %v6902_v46 = vcombine.high %v2168_v22, %v2172_v45  ;;  %v2175_v47 = vld [vmem:[%s10231_s3 + $0x690] sm:$0xff]  ;;  %v2220_v44 = vld [vmem:[%s10231_s3 + $0x7f8] sm:$0xff]  ;;  %v6941_v45 = vcombine.low %v2208_v35, %v2212_v36 }
 0x26c   :  { %5618 = vmatprep.subr.bf16.mxu1 %v6854_v49  ;;  %v2179_v49 = vld [vmem:[%s10231_s3 + $0x6b0] sm:$0xff] }
 0x26d   :  { %v6907_v1 = vcombine.low %v2175_v47, %v2179_v49 }
 0x26e   :  { %5455 = vmatpush1.bf16.msra.mxu0 %v6851_v56  ;;  %v6908_v56 = vcombine.high %v2175_v47, %v2179_v49  ;;  %v2224_v47 = vld [vmem:[%s10231_s3 + $0x818] sm:$0xff] }
 0x26f   :  { %5619 = vmatpush1.bf16.msra.mxu1 %v6853_v58  ;;  %5456 = vmatprep.subr.bf16.mxu0 %v6860_v59  ;;  %v6910_v58 = vcombine.high %v2176_v21, %v2180_v50  ;;  %v2183_v59 = vld [vmem:[%s10231_s3 + $0x6d0] sm:$0xff]  ;;  %v2228_v49 = vld [vmem:[%s10231_s3 + $0x838] sm:$0xff]  ;;  %v6949_v50 = vcombine.low %v2216_v12, %v2220_v44 }
 0x270   :  { %5620 = vmatprep.subr.bf16.mxu1 %v6862_v60  ;;  %v2187_v60 = vld [vmem:[%s10231_s3 + $0x6f0] sm:$0xff] }
 0x271   :  { %v6915_v11 = vcombine.low %v2183_v59, %v2187_v60 }
 0x272   :  { %5457 = vmatpush1.bf16.msra.mxu0 %v6859_v4  ;;  %v6916_v4 = vcombine.high %v2183_v59, %v2187_v60  ;;  %v2232_v60 = vld [vmem:[%s10231_s3 + $0x858] sm:$0xff] }
 0x273   :  { %5621 = vmatpush1.bf16.msra.mxu1 %v6861_v51  ;;  %5458 = vmatprep.subr.bf16.mxu0 %v6868_v5  ;;  %v6918_v51 = vcombine.high %v2184_v61, %v2188_v0  ;;  %v2191_v5 = vld [vmem:[%s10231_s3 + $0x710] sm:$0xff]  ;;  %v2236_v61 = vld [vmem:[%s10231_s3 + $0x878] sm:$0xff]  ;;  %v6957_v0 = vcombine.low %v2224_v47, %v2228_v49 }
 0x274   :  { %5622 = vmatprep.subr.bf16.mxu1 %v6870_v6  ;;  %v2195_v6 = vld [vmem:[%s10231_s3 + $0x730] sm:$0xff] }
 0x275   :  { %v6923_v25 = vcombine.low %v2191_v5, %v2195_v6 }
 0x276   :  { %5459 = vmatpush1.bf16.msra.mxu0 %v6867_v16  ;;  %v6924_v16 = vcombine.high %v2191_v5, %v2195_v6  ;;  %v6966_v5 = vcombine.high %v2232_v60, %v2236_v61  ;;  %v2244_v6 = vld [vmem:[%s10231_s3 + $0x8b8] sm:$0xff] }
 0x277   :  { %5623 = vmatpush1.bf16.msra.mxu1 %v6869_v18  ;;  %5460 = vmatprep.subr.bf16.mxu0 %v6876_v19  ;;  %v6926_v18 = vcombine.high %v2192_v7, %v2196_v10  ;;  %v2199_v19 = vld [vmem:[%s10231_s3 + $0x750] sm:$0xff] }
 0x278   :  { %5624 = vmatprep.subr.bf16.mxu1 %v6878_v20  ;;  %v2203_v20 = vld [vmem:[%s10231_s3 + $0x770] sm:$0xff] }
 0x279   :  { %v6931_v37 = vcombine.low %v2199_v19, %v2203_v20  ;;  %v2247_v10 = vld [vmem:[%s10231_s3 + $0x8d0] sm:$0xff] }
 0x27a   :  { %5461 = vmatpush1.bf16.msra.mxu0 %v6875_v27  ;;  %v6932_v27 = vcombine.high %v2199_v19, %v2203_v20  ;;  %v2252_v19 = vld [vmem:[%s10231_s3 + $0x8f8] sm:$0xff] }
 0x27b   :  { %5625 = vmatpush1.bf16.msra.mxu1 %v6877_v28  ;;  %5462 = vmatprep.subr.bf16.mxu0 %v6884_v15  ;;  %v6934_v28 = vcombine.high %v2200_v23, %v2204_v24  ;;  %v2207_v15 = vld [vmem:[%s10231_s3 + $0x790] sm:$0xff] }
 0x27c   :  { %5626 = vmatprep.subr.bf16.mxu1 %v6886_v34  ;;  %v2211_v34 = vld [vmem:[%s10231_s3 + $0x7b0] sm:$0xff] }
 0x27d   :  { %v6939_v22 = vcombine.low %v2207_v15, %v2211_v34  ;;  %v2255_v23 = vld [vmem:[%s10231_s3 + $0x910] sm:$0xff] }
 0x27e   :  { %5463 = vmatpush1.bf16.msra.mxu0 %v6883_v41  ;;  %v6940_v41 = vcombine.high %v2207_v15, %v2211_v34  ;;  %v2263_v34 = vld [vmem:[%s10231_s3 + $0x950] sm:$0xff] }
 0x27f   :  { %5627 = vmatpush1.bf16.msra.mxu1 %v6885_v40  ;;  %5464 = vmatprep.subr.bf16.mxu0 %v6892_v31  ;;  %v6942_v40 = vcombine.high %v2208_v35, %v2212_v36  ;;  %v2215_v31 = vld [vmem:[%s10231_s3 + $0x7d0] sm:$0xff] }
 0x280   :  { %5628 = vmatprep.subr.bf16.mxu1 %v6894_v42  ;;  %v2219_v42 = vld [vmem:[%s10231_s3 + $0x7f0] sm:$0xff] }
 0x281   :  { %v6947_v21 = vcombine.low %v2215_v31, %v2219_v42 }
 0x282   :  { %5465 = vmatpush1.bf16.msra.mxu0 %v6891_v55  ;;  %v6948_v55 = vcombine.high %v2215_v31, %v2219_v42  ;;  %v2271_v42 = vld [vmem:[%s10231_s3 + $0x990] sm:$0xff] }
 0x283   :  { %5629 = vmatpush1.bf16.msra.mxu1 %v6893_v57  ;;  %5466 = vmatprep.subr.bf16.mxu0 %v6900_v63  ;;  %v6950_v57 = vcombine.high %v2216_v12, %v2220_v44  ;;  %v2223_v63 = vld [vmem:[%s10231_s3 + $0x810] sm:$0xff] }
 0x284   :  { %5630 = vmatprep.subr.bf16.mxu1 %v6902_v46  ;;  %v2227_v46 = vld [vmem:[%s10231_s3 + $0x830] sm:$0xff] }
 0x285   :  { %v6955_v59 = vcombine.low %v2223_v63, %v2227_v46 }
 0x286   :  { %5467 = vmatpush1.bf16.msra.mxu0 %v6899_v52  ;;  %v6956_v52 = vcombine.high %v2223_v63, %v2227_v46  ;;  %v2279_v46 = vld [vmem:[%s10231_s3 + $0x9d0] sm:$0xff] }
 0x287   :  { %5631 = vmatpush1.bf16.msra.mxu1 %v6901_v54  ;;  %5468 = vmatprep.subr.bf16.mxu0 %v6908_v56  ;;  %v6958_v54 = vcombine.high %v2224_v47, %v2228_v49  ;;  %v2231_v56 = vld [vmem:[%s10231_s3 + $0x850] sm:$0xff] }
 0x288   :  { %5632 = vmatprep.subr.bf16.mxu1 %v6910_v58  ;;  %v2235_v58 = vld [vmem:[%s10231_s3 + $0x870] sm:$0xff] }
 0x289   :  { %v6963_v7 = vcombine.low %v2231_v56, %v2235_v58 }
 0x28a   :  { %5469 = vmatpush1.bf16.msra.mxu0 %v6907_v1  ;;  %v6964_v1 = vcombine.high %v2231_v56, %v2235_v58  ;;  %v2287_v58 = vld [vmem:[%s10231_s3 + $0xa10] sm:$0xff] }
 0x28b   :  { %5633 = vmatpush1.bf16.msra.mxu1 %v6909_v39  ;;  %5470 = vmatprep.subr.bf16.mxu0 %v6916_v4  ;;  %v2239_v39 = vld [vmem:[%s10231_s3 + $0x890] sm:$0xff] }
 0x28c   :  { %5634 = vmatprep.subr.bf16.mxu1 %v6918_v51  ;;  %v2243_v4 = vld [vmem:[%s10231_s3 + $0x8b0] sm:$0xff]  ;;  %v2240_v51 = vld [vmem:[%s10231_s3 + $0x898] sm:$0xff] }
 0x28d   :  { %v6971_v20 = vcombine.low %v2239_v39, %v2243_v4 }
 0x28e   :  { %5471 = vmatpush1.bf16.msra.mxu0 %v6915_v11  ;;  %v6965_v11 = vcombine.low %v2232_v60, %v2236_v61  ;;  %v2291_v61 = vld [vmem:[%s10231_s3 + $0xa30] sm:$0xff] }
 0x28f   :  { %5635 = vmatpush1.bf16.msra.mxu1 %v6917_v14  ;;  %5472 = vmatprep.subr.bf16.mxu0 %v6924_v16  ;;  %v6972_v14 = vcombine.high %v2239_v39, %v2243_v4  ;;  %v2251_v16 = vld [vmem:[%s10231_s3 + $0x8f0] sm:$0xff]  ;;  %v2292_v39 = vld [vmem:[%s10231_s3 + $0xa38] sm:$0xff] }
 0x290   :  { %5636 = vmatprep.subr.bf16.mxu1 %v6926_v18  ;;  %v6974_v18 = vcombine.high %v2240_v51, %v2244_v6  ;;  %v6980_v24 = vcombine.high %v2247_v10, %v2251_v16  ;;  %v6979_v15 = vcombine.low %v2247_v10, %v2251_v16  ;;  %v7019_v16 = vcombine.low %v2287_v58, %v2291_v61 }
 0x292   :  { %5473 = vmatpush1.bf16.msra.mxu0 %v6923_v25  ;;  %v2259_v25 = vld [vmem:[%s10231_s3 + $0x930] sm:$0xff] }
 0x293   :  { %5637 = vmatpush1.bf16.msra.mxu1 %v6925_v26  ;;  %5474 = vmatprep.subr.bf16.mxu0 %v6932_v27  ;;  %v2256_v27 = vld [vmem:[%s10231_s3 + $0x918] sm:$0xff]  ;;  %v6988_v36 = vcombine.high %v2255_v23, %v2259_v25  ;;  %v6987_v31 = vcombine.low %v2255_v23, %v2259_v25 }
 0x294   :  { %5638 = vmatprep.subr.bf16.mxu1 %v6934_v28  ;;  %v2260_v28 = vld [vmem:[%s10231_s3 + $0x938] sm:$0xff] }
 0x295   :  { %v6989_v12 = vcombine.low %v2256_v27, %v2260_v28  ;;  %v2304_v23 = vld [vmem:[%s10231_s3 + $0xa98] sm:$0xff] }
 0x296   :  { %5475 = vmatpush1.bf16.msra.mxu0 %v6931_v37  ;;  %v2267_v37 = vld [vmem:[%s10231_s3 + $0x970] sm:$0xff] }
 0x297   :  { %5639 = vmatpush1.bf16.msra.mxu1 %v6933_v38  ;;  %5476 = vmatprep.subr.bf16.mxu0 %v6940_v41  ;;  %v6990_v38 = vcombine.high %v2256_v27, %v2260_v28  ;;  %v2264_v41 = vld [vmem:[%s10231_s3 + $0x958] sm:$0xff]  ;;  %v6996_v44 = vcombine.high %v2263_v34, %v2267_v37  ;;  %v6995_v63 = vcombine.low %v2263_v34, %v2267_v37 }
 0x298   :  { %5640 = vmatprep.subr.bf16.mxu1 %v6942_v40  ;;  %v2268_v40 = vld [vmem:[%s10231_s3 + $0x978] sm:$0xff] }
 0x299   :  { %v6997_v47 = vcombine.low %v2264_v41, %v2268_v40 }
 0x29a   :  { %5477 = vmatpush1.bf16.msra.mxu0 %v6939_v22  ;;  %v2275_v22 = vld [vmem:[%s10231_s3 + $0x9b0] sm:$0xff] }
 0x29b   :  { %5641 = vmatpush1.bf16.msra.mxu1 %v6941_v45  ;;  %5478 = vmatprep.subr.bf16.mxu0 %v6948_v55  ;;  %v6998_v45 = vcombine.high %v2264_v41, %v2268_v40  ;;  %v2272_v55 = vld [vmem:[%s10231_s3 + $0x998] sm:$0xff]  ;;  %v7004_v49 = vcombine.high %v2271_v42, %v2275_v22  ;;  %v7003_v56 = vcombine.low %v2271_v42, %v2275_v22 }
 0x29c   :  { %5642 = vmatprep.subr.bf16.mxu1 %v6950_v57  ;;  %v2276_v57 = vld [vmem:[%s10231_s3 + $0x9b8] sm:$0xff] }
 0x29e   :  { %5479 = vmatpush1.bf16.msra.mxu0 %v6947_v21  ;;  %v2283_v21 = vld [vmem:[%s10231_s3 + $0x9f0] sm:$0xff] }
 0x29f   :  { %5643 = vmatpush1.bf16.msra.mxu1 %v6949_v50  ;;  %5489 = vmatprep.subr.bf16.mxu0 %v6956_v52  ;;  %v7006_v50 = vcombine.high %v2272_v55, %v2276_v57  ;;  %v2280_v52 = vld [vmem:[%s10231_s3 + $0x9d8] sm:$0xff]  ;;  %v7012_v60 = vcombine.high %v2279_v46, %v2283_v21  ;;  %v7011_v4 = vcombine.low %v2279_v46, %v2283_v21 }
 0x2a0   :  { %5653 = vmatprep.subr.bf16.mxu1 %v6958_v54  ;;  %v2284_v54 = vld [vmem:[%s10231_s3 + $0x9f8] sm:$0xff] }
 0x2a1   :  { %5481 = vmatmul.mubr.bf16.vlgmr.msra.gmra.mrb[12].mxu0 %v8805_v17 }
 0x2a2   :  { %5645 = vmatmul.mubr.bf16.vlgmr.msra.gmra.mrb[12].mxu1 %v8805_v17  ;;  %5490 = vmatpush1.bf16.msra.mxu0 %v6955_v59  ;;  %v2248_v17 = vld [vmem:[%s10231_s3 + $0x8d8] sm:$0xff]  ;;  %v7005_v59 = vcombine.low %v2272_v55, %v2276_v57 }
 0x2a3   :  { %5521 = vmatprep.mubr.bf16.mxu0 %v9015_v62  ;;  %5654 = vmatpush1.bf16.msra.mxu1 %v6957_v0  ;;  %v6982_v26 = vcombine.high %v2248_v17, %v2252_v19  ;;  %v6981_v35 = vcombine.low %v2248_v17, %v2252_v19  ;;  %v7014_v0 = vcombine.high %v2280_v52, %v2284_v54  ;;  %v2307_v17 = vld [vmem:[%s10231_s3 + $0xab0] sm:$0xff] }
 0x2a4   :  { %5685 = vmatprep.mubr.bf16.mxu1 %v9015_v62  ;;  %5491 = vmatprep.subr.bf16.mxu0 %v6964_v1  ;;  %v6973_v62 = vcombine.low %v2240_v51, %v2244_v6  ;;  %v2288_v1 = vld [vmem:[%s10231_s3 + $0xa18] sm:$0xff]  ;;  %v2295_v51 = vld [vmem:[%s10231_s3 + $0xa50] sm:$0xff]  ;;  %v7020_v6 = vcombine.high %v2287_v58, %v2291_v61 }
 0x2a5   :  { %5655 = vmatprep.subr.bf16.mxu1 %v6966_v5  ;;  %v7013_v5 = vcombine.low %v2280_v52, %v2284_v54  ;;  %v7022_v10 = vcombine.high %v2288_v1, %v2292_v39  ;;  %v7021_v19 = vcombine.low %v2288_v1, %v2292_v39 }
 0x2a6   :  { %5492 = vmatpush1.bf16.msra.mxu0 %v6963_v7  ;;  %v2299_v7 = vld [vmem:[%s10231_s3 + $0xa70] sm:$0xff] }
 0x2a7   :  { %5656 = vmatpush1.bf16.msra.mxu1 %v6965_v11  ;;  %5493 = vmatprep.subr.bf16.mxu0 %v6972_v14  ;;  %v2296_v11 = vld [vmem:[%s10231_s3 + $0xa58] sm:$0xff]  ;;  %v7027_v25 = vcombine.low %v2295_v51, %v2299_v7 }
 0x2a8   :  { %5657 = vmatprep.subr.bf16.mxu1 %v6974_v18  ;;  %v2300_v14 = vld [vmem:[%s10231_s3 + $0xa78] sm:$0xff]  ;;  %v2303_v18 = vld [vmem:[%s10231_s3 + $0xa90] sm:$0xff] }
 0x2a9   :  { %v7029_v27 = vcombine.low %v2296_v11, %v2300_v14  ;;  %v7036_v28 = vcombine.high %v2303_v18, %v2307_v17  ;;  %v7035_v37 = vcombine.low %v2303_v18, %v2307_v17  ;;  %v2352_v18 = vld [vmem:[%s10231_s3 + $0xc18] sm:$0xff] }
 0x2aa   :  { %5494 = vmatpush1.bf16.msra.mxu0 %v6971_v20  ;;  %v7028_v20 = vcombine.high %v2295_v51, %v2299_v7 }
 0x2ab   :  { %5658 = vmatpush1.bf16.msra.mxu1 %v6973_v62  ;;  %5495 = vmatprep.subr.bf16.mxu0 %v6980_v24  ;;  %v7030_v62 = vcombine.high %v2296_v11, %v2300_v14  ;;  %v2308_v24 = vld [vmem:[%s10231_s3 + $0xab8] sm:$0xff]  ;;  %v2355_v11 = vld [vmem:[%s10231_s3 + $0xc30] sm:$0xff] }
 0x2ac   :  { %5659 = vmatprep.subr.bf16.mxu1 %v6982_v26  ;;  %v2311_v26 = vld [vmem:[%s10231_s3 + $0xad0] sm:$0xff]  ;;  %v7038_v34 = vcombine.high %v2304_v23, %v2308_v24  ;;  %v7037_v41 = vcombine.low %v2304_v23, %v2308_v24 }
 0x2ad   :  { %v2359_v24 = vld [vmem:[%s10231_s3 + $0xc50] sm:$0xff] }
 0x2ae   :  { %5496 = vmatpush1.bf16.msra.mxu0 %v6979_v15  ;;  %v2315_v15 = vld [vmem:[%s10231_s3 + $0xaf0] sm:$0xff] }
 0x2af   :  { %5660 = vmatpush1.bf16.msra.mxu1 %v6981_v35  ;;  %5497 = vmatprep.subr.bf16.mxu0 %v6988_v36  ;;  %v2312_v35 = vld [vmem:[%s10231_s3 + $0xad8] sm:$0xff]  ;;  %v7044_v40 = vcombine.high %v2311_v26, %v2315_v15  ;;  %v7043_v22 = vcombine.low %v2311_v26, %v2315_v15 }
 0x2b0   :  { %5661 = vmatprep.subr.bf16.mxu1 %v6990_v38  ;;  %v2316_v36 = vld [vmem:[%s10231_s3 + $0xaf8] sm:$0xff]  ;;  %v2319_v38 = vld [vmem:[%s10231_s3 + $0xb10] sm:$0xff] }
 0x2b1   :  { %v7046_v42 = vcombine.high %v2312_v35, %v2316_v36  ;;  %v7045_v55 = vcombine.low %v2312_v35, %v2316_v36  ;;  %v2364_v15 = vld [vmem:[%s10231_s3 + $0xc78] sm:$0xff]  ;;  %v2367_v36 = vld [vmem:[%s10231_s3 + $0xc90] sm:$0xff] }
 0x2b2   :  { %5498 = vmatpush1.bf16.msra.mxu0 %v6987_v31  ;;  %v2323_v31 = vld [vmem:[%s10231_s3 + $0xb30] sm:$0xff] }
 0x2b3   :  { %5662 = vmatpush1.bf16.msra.mxu1 %v6989_v12  ;;  %5499 = vmatprep.subr.bf16.mxu0 %v6996_v44  ;;  %v2320_v12 = vld [vmem:[%s10231_s3 + $0xb18] sm:$0xff]  ;;  %v7052_v57 = vcombine.high %v2319_v38, %v2323_v31  ;;  %v7051_v21 = vcombine.low %v2319_v38, %v2323_v31 }
 0x2b4   :  { %5663 = vmatprep.subr.bf16.mxu1 %v6998_v45  ;;  %v2324_v44 = vld [vmem:[%s10231_s3 + $0xb38] sm:$0xff]  ;;  %v2327_v45 = vld [vmem:[%s10231_s3 + $0xb50] sm:$0xff] }
 0x2b5   :  { %v7054_v46 = vcombine.high %v2320_v12, %v2324_v44  ;;  %v7053_v52 = vcombine.low %v2320_v12, %v2324_v44 }
 0x2b6   :  { %5500 = vmatpush1.bf16.msra.mxu0 %v6995_v63  ;;  %v2331_v63 = vld [vmem:[%s10231_s3 + $0xb70] sm:$0xff] }
 0x2b7   :  { %5664 = vmatpush1.bf16.msra.mxu1 %v6997_v47  ;;  %5501 = vmatprep.subr.bf16.mxu0 %v7004_v49  ;;  %v2328_v47 = vld [vmem:[%s10231_s3 + $0xb58] sm:$0xff]  ;;  %v7060_v54 = vcombine.high %v2327_v45, %v2331_v63  ;;  %v7059_v61 = vcombine.low %v2327_v45, %v2331_v63  ;;  %v2379_v45 = vld [vmem:[%s10231_s3 + $0xcf0] sm:$0xff] }
 0x2b8   :  { %5665 = vmatprep.subr.bf16.mxu1 %v7006_v50  ;;  %v2332_v49 = vld [vmem:[%s10231_s3 + $0xb78] sm:$0xff]  ;;  %v2335_v50 = vld [vmem:[%s10231_s3 + $0xb90] sm:$0xff] }
 0x2b9   :  { %v7062_v58 = vcombine.high %v2328_v47, %v2332_v49  ;;  %v7061_v1 = vcombine.low %v2328_v47, %v2332_v49  ;;  %v2383_v47 = vld [vmem:[%s10231_s3 + $0xd10] sm:$0xff] }
 0x2ba   :  { %5502 = vmatpush1.bf16.msra.mxu0 %v7003_v56  ;;  %v2339_v56 = vld [vmem:[%s10231_s3 + $0xbb0] sm:$0xff] }
 0x2bb   :  { %5666 = vmatpush1.bf16.msra.mxu1 %v7005_v59  ;;  %5503 = vmatprep.subr.bf16.mxu0 %v7012_v60  ;;  %v2336_v59 = vld [vmem:[%s10231_s3 + $0xb98] sm:$0xff]  ;;  %v7068_v39 = vcombine.high %v2335_v50, %v2339_v56  ;;  %v7067_v7 = vcombine.low %v2335_v50, %v2339_v56  ;;  %v2387_v49 = vld [vmem:[%s10231_s3 + $0xd30] sm:$0xff] }
 0x2bc   :  { %5667 = vmatprep.subr.bf16.mxu1 %v7014_v0  ;;  %v2340_v60 = vld [vmem:[%s10231_s3 + $0xbb8] sm:$0xff]  ;;  %v2343_v0 = vld [vmem:[%s10231_s3 + $0xbd0] sm:$0xff]  ;;  %v7116_v56 = vcombine.high %v2383_v47, %v2387_v49 }
 0x2bd   :  { %v7070_v51 = vcombine.high %v2336_v59, %v2340_v60  ;;  %v7069_v14 = vcombine.low %v2336_v59, %v2340_v60  ;;  %v2388_v50 = vld [vmem:[%s10231_s3 + $0xd38] sm:$0xff]  ;;  %v2391_v59 = vld [vmem:[%s10231_s3 + $0xd50] sm:$0xff] }
 0x2be   :  { %5504 = vmatpush1.bf16.msra.mxu0 %v7011_v4  ;;  %v2347_v4 = vld [vmem:[%s10231_s3 + $0xbf0] sm:$0xff] }
 0x2bf   :  { %5668 = vmatpush1.bf16.msra.mxu1 %v7013_v5  ;;  %5505 = vmatprep.subr.bf16.mxu0 %v7020_v6  ;;  %v2344_v5 = vld [vmem:[%s10231_s3 + $0xbd8] sm:$0xff]  ;;  %v2395_v60 = vld [vmem:[%s10231_s3 + $0xd70] sm:$0xff] }
 0x2c0   :  { %5669 = vmatprep.subr.bf16.mxu1 %v7022_v10  ;;  %v2348_v6 = vld [vmem:[%s10231_s3 + $0xbf8] sm:$0xff]  ;;  %v2351_v10 = vld [vmem:[%s10231_s3 + $0xc10] sm:$0xff] }
 0x2c1   :  { %v7078_v17 = vcombine.high %v2344_v5, %v2348_v6  ;;  %v7077_v23 = vcombine.low %v2344_v5, %v2348_v6  ;;  %v2399_v5 = vld [vmem:[%s10231_s3 + $0xd90] sm:$0xff] }
 0x2c2   :  { %5506 = vmatpush1.bf16.msra.mxu0 %v7019_v16  ;;  %v7076_v16 = vcombine.high %v2343_v0, %v2347_v4  ;;  %v2403_v6 = vld [vmem:[%s10231_s3 + $0xdb0] sm:$0xff] }
 0x2c3   :  { %5670 = vmatpush1.bf16.msra.mxu1 %v7021_v19  ;;  %5507 = vmatprep.subr.bf16.mxu0 %v7028_v20  ;;  %v2356_v19 = vld [vmem:[%s10231_s3 + $0xc38] sm:$0xff]  ;;  %v7075_v20 = vcombine.low %v2343_v0, %v2347_v4  ;;  %v7124_v4 = vcombine.high %v2391_v59, %v2395_v60 }
 0x2c4   :  { %5671 = vmatprep.subr.bf16.mxu1 %v7030_v62  ;;  %v7084_v62 = vcombine.high %v2351_v10, %v2355_v11  ;;  %v7086_v26 = vcombine.high %v2352_v18, %v2356_v19  ;;  %v2396_v0 = vld [vmem:[%s10231_s3 + $0xd78] sm:$0xff] }
 0x2c6   :  { %5508 = vmatpush1.bf16.msra.mxu0 %v7027_v25  ;;  %v2363_v25 = vld [vmem:[%s10231_s3 + $0xc70] sm:$0xff] }
 0x2c7   :  { %5672 = vmatpush1.bf16.msra.mxu1 %v7029_v27  ;;  %5509 = vmatprep.subr.bf16.mxu0 %v7036_v28  ;;  %v7083_v27 = vcombine.low %v2351_v10, %v2355_v11  ;;  %v2360_v28 = vld [vmem:[%s10231_s3 + $0xc58] sm:$0xff]  ;;  %v7092_v35 = vcombine.high %v2359_v24, %v2363_v25  ;;  %v7091_v31 = vcombine.low %v2359_v24, %v2363_v25 }
 0x2c8   :  { %5673 = vmatprep.subr.bf16.mxu1 %v7038_v34  ;;  %v7085_v34 = vcombine.low %v2352_v18, %v2356_v19  ;;  %v7094_v38 = vcombine.high %v2360_v28, %v2364_v15  ;;  %v2404_v10 = vld [vmem:[%s10231_s3 + $0xdb8] sm:$0xff]  ;;  %v7123_v11 = vcombine.low %v2391_v59, %v2395_v60 }
 0x2c9   :  { %v2408_v25 = vld [vmem:[%s10231_s3 + $0xdd8] sm:$0xff] }
 0x2ca   :  { %5510 = vmatpush1.bf16.msra.mxu0 %v7035_v37  ;;  %v2371_v37 = vld [vmem:[%s10231_s3 + $0xcb0] sm:$0xff] }
 0x2cb   :  { %5674 = vmatpush1.bf16.msra.mxu1 %v7037_v41  ;;  %5511 = vmatprep.subr.bf16.mxu0 %v7044_v40  ;;  %v2368_v41 = vld [vmem:[%s10231_s3 + $0xc98] sm:$0xff]  ;;  %v7100_v12 = vcombine.high %v2367_v36, %v2371_v37 }
 0x2cc   :  { %5675 = vmatprep.subr.bf16.mxu1 %v7046_v42  ;;  %v2372_v40 = vld [vmem:[%s10231_s3 + $0xcb8] sm:$0xff]  ;;  %v7093_v42 = vcombine.low %v2360_v28, %v2364_v15  ;;  %v7131_v15 = vcombine.low %v2399_v5, %v2403_v6 }
 0x2cd   :  { %v7102_v44 = vcombine.high %v2368_v41, %v2372_v40 }
 0x2ce   :  { %5512 = vmatpush1.bf16.msra.mxu0 %v7043_v22  ;;  %v2375_v22 = vld [vmem:[%s10231_s3 + $0xcd0] sm:$0xff] }
 0x2cf   :  { %5676 = vmatpush1.bf16.msra.mxu1 %v7045_v55  ;;  %5513 = vmatprep.subr.bf16.mxu0 %v7052_v57  ;;  %v2380_v55 = vld [vmem:[%s10231_s3 + $0xcf8] sm:$0xff]  ;;  %v7101_v57 = vcombine.low %v2368_v41, %v2372_v40  ;;  %v7108_v63 = vcombine.high %v2375_v22, %v2379_v45  ;;  %v2415_v41 = vld [vmem:[%s10231_s3 + $0xe10] sm:$0xff] }
 0x2d0   :  { %5677 = vmatprep.subr.bf16.mxu1 %v7054_v46  ;;  %v2419_v40 = vld [vmem:[%s10231_s3 + $0xe30] sm:$0xff] }
 0x2d2   :  { %5514 = vmatpush1.bf16.msra.mxu0 %v7051_v21  ;;  %v2384_v21 = vld [vmem:[%s10231_s3 + $0xd18] sm:$0xff] }
 0x2d3   :  { %5678 = vmatpush1.bf16.msra.mxu1 %v7053_v52  ;;  %5515 = vmatprep.subr.bf16.mxu0 %v7060_v54  ;;  %v7107_v52 = vcombine.low %v2375_v22, %v2379_v45  ;;  %v7148_v22 = vcombine.high %v2415_v41, %v2419_v40 }
 0x2d4   :  { %5679 = vmatprep.subr.bf16.mxu1 %v7062_v58  ;;  %v7118_v58 = vcombine.high %v2384_v21, %v2388_v50 }
 0x2d6   :  { %5516 = vmatpush1.bf16.msra.mxu0 %v7059_v61  ;;  %v2392_v61 = vld [vmem:[%s10231_s3 + $0xd58] sm:$0xff] }
 0x2d7   :  { %5680 = vmatpush1.bf16.msra.mxu1 %v7061_v1  ;;  %5517 = vmatprep.subr.bf16.mxu0 %v7068_v39  ;;  %v7115_v1 = vcombine.low %v2383_v47, %v2387_v49  ;;  %v7117_v39 = vcombine.low %v2384_v21, %v2388_v50  ;;  %v2431_v21 = vld [vmem:[%s10231_s3 + $0xe90] sm:$0xff] }
 0x2d8   :  { %5681 = vmatprep.subr.bf16.mxu1 %v7070_v51  ;;  %v7126_v51 = vcombine.high %v2392_v61, %v2396_v0  ;;  %v2435_v50 = vld [vmem:[%s10231_s3 + $0xeb0] sm:$0xff] }
 0x2d9   :  { %v7164_v59 = vcombine.high %v2431_v21, %v2435_v50 }
 0x2da   :  { %5518 = vmatpush1.bf16.msra.mxu0 %v7067_v7  ;;  %v2400_v7 = vld [vmem:[%s10231_s3 + $0xd98] sm:$0xff] }
 0x2db   :  { %5682 = vmatpush1.bf16.msra.mxu1 %v7069_v14  ;;  %5519 = vmatprep.subr.bf16.mxu0 %v7076_v16  ;;  %v7125_v14 = vcombine.low %v2392_v61, %v2396_v0  ;;  %v7132_v16 = vcombine.high %v2399_v5, %v2403_v6  ;;  %v7134_v19 = vcombine.high %v2400_v7, %v2404_v10  ;;  %v2439_v61 = vld [vmem:[%s10231_s3 + $0xed0] sm:$0xff] }
 0x2dc   :  { %5683 = vmatprep.subr.bf16.mxu1 %v7078_v17  ;;  %v2443_v0 = vld [vmem:[%s10231_s3 + $0xef0] sm:$0xff] }
 0x2dd   :  { %v7172_v5 = vcombine.high %v2439_v61, %v2443_v0 }
 0x2de   :  { %5520 = vmatpush1.bf16.msra.mxu0 %v7075_v20  ;;  %v2407_v20 = vld [vmem:[%s10231_s3 + $0xdd0] sm:$0xff] }
 0x2df   :  { %5684 = vmatpush1.bf16.msra.mxu1 %v7077_v23  ;;  %5530 = vmatprep.subr.bf16.mxu0 %v7084_v62  ;;  %v2411_v23 = vld [vmem:[%s10231_s3 + $0xdf0] sm:$0xff] }
 0x2e0   :  { %5694 = vmatprep.subr.bf16.mxu1 %v7086_v26  ;;  %v2412_v26 = vld [vmem:[%s10231_s3 + $0xdf8] sm:$0xff] }
 0x2e1   :  { %5522 = vmatmul.mubr.bf16.vlgmr.msra.gmra.mrb[12].mxu0 %v9017_v2 }
 0x2e2   :  { %5686 = vmatmul.mubr.bf16.vlgmr.msra.gmra.mrb[12].mxu1 %v9017_v2  ;;  %5531 = vmatpush1.bf16.msra.mxu0 %v7083_v27  ;;  %v2376_v2 = vld [vmem:[%s10231_s3 + $0xcd8] sm:$0xff] }
 0x2e3   :  { %5562 = vmatprep.mubr.bf16.mxu0 %v9033_v8  ;;  %5695 = vmatpush1.bf16.msra.mxu1 %v7085_v34  ;;  %v7110_v46 = vcombine.high %v2376_v2, %v2380_v55  ;;  %v7109_v54 = vcombine.low %v2376_v2, %v2380_v55  ;;  %v2423_v2 = vld [vmem:[%s10231_s3 + $0xe50] sm:$0xff] }
 0x2e4   :  { %5726 = vmatprep.mubr.bf16.mxu1 %v9033_v8  ;;  %5532 = vmatprep.subr.bf16.mxu0 %v7092_v35  ;;  %v7099_v8 = vcombine.low %v2367_v36, %v2371_v37  ;;  %v7133_v36 = vcombine.low %v2400_v7, %v2404_v10  ;;  %v7140_v37 = vcombine.high %v2407_v20, %v2411_v23  ;;  %v2427_v55 = vld [vmem:[%s10231_s3 + $0xe70] sm:$0xff] }
 0x2e5   :  { %5696 = vmatprep.subr.bf16.mxu1 %v7094_v38  ;;  %v7142_v38 = vcombine.high %v2408_v25, %v2412_v26  ;;  %v7156_v47 = vcombine.high %v2423_v2, %v2427_v55  ;;  %v2447_v7 = vld [vmem:[%s10231_s3 + $0xf10] sm:$0xff] }
 0x2e6   :  { %5533 = vmatpush1.bf16.msra.mxu0 %v7091_v31  ;;  %v2416_v31 = vld [vmem:[%s10231_s3 + $0xe18] sm:$0xff]  ;;  %v2451_v10 = vld [vmem:[%s10231_s3 + $0xf30] sm:$0xff] }
 0x2e7   :  { %5697 = vmatpush1.bf16.msra.mxu1 %v7093_v42  ;;  %5534 = vmatprep.subr.bf16.mxu0 %v7100_v12  ;;  %v2420_v42 = vld [vmem:[%s10231_s3 + $0xe38] sm:$0xff]  ;;  %v7139_v12 = vcombine.low %v2407_v20, %v2411_v23  ;;  %v7180_v20 = vcombine.high %v2447_v7, %v2451_v10 }
 0x2e8   :  { %5698 = vmatprep.subr.bf16.mxu1 %v7102_v44  ;;  %v7141_v44 = vcombine.low %v2408_v25, %v2412_v26  ;;  %v7150_v45 = vcombine.high %v2416_v31, %v2420_v42  ;;  %v2455_v25 = vld [vmem:[%s10231_s3 + $0xf50] sm:$0xff] }
 0x2e9   :  { %v2459_v26 = vld [vmem:[%s10231_s3 + $0xf70] sm:$0xff] }
 0x2ea   :  { %5535 = vmatpush1.bf16.msra.mxu0 %v7099_v8  ;;  %v2424_v8 = vld [vmem:[%s10231_s3 + $0xe58] sm:$0xff] }
 0x2eb   :  { %5699 = vmatpush1.bf16.msra.mxu1 %v7101_v57  ;;  %5536 = vmatprep.subr.bf16.mxu0 %v7108_v63  ;;  %v2428_v57 = vld [vmem:[%s10231_s3 + $0xe78] sm:$0xff]  ;;  %v7147_v63 = vcombine.low %v2415_v41, %v2419_v40 }
 0x2ec   :  { %5700 = vmatprep.subr.bf16.mxu1 %v7110_v46  ;;  %v7149_v46 = vcombine.low %v2416_v31, %v2420_v42  ;;  %v7158_v49 = vcombine.high %v2424_v8, %v2428_v57  ;;  %v2464_v41 = vld [vmem:[%s10231_s3 + $0xf98] sm:$0xff]  ;;  %v9987_v31 = vld [vmem:[%s10234_s4] sm:$0xff]  ;;  %v7187_v42 = vcombine.low %v2455_v25, %v2459_v26 }
 0x2ed   :  { %v2468_v40 = vld [vmem:[%s10231_s3 + $0xfb8] sm:$0xff] }
 0x2ee   :  { %5537 = vmatpush1.bf16.msra.mxu0 %v7107_v52  ;;  %v2432_v52 = vld [vmem:[%s10231_s3 + $0xe98] sm:$0xff] }
 0x2ef   :  { %5701 = vmatpush1.bf16.msra.mxu1 %v7109_v54  ;;  %5538 = vmatprep.subr.bf16.mxu0 %v7116_v56  ;;  %v2436_v54 = vld [vmem:[%s10231_s3 + $0xeb8] sm:$0xff]  ;;  %v7155_v56 = vcombine.low %v2423_v2, %v2427_v55  ;;  %v2475_v2 = vld [vmem:[%s10231_s3 + $0xff0] sm:$0xff]  ;;  %v2486_v55 = vrot.slane %v9987_v31, %v293_v32 }
 0x2f0   :  { %5702 = vmatprep.subr.bf16.mxu1 %v7118_v58  ;;  %v7157_v58 = vcombine.low %v2424_v8, %v2428_v57  ;;  %v7166_v60 = vcombine.high %v2432_v52, %v2436_v54  ;;  %v2472_v8 = vld [vmem:[%s10231_s3 + $0xfd8] sm:$0xff] }
 0x2f1   :  { %v2476_v57 = vld [vmem:[%s10231_s3 + $0xff8] sm:$0xff] }
 0x2f2   :  { %5539 = vmatpush1.bf16.msra.mxu0 %v7115_v1  ;;  %v2440_v1 = vld [vmem:[%s10231_s3 + $0xed8] sm:$0xff]  ;;  %v7206_v32 = vcombine.high %v2472_v8, %v2476_v57 }
 0x2f3   :  { %5703 = vmatpush1.bf16.msra.mxu1 %v7117_v39  ;;  %5540 = vmatprep.subr.bf16.mxu0 %v7124_v4  ;;  %v2444_v39 = vld [vmem:[%s10231_s3 + $0xef8] sm:$0xff]  ;;  %v7163_v4 = vcombine.low %v2431_v21, %v2435_v50 }
 0x2f4   :  { %v9880_v18 = vpop.f32.mrb[8].mxu0  ;;  %v9882_v17 = vpop.f32.mrb[8].mxu1  ;;  %5704 = vmatprep.subr.bf16.mxu1 %v7126_v51  ;;  %v7165_v51 = vcombine.low %v2432_v52, %v2436_v54  ;;  %v7174_v6 = vcombine.high %v2440_v1, %v2444_v39  ;;  %v7205_v54 = vcombine.low %v2472_v8, %v2476_v57  ;;  %v7480_v8 = vld [vmem:[%s10233_s5 + $0x148] sm:$0xff]  }
 0x2f5   :  { %v9890_v62 = vpop.f32.mrb[9].mxu0  ;;  %v9892_v24 = vpop.f32.mrb[9].mxu1 }
 0x2f6   :  { %v5240_v27 = vpop.f32.mrb[10].mxu0  ;;  %v5404_v28 = vpop.f32.mrb[10].mxu1  ;;  %5541 = vmatpush1.bf16.msra.mxu0 %v7123_v11  ;;  %v2448_v11 = vld [vmem:[%s10231_s3 + $0xf18] sm:$0xff]  ;;  %v7369_v21 = vadd.f32 %v9890_v62, %v2486_v55  ;;  %v7446_v62 = vld [vmem:[%s10233_s5] sm:$0xff]  }
 0x2f7   :  { %5705 = vmatpush1.bf16.msra.mxu1 %v7125_v14  ;;  %v5241_v34 = vpop.f32.mrb[11].mxu0  ;;  %v5405_v35 = vpop.f32.mrb[11].mxu1  ;;  %5542 = vmatprep.subr.bf16.mxu0 %v7132_v16  ;;  %v2452_v14 = vld [vmem:[%s10231_s3 + $0xf38] sm:$0xff]  ;;  %v7171_v16 = vcombine.low %v2439_v61, %v2443_v0  ;;  %v7449_v0 = vld [vmem:[%s10233_s5 + $0xc8] sm:$0xff]   ;;  %v7479_v55 = vld [vmem:[%s10233_s5 + $0x180] sm:$0xff]  }
 0x2f8   :  { %5706 = vmatprep.subr.bf16.mxu1 %v7134_v19  ;;  %v7173_v19 = vcombine.low %v2440_v1, %v2444_v39  ;;  %v7182_v23 = vcombine.high %v2448_v11, %v2452_v14  ;;  %v2456_v27 = vld [vmem:[%s10231_s3 + $0xf58] sm:$0xff]  ;;  %v7181_v34 = vcombine.low %v2448_v11, %v2452_v14  ;;  %v7188_v35 = vcombine.high %v2455_v25, %v2459_v26  ;;  %v7450_v39 = vld [vmem:[%s10233_s5 + $0x8] sm:$0xff]  }
 0x2f9   :  { %v2460_v28 = vld [vmem:[%s10231_s3 + $0xf78] sm:$0xff]  ;;  %v7464_v25 = vld [vmem:[%s10233_s5 + $0x68] sm:$0xff]  }
 0x2fa   :  { %5543 = vmatpush1.bf16.msra.mxu0 %v7131_v15  ;;  %v7179_v15 = vcombine.low %v2447_v7, %v2451_v10  ;;  %v7456_v7 = vld [vmem:[%s10233_s5 + $0x58] sm:$0xff]   ;;  %v7465_v26 = vld [vmem:[%s10233_s5 + $0xe8] sm:$0xff]  }
 0x2fb   :  { %5707 = vmatpush1.bf16.msra.mxu1 %v7133_v36  ;;  %5544 = vmatprep.subr.bf16.mxu0 %v7140_v37  ;;  %v7190_v36 = vcombine.high %v2456_v27, %v2460_v28  ;;  %v2463_v37 = vld [vmem:[%s10231_s3 + $0xf90] sm:$0xff]  ;;  %v7457_v10 = vld [vmem:[%s10233_s5 + $0xd8] sm:$0xff]  }
 0x2fc   :  { %5708 = vmatprep.subr.bf16.mxu1 %v7142_v38  ;;  %v2467_v38 = vld [vmem:[%s10231_s3 + $0xfb0] sm:$0xff]  ;;  %v7458_v11 = vld [vmem:[%s10233_s5 + $0x18] sm:$0xff]  }
 0x2fd   :  { %v7459_v14 = vld [vmem:[%s10233_s5 + $0x98] sm:$0xff]  }
 0x2fe   :  { %5545 = vmatpush1.bf16.msra.mxu0 %v7139_v12  ;;  %v7189_v12 = vcombine.low %v2456_v27, %v2460_v28  ;;  %v7466_v27 = vld [vmem:[%s10233_s5 + $0x28] sm:$0xff]   ;;  %v2482_v28 = vrot.slane %v9987_v31, %v289_v30  ;;  %v7470_v30 = vld [vmem:[%s10233_s5 + $0x30] sm:$0xff]  }
 0x2ff   :  { %5709 = vmatpush1.bf16.msra.mxu1 %v7141_v44  ;;  %5546 = vmatprep.subr.bf16.mxu0 %v7148_v22  ;;  %v7196_v44 = vcombine.high %v2463_v37, %v2467_v38  ;;  %v7198_v22 = vcombine.high %v2464_v41, %v2468_v40 }
 0x300   :  { %5710 = vmatprep.subr.bf16.mxu1 %v7150_v45  ;;  %v2471_v45 = vld [vmem:[%s10231_s3 + $0xfd0] sm:$0xff] }
 0x301   :  { %v7203_v52 = vcombine.low %v2471_v45, %v2475_v2 }
 0x302   :  { %5547 = vmatpush1.bf16.msra.mxu0 %v7147_v63  ;;  %v2494_v63 = vrot.slane %v9987_v31, %v301_v33  ;;  %v7444_v33 = vld [vmem:[%s10233_s5 + $0x40] sm:$0xff]  }
 0x303   :  { %5711 = vmatpush1.bf16.msra.mxu1 %v7149_v46  ;;  %5548 = vmatprep.subr.bf16.mxu0 %v7156_v47  ;;  %v7195_v46 = vcombine.low %v2463_v37, %v2467_v38  ;;  %v7197_v47 = vcombine.low %v2464_v41, %v2468_v40  ;;  %v7368_v37 = vadd.f32 %v9880_v18, %v2482_v28  ;;  %v7471_v38 = vld [vmem:[%s10233_s5 + $0xb0] sm:$0xff]   ;;  %v7473_v40 = vld [vmem:[%s10233_s5 + $0xf8] sm:$0xff]  }
 0x304   :  { %5712 = vmatprep.subr.bf16.mxu1 %v7158_v49  ;;  %v7204_v49 = vcombine.high %v2471_v45, %v2475_v2  ;;  %v7371_v50 = vadd.f32 %v9892_v24, %v2494_v63  ;;  %v7447_v24 = vld [vmem:[%s10233_s5 + $0x80] sm:$0xff]   ;;  %v7474_v18 = vld [vmem:[%s10233_s5 + $0x38] sm:$0xff]   ;;  %v7481_v63 = vld [vmem:[%s10233_s5 + $0x1c8] sm:$0xff]  }
 0x305   :  { %v7478_v45 = vld [vmem:[%s10233_s5 + $0x100] sm:$0xff]  }
 0x306   :  { %5549 = vmatpush1.bf16.msra.mxu0 %v7155_v56  ;;  %v7445_v56 = vld [vmem:[%s10233_s5 + $0xc0] sm:$0xff]  }
 0x307   :  { %5713 = vmatpush1.bf16.msra.mxu1 %v7157_v58  ;;  %5550 = vmatprep.subr.bf16.mxu0 %v7164_v59  ;;  %v5736_v58 = vmax.f32 %v7369_v21, 0.0  ;;  %v5738_v59 = vmax.f32 %v7371_v50, 0.0  ;;  %v7486_v21 = vld [vmem:[%s10233_s5 + $0x110] sm:$0xff]  }
 0x308   :  { %5714 = vmatprep.subr.bf16.mxu1 %v7166_v60  ;;  %v7448_v60 = vld [vmem:[%s10233_s5 + $0x48] sm:$0xff]   ;;  %v7487_v50 = vld [vmem:[%s10233_s5 + $0x190] sm:$0xff]  }
 0x309   :  { %v5744_v61 = vpack.c.bf16 %v5736_v58, %v5736_v58  ;;  %v5746_v1 = vpack.c.bf16 %v5738_v59, %v5738_v59  ;;  %v7492_v58 = vld [vmem:[%s10233_s5 + $0x160] sm:$0xff]  }
 0x30a   :  { %5551 = vmatpush1.bf16.msra.mxu0 %v7163_v4  ;;  %v7451_v4 = vld [vmem:[%s10233_s5 + $0x88] sm:$0xff]   ;;  %v7493_v59 = vld [vmem:[%s10233_s5 + $0x1e0] sm:$0xff]  }
 0x30b   :  { %5715 = vmatpush1.bf16.msra.mxu1 %v7165_v51  ;;  %5552 = vmatprep.subr.bf16.mxu0 %v7172_v5  ;;  %v7452_v51 = vld [vmem:[%s10233_s5 + $0x50] sm:$0xff]  }
 0x30c   :  { %5716 = vmatprep.subr.bf16.mxu1 %v7174_v6  ;;  %v7454_v5 = vld [vmem:[%s10233_s5 + $0x10] sm:$0xff]  }
 0x30d   :  { %v7455_v6 = vld [vmem:[%s10233_s5 + $0x90] sm:$0xff]  }
 0x30e   :  { %5553 = vmatpush1.bf16.msra.mxu0 %v7171_v16  ;;  %v7460_v16 = vld [vmem:[%s10233_s5 + $0x60] sm:$0xff]  }
 0x30f   :  { %5717 = vmatpush1.bf16.msra.mxu1 %v7173_v19  ;;  %5554 = vmatprep.subr.bf16.mxu0 %v7180_v20  ;;  %v7461_v19 = vld [vmem:[%s10233_s5 + $0xe0] sm:$0xff]  }
 0x310   :  { %5718 = vmatprep.subr.bf16.mxu1 %v7182_v23  ;;  %v7462_v20 = vld [vmem:[%s10233_s5 + $0x20] sm:$0xff]  }
 0x311   :  { %v7463_v23 = vld [vmem:[%s10233_s5 + $0xa0] sm:$0xff]  }
 0x312   :  { %5555 = vmatpush1.bf16.msra.mxu0 %v7179_v15  ;;  %v7467_v15 = vld [vmem:[%s10233_s5 + $0xa8] sm:$0xff]  }
 0x313   :  { %5719 = vmatpush1.bf16.msra.mxu1 %v7181_v34  ;;  %5556 = vmatprep.subr.bf16.mxu0 %v7188_v35  ;;  %v7468_v34 = vld [vmem:[%s10233_s5 + $0x70] sm:$0xff]   ;;  %v2490_v35 = vrot.slane %v9987_v31, %v297_v43  ;;  %v7472_v43 = vld [vmem:[%s10233_s5 + $0x78] sm:$0xff]  }
 0x314   :  { %5720 = vmatprep.subr.bf16.mxu1 %v7190_v36  ;;  %v7469_v36 = vld [vmem:[%s10233_s5 + $0xf0] sm:$0xff]  }
 0x315   :  { %v7370_v41 = vadd.f32 %v9882_v17, %v2490_v35  ;;  %v7476_v17 = vld [vmem:[%s10233_s5 + $0x140] sm:$0xff]  }
 0x316   :  { %5557 = vmatpush1.bf16.msra.mxu0 %v7187_v42  ;;  %v5735_v42 = vmax.f32 %v7368_v37, 0.0 }
 0x317   :  { %5721 = vmatpush1.bf16.msra.mxu1 %v7189_v12  ;;  %5558 = vmatprep.subr.bf16.mxu0 %v7196_v44  ;;  %v7475_v12 = vld [vmem:[%s10233_s5 + $0xb8] sm:$0xff]   ;;  %v5737_v44 = vmax.f32 %v7370_v41, 0.0 }
 0x318   :  { %5722 = vmatprep.subr.bf16.mxu1 %v7198_v22  ;;  %v7477_v22 = vld [vmem:[%s10233_s5 + $0x1c0] sm:$0xff]   ;;  %v5743_v2 = vpack.c.bf16 %v5735_v42, %v5735_v42 }
 0x319   :  { %v5745_v57 = vpack.c.bf16 %v5737_v44, %v5737_v44 }
 0x31a   :  { %5559 = vmatpush1.bf16.msra.mxu0 %v7195_v46  ;;  %v7482_v46 = vld [vmem:[%s10233_s5 + $0x108] sm:$0xff]  }
 0x31b   :  { %5723 = vmatpush1.bf16.msra.mxu1 %v7197_v47  ;;  %5560 = vmatprep.subr.bf16.mxu0 %v7204_v49  ;;  %v7483_v47 = vld [vmem:[%s10233_s5 + $0x188] sm:$0xff]   ;;  %v7484_v49 = vld [vmem:[%s10233_s5 + $0x150] sm:$0xff]  }
 0x31c   :  { %5724 = vmatprep.subr.bf16.mxu1 %v7206_v32  ;;  %v7485_v32 = vld [vmem:[%s10233_s5 + $0x1d0] sm:$0xff]  }
 0x31e   :  { %5561 = vmatpush1.bf16.msra.mxu0 %v7203_v52  ;;  %v7488_v52 = vld [vmem:[%s10233_s5 + $0x158] sm:$0xff]  }
 0x31f   :  { %5725 = vmatpush1.bf16.msra.mxu1 %v7205_v54  ;;  %7272 = vmatprep.subr.bf16.mxu0 %v7444_v33  ;;  %v7489_v54 = vld [vmem:[%s10233_s5 + $0x1d8] sm:$0xff]  }
 0x320   :  { %7294 = vmatprep.subr.bf16.mxu1 %v7445_v56  ;;  %v7490_v33 = vld [vmem:[%s10233_s5 + $0x118] sm:$0xff]  }
 0x321   :  { %5563 = vmatmul.mubr.bf16.vlgmr.msra.gmra.mrb[12].mxu0 %v9226_v48  ;;  %v7491_v56 = vld [vmem:[%s10233_s5 + $0x198] sm:$0xff]  }
 0x322   :  { %5727 = vmatmul.mubr.bf16.vlgmr.msra.gmra.mrb[12].mxu1 %v9226_v48  ;;  %7273 = vmatpush3.bf16.msra.mxu0 %v7446_v62  ;;  %v7453_v48 = vld [vmem:[%s10233_s5 + $0xd0] sm:$0xff]   ;;  %v7494_v62 = vld [vmem:[%s10233_s5 + $0x120] sm:$0xff]  }
 0x323   :  { %6302 = vmatprep.mubr.bf16.mxu0 %v5744_v61  ;;  %7295 = vmatpush3.bf16.msra.mxu1 %v7447_v24  ;;  %v7495_v24 = vld [vmem:[%s10233_s5 + $0x1a0] sm:$0xff]   ;;  %v7497_v61 = vld [vmem:[%s10233_s5 + $0x1e8] sm:$0xff]  }
 0x324   :  { %6342 = vmatprep.mubr.bf16.mxu1 %v5746_v1  ;;  %7274 = vmatprep.subr.bf16.mxu0 %v7448_v60  ;;  %v7496_v60 = vld [vmem:[%s10233_s5 + $0x168] sm:$0xff]  }
 0x325   :  { %7296 = vmatprep.subr.bf16.mxu1 %v7449_v0  ;;  %v7498_v0 = vld [vmem:[%s10233_s5 + $0x128] sm:$0xff]  }
 0x326   :  { %7275 = vmatpush3.bf16.msra.mxu0 %v7450_v39  ;;  %v7499_v1 = vld [vmem:[%s10233_s5 + $0x1a8] sm:$0xff]   ;;  %v7500_v39 = vld [vmem:[%s10233_s5 + $0x170] sm:$0xff]  }
 0x327   :  { %7297 = vmatpush3.bf16.msra.mxu1 %v7451_v4  ;;  %7276 = vmatprep.subr.bf16.mxu0 %v7452_v51  ;;  %v7501_v4 = vld [vmem:[%s10233_s5 + $0x1f0] sm:$0xff]  }
 0x328   :  { %7298 = vmatprep.subr.bf16.mxu1 %v7453_v48  ;;  %v7502_v51 = vld [vmem:[%s10233_s5 + $0x130] sm:$0xff]  }
 0x329   :  { %v7503_v48 = vld [vmem:[%s10233_s5 + $0x1b0] sm:$0xff]  }
 0x32a   :  { %7277 = vmatpush3.bf16.msra.mxu0 %v7454_v5  ;;  %v7504_v5 = vld [vmem:[%s10233_s5 + $0x178] sm:$0xff]  }
 0x32b   :  { %7299 = vmatpush3.bf16.msra.mxu1 %v7455_v6  ;;  %7278 = vmatprep.subr.bf16.mxu0 %v7456_v7  ;;  %v7505_v6 = vld [vmem:[%s10233_s5 + $0x1f8] sm:$0xff]  }
 0x32c   :  { %7300 = vmatprep.subr.bf16.mxu1 %v7457_v10  ;;  %v7506_v7 = vld [vmem:[%s10233_s5 + $0x138] sm:$0xff]  }
 0x32d   :  { %v7507_v10 = vld [vmem:[%s10233_s5 + $0x1b8] sm:$0xff]  }
 0x32e   :  { %7279 = vmatpush3.bf16.msra.mxu0 %v7458_v11  ;;  %v2498_v11 = vrot.slane %v9987_v31, %v305_v9 }
 0x32f   :  { %7301 = vmatpush3.bf16.msra.mxu1 %v7459_v14  ;;  %7280 = vmatprep.subr.bf16.mxu0 %v7460_v16  ;;  %v2506_v14 = vrot.slane %v9987_v31, %v313_v3  ;;  %v2502_v16 = vrot.slane %v9987_v31, %v309_v13 }
 0x330   :  { %7302 = vmatprep.subr.bf16.mxu1 %v7461_v19  ;;  %v2510_v19 = vrot.slane %v9987_v31, %v317_v53 }
 0x332   :  { %7281 = vmatpush3.bf16.msra.mxu0 %v7462_v20 }
 0x333   :  { %7303 = vmatpush3.bf16.msra.mxu1 %v7463_v23  ;;  %7282 = vmatprep.subr.bf16.mxu0 %v7464_v25 }
 0x334   :  { %7304 = vmatprep.subr.bf16.mxu1 %v7465_v26 }
 0x336   :  { %7283 = vmatpush3.bf16.msra.mxu0 %v7466_v27 }
 0x337   :  { %7305 = vmatpush3.bf16.msra.mxu1 %v7467_v15  ;;  %7284 = vmatprep.subr.bf16.mxu0 %v7468_v34 }
 0x338   :  { %7306 = vmatprep.subr.bf16.mxu1 %v7469_v36 }
 0x33a   :  { %7285 = vmatpush3.bf16.msra.mxu0 %v7470_v30 }
 0x33b   :  { %7307 = vmatpush3.bf16.msra.mxu1 %v7471_v38  ;;  %7286 = vmatprep.subr.bf16.mxu0 %v7472_v43 }
 0x33c   :  { %7308 = vmatprep.subr.bf16.mxu1 %v7473_v40 }
 0x33e   :  { %7287 = vmatpush3.bf16.msra.mxu0 %v7474_v18  ;;  %v7207_v18 = vld [vmem:[%s10235_s6] ss:$0 sm:$0xff] }
 0x33f   :  { %7309 = vmatpush3.bf16.msra.mxu1 %v7475_v12  ;;  %7316 = vmatprep.subr.bf16.mxu0 %v7476_v17 }
 0x340   :  { %7338 = vmatprep.subr.bf16.mxu1 %v7477_v22 }
 0x341   :  { %6303 = vmatmul.mubr.bf16.vlgmr.msra.gmra.mrb[16].mxu0 %v5743_v2 }
 0x342   :  { %6343 = vmatmul.mubr.bf16.vlgmr.msra.gmra.mrb[16].mxu1 %v5745_v57  ;;  %7317 = vmatpush3.bf16.msra.mxu0 %v7478_v45 }
 0x343   :  { %7339 = vmatpush3.bf16.msra.mxu1 %v7479_v55  ;;  %7318 = vmatprep.subr.bf16.mxu0 %v7480_v8 }
 0x344   :  { %7340 = vmatprep.subr.bf16.mxu1 %v7481_v63 }
 0x346   :  { %7319 = vmatpush3.bf16.msra.mxu0 %v7482_v46 }
 0x347   :  { %7341 = vmatpush3.bf16.msra.mxu1 %v7483_v47  ;;  %7320 = vmatprep.subr.bf16.mxu0 %v7484_v49 }
 0x348   :  { %7342 = vmatprep.subr.bf16.mxu1 %v7485_v32 }
 0x34a   :  { %7321 = vmatpush3.bf16.msra.mxu0 %v7486_v21 }
 0x34b   :  { %7343 = vmatpush3.bf16.msra.mxu1 %v7487_v50  ;;  %7322 = vmatprep.subr.bf16.mxu0 %v7488_v52 }
 0x34c   :  { %7344 = vmatprep.subr.bf16.mxu1 %v7489_v54 }
 0x34e   :  { %7323 = vmatpush3.bf16.msra.mxu0 %v7490_v33 }
 0x34f   :  { %7345 = vmatpush3.bf16.msra.mxu1 %v7491_v56  ;;  %7324 = vmatprep.subr.bf16.mxu0 %v7492_v58 }
 0x350   :  { %7346 = vmatprep.subr.bf16.mxu1 %v7493_v59 }
 0x352   :  { %7325 = vmatpush3.bf16.msra.mxu0 %v7494_v62 }
 0x353   :  { %7347 = vmatpush3.bf16.msra.mxu1 %v7495_v24  ;;  %7326 = vmatprep.subr.bf16.mxu0 %v7496_v60 }
 0x354   :  { %7348 = vmatprep.subr.bf16.mxu1 %v7497_v61 }
 0x356   :  { %7327 = vmatpush3.bf16.msra.mxu0 %v7498_v0 }
 0x357   :  { %7349 = vmatpush3.bf16.msra.mxu1 %v7499_v1  ;;  %7328 = vmatprep.subr.bf16.mxu0 %v7500_v39 }
 0x358   :  { %7350 = vmatprep.subr.bf16.mxu1 %v7501_v4 }
 0x35a   :  { %7329 = vmatpush3.bf16.msra.mxu0 %v7502_v51 }
 0x35b   :  { %7351 = vmatpush3.bf16.msra.mxu1 %v7503_v48  ;;  %7330 = vmatprep.subr.bf16.mxu0 %v7504_v5 }
 0x35c   :  { %7352 = vmatprep.subr.bf16.mxu1 %v7505_v6 }
 0x35e   :  { %7331 = vmatpush3.bf16.msra.mxu0 %v7506_v7 }
 0x35f   :  { %7353 = vmatpush3.bf16.msra.mxu1 %v7507_v10 }
 0x3f4   :  { %v5564_v20 = vpop.f32.mrb[12].mxu0 }
 0x3f5   :  { %v7372_v23 = vadd.f32 %v5564_v20, %v2498_v11  ;;  %v5728_v25 = vpop.f32.mrb[12].mxu1  ;;  %v5566_v26 = vpop.f32.mrb[13].mxu0 }
 0x3f6   :  { %v7374_v27 = vadd.f32 %v5728_v25, %v2506_v14  ;;  %v7373_v28 = vadd.f32 %v5566_v26, %v2502_v16  ;;  %v5730_v15 = vpop.f32.mrb[13].mxu1  ;;  %v5568_v9 = vpop.f32.mrb[14].mxu0 }
 0x3f7   :  { %v5739_v34 = vmax.f32 %v7372_v23, 0.0  ;;  %v7375_v35 = vadd.f32 %v5730_v15, %v2510_v19  ;;  %v5732_v36 = vpop.f32.mrb[14].mxu1  ;;  %v5569_v3 = vpop.f32.mrb[15].mxu0 }
 0x3f8   :  { %v5741_v30 = vmax.f32 %v7374_v27, 0.0  ;;  %v5740_v37 = vmax.f32 %v7373_v28, 0.0  ;;  %v5733_v38 = vpop.f32.mrb[15].mxu1 }
 0x3f9   :  { %v5742_v13 = vmax.f32 %v7375_v35, 0.0  ;;  %v5747_v29 = vpack.c.bf16 %v5739_v34, %v5739_v34 }
 0x3fa   :  { %v5748_v43 = vpack.c.bf16 %v5740_v37, %v5740_v37  ;;  %v5749_v53 = vpack.c.bf16 %v5741_v30, %v5741_v30 }
 0x3fb   :  { %v5750_v41 = vpack.c.bf16 %v5742_v13, %v5742_v13 }
 0x3fc   :  { %6382 = vmatprep.mubr.bf16.mxu0 %v5748_v43 }
 0x3fd   :  { %6422 = vmatprep.mubr.bf16.mxu1 %v5750_v41  ;;  %6383 = vmatmul.mubr.bf16.vlgmr.msra.gmra.mrb[20].mxu0 %v5747_v29 }
 0x3fe   :  { %6423 = vmatmul.mubr.bf16.vlgmr.msra.gmra.mrb[20].mxu1 %v5749_v53 }
 0x414   :  { %v7288_v31 = vpop.f32.mrb[16].mxu0 }
 0x415   :  { %v7310_v40 = vpop.f32.mrb[16].mxu1  ;;  %v7289_v42 = vpop.f32.mrb[17].mxu0 }
 0x416   :  { %v7290_v12 = vadd.f32 %v7289_v42, %v7288_v31  ;;  %v7311_v17 = vpop.f32.mrb[17].mxu1  ;;  %v7291_v44 = vpop.f32.mrb[18].mxu0 }
 0x417   :  { %v7312_v22 = vadd.f32 %v7311_v17, %v7310_v40  ;;  %v7313_v45 = vpop.f32.mrb[18].mxu1  ;;  %v7292_v2 = vpop.f32.mrb[19].mxu0 }
 0x418   :  { %v6305_v55 = vadd.f32 %v7290_v12, %v7207_v18  ;;  %v7314_v8 = vpop.f32.mrb[19].mxu1 }
 0x41a   :  { %v6345_v57 = vadd.f32 %v7312_v22, %v6305_v55 }
 0x4d0   :  { %v7332_v63 = vpop.f32.mrb[20].mxu0 }
 0x4d1   :  { %v7354_v46 = vpop.f32.mrb[20].mxu1  ;;  %v7333_v47 = vpop.f32.mrb[21].mxu0 }
 0x4d2   :  { %v7334_v49 = vadd.f32 %v7333_v47, %v7332_v63  ;;  %v7355_v32 = vpop.f32.mrb[21].mxu1  ;;  %v7335_v21 = vpop.f32.mrb[22].mxu0 }
 0x4d3   :  { %v7356_v50 = vadd.f32 %v7355_v32, %v7354_v46  ;;  %v7357_v52 = vpop.f32.mrb[22].mxu1  ;;  %v7336_v54 = vpop.f32.mrb[23].mxu0 }
 0x4d4   :  { %v6385_v33 = vadd.f32 %v7334_v49, %v6345_v57  ;;  %v7358_v56 = vpop.f32.mrb[23].mxu1 }
 0x4d6   :  { %v6425_v58 = vadd.f32 %v7356_v50, %v6385_v33 }
 0x4d8   :  { %6430 = vst [vmem:[%s10236_s7] sm:$0xff] %v6425_v58 }

</bundles_post_ra>
